<compile_context>
chip_gen: v7x
topology: tpu7x:2x2x1
jax: 0.10.0
libtpu: 0.0.40
codegen_flags: <defaults>
</compile_context>

<pallas_src>
import functools
import math

import jax
import jax.numpy as jnp
from jax import lax
from jax.experimental import pallas as pl
from jax.experimental.pallas import tpu as pltpu


def _round_up(x, m):
    return (x + m - 1) // m * m


def _vmem_budget_and_limit():
    """Return (tile-selection budget, compiler vmem limit) bytes per generation."""
    cap = 64 * 1024 * 1024                      # conservative fallback (v7x physical)
    try:
        info = pltpu.get_tpu_info()
        for name in ("vmem_capacity_bytes", "vmem_size_bytes"):
            c = getattr(info, name, None)
            if c:
                cap = int(c)
                break
    except Exception:
        pass
    budget = max(cap // 2, 16 * 1024 * 1024)    # headroom for pipeline/compiler scratch
    limit = min(int(cap * 9 // 10), 112 * 1024 * 1024)
    return budget, max(limit, budget)


def _pick_tile_h(*, n, h1, k, wpad, c_in, c_out_lane, in_dsize, out_dsize, budget):
    """Largest multiple-of-k output-row tile whose working set fits the budget."""
    cin_l = _round_up(c_in, 128)                 # VMEM lane padding of the input block
    kkcin_l = _round_up(k * k * c_in, 128)
    cout_l = _round_up(c_out_lane, 128)

    def vmem_use(t):
        rows = t * wpad
        halo = k * wpad
        use = 2 * rows * cin_l * in_dsize        # main input block (double-buffered)
        use += 2 * halo * cin_l * in_dsize       # halo input block
        use += 2 * (k * k * c_in) * cout_l * in_dsize   # weights (2 bufs)
        use += 2 * rows * cout_l * out_dsize     # output block
        use += rows * kkcin_l * in_dsize         # in-kernel im2col LHS
        use += 2 * rows * cout_l * 4             # f32 accumulator + epilogue temp
        return use

    max_t = _round_up(h1, k)                     # whole image in one tile
    tile_h = k                                   # minimum: one k-row group
    t = k
    while t <= max_t and vmem_use(t) <= budget:
        tile_h = t
        t += k
    # Give the second v7x TensorCore work even when the batch axis is 1.
    if n < 2 and h1 > k:
        tile_h = min(tile_h, k * math.ceil(math.ceil(h1 / 2) / k))
    return tile_h


def _conv_bn_silu_kernel(x_ref, xh_ref, w_ref, shift_ref, o_ref, *,
                         k, wpad, rows, fuse_taps):
    # x_ref     : (1, rows, C_in)     this tile's flattened padded image rows
    # xh_ref    : (1, k*wpad, C_in)   halo: the next k padded image rows
    # w_ref     : (k*k*C_in, C_out_lane) if fuse_taps else (k*k, C_in, C_out_lane)
    # shift_ref : (1, C_out_lane)     folded BN shift (f32)
    # o_ref     : (1, rows, C_out_lane)
    xc = jnp.concatenate([x_ref[0], xh_ref[0]], axis=0)      # (rows + k*wpad, C_in)

    if fuse_taps:
        # In-VMEM im2col: lane-concatenate the k*k tap slices and do ONE MXU
        # matmul with K = k*k*C_in (good systolic fill for small C_in, and no
        # per-tap MRF-drain + VPU-add passes on v5e/v6e).
        taps = [xc[i * wpad + j: i * wpad + j + rows, :]
                for i in range(k) for j in range(k)]
        lhs = taps[0] if len(taps) == 1 else jnp.concatenate(taps, axis=-1)
        acc = jnp.dot(lhs, w_ref[...], preferred_element_type=jnp.float32)
    else:
        # Large C_in: per-tap K=C_in matmuls accumulated in f32.
        acc = jnp.zeros((rows, o_ref.shape[-1]), jnp.float32)
        for idx in range(k * k):
            i, j = divmod(idx, k)
            s = i * wpad + j
            acc = acc + jnp.dot(xc[s:s + rows, :], w_ref[idx],
                                preferred_element_type=jnp.float32)

    y = acc + shift_ref[...]            # BatchNorm (eval, folded)
    y = y * jax.nn.sigmoid(y)           # SiLU; sigmoid runs on the EUP slot
    o_ref[0] = y.astype(o_ref.dtype)


@functools.partial(
    jax.jit,
    static_argnames=("kernel_size", "stride", "eps", "compute_dtype",
                     "out_dtype", "data_format"))
def conv_layer_forward(x, weight, gamma, beta, running_mean, running_var, *,
                       kernel_size, stride=1, eps=1e-5,
                       compute_dtype=jnp.float32, out_dtype=None,
                       data_format="NCHW"):
    """Fused Conv2d(bias=False) -> BatchNorm2d(eval) -> SiLU.

    x: (N, C_in, H, W) for data_format="NCHW" (PyTorch layout) or (N, H, W, C_in)
    for "NHWC" (recommended end-to-end: drops both wrapper transposes).
    weight: (C_out, C_in, k, k).  padding = kernel_size // 2 (matches the module).

    compute_dtype: MXU operand dtype — bf16 is recommended on v5e, v6e and v7x
    (the MXU is bf16-native on all three); accumulation and the BN/SiLU epilogue
    stay f32.  out_dtype: HBM output dtype (defaults to x.dtype).
    """
    if data_format == "NCHW":
        xh = jnp.transpose(x, (0, 2, 3, 1))
    elif data_format == "NHWC":
        xh = x
    else:
        raise ValueError(f"unsupported data_format {data_format!r}")
    n, h, w, c_in = xh.shape
    c_out = weight.shape[0]
    k = kernel_size
    pad = k // 2
    out_dtype = x.dtype if out_dtype is None else out_dtype

    # Dense (stride-1) output extents; stride>1 is produced by subsampling the
    # dense result (exact for this padding scheme).
    h1 = h + 2 * pad - k + 1
    w1 = w + 2 * pad - k + 1
    h_out = (h + 2 * pad - k) // stride + 1
    w_out = (w + 2 * pad - k) // stride + 1

    hp = h + 2 * pad
    wpad = _round_up(w + 2 * pad, 8)        # wide row width, padded to 8 sublanes
    # Compact output channels for small C_out (avoid 16x writeback); lane-dense
    # 128-padding only when C_out is large enough to benefit from full vst.
    c_out_lane = _round_up(c_out, 128) if c_out >= 64 else _round_up(c_out, 8)
    fuse_taps = (c_in < 256) or (k == 1)    # fuse taps when K=C_in underfills the MXU

    in_dsize = jnp.dtype(compute_dtype).itemsize
    out_dsize = jnp.dtype(out_dtype).itemsize
    budget, vmem_limit = _vmem_budget_and_limit()
    tile_h = _pick_tile_h(n=n, h1=h1, k=k, wpad=wpad, c_in=c_in,
                          c_out_lane=c_out_lane, in_dsize=in_dsize,
                          out_dsize=out_dsize, budget=budget)
    n_tiles = math.ceil(h1 / tile_h)
    rows = tile_h * wpad                    # wide output rows per grid step
    halo = k * wpad                         # halo rows per grid step
    halo_blk = tile_h // k                  # halo block index stride (tile_h % k == 0)

    # Spatial zero pad (width padded to wpad), flatten (hp, wpad) -> hp*wpad,
    # and pad the flat tail so the last tile's halo block stays in bounds.
    xp = jnp.pad(xh, ((0, 0), (pad, pad), (pad, wpad - w - pad), (0, 0)))
    xp = xp.reshape(n, hp * wpad, c_in)
    flat_len = _round_up(n_tiles * rows + halo, 16)
    xp = jnp.pad(xp, ((0, 0), (0, flat_len - hp * wpad), (0, 0)))
    xp = xp.astype(compute_dtype)

    # Fold BN (eval) scale into the conv weights; keep the shift as an add.
    inv_std = gamma / jnp.sqrt(running_var + eps)                  # (C_out,)
    shift = beta - running_mean * inv_std                          # (C_out,)
    w_mat = jnp.transpose(weight * inv_std[:, None, None, None], (2, 3, 1, 0))
    w_mat = w_mat.reshape(k * k, c_in, c_out)
    w_mat = jnp.pad(w_mat, ((0, 0), (0, 0), (0, c_out_lane - c_out)))
    if fuse_taps:
        w_mat = w_mat.reshape(k * k * c_in, c_out_lane)
    w_mat = w_mat.astype(compute_dtype)
    shift = jnp.pad(shift, (0, c_out_lane - c_out)).reshape(1, c_out_lane)
    shift = shift.astype(jnp.float32)

    kernel = functools.partial(_conv_bn_silu_kernel, k=k, wpad=wpad, rows=rows,
                               fuse_taps=fuse_taps)
    w_spec = (pl.BlockSpec((k * k * c_in, c_out_lane), lambda b, t: (0, 0))
              if fuse_taps else
              pl.BlockSpec((k * k, c_in, c_out_lane), lambda b, t: (0, 0, 0)))

    out_wide = pl.pallas_call(
        kernel,
        out_shape=jax.ShapeDtypeStruct((n, n_tiles * rows, c_out_lane), out_dtype),
        grid=(n, n_tiles),
        in_specs=[
            # main input rows of this tile
            pl.BlockSpec((1, rows, c_in), lambda b, t: (b, t, 0)),
            # halo: the next k padded image rows (constant-size blocked window)
            pl.BlockSpec((1, halo, c_in), lambda b, t: (b, (t + 1) * halo_blk, 0)),
            w_spec,
            pl.BlockSpec((1, c_out_lane), lambda b, t: (0, 0)),
        ],
        out_specs=pl.BlockSpec((1, rows, c_out_lane), lambda b, t: (b, t, 0)),
        compiler_params=pltpu.CompilerParams(
            dimension_semantics=("parallel", "parallel"),   # batch x row tiles
            vmem_limit_bytes=int(vmem_limit)),
    )(xp, xp, w_mat, shift)

    # (N, n_tiles*tile_h, wpad, C_out_lane): drop garbage rows/columns/channels,
    # subsample for stride, and return in the caller's layout.
    out = out_wide.reshape(n, n_tiles * tile_h, wpad, c_out_lane)
    out = out[:, 0:h1:stride, 0:w1:stride, :c_out]
    assert out.shape[1] == h_out and out.shape[2] == w_out
    if data_format == "NCHW":
        out = jnp.transpose(out, (0, 3, 1, 2))
    return out


def _reference(x, weight, gamma, beta, mean, var, *, kernel_size, stride, eps=1e-5):
    pad = kernel_size // 2
    y = lax.conv_general_dilated(
        x, weight, window_strides=(stride, stride),
        padding=[(pad, pad), (pad, pad)],
        dimension_numbers=("NCHW", "OIHW", "NCHW"))
    s = (gamma / jnp.sqrt(var + eps)).reshape(1, -1, 1, 1)
    b = (beta - mean * gamma / jnp.sqrt(var + eps)).reshape(1, -1, 1, 1)
    y = y * s + b
    return y * jax.nn.sigmoid(y)


def _make_params(key, c_out, c_in, k):
    k_w, k_g, k_b, k_m, k_v = jax.random.split(key, 5)
    weight = 0.1 * jax.random.normal(k_w, (c_out, c_in, k, k), dtype=jnp.float32)
    gamma = 1.0 + 0.1 * jax.random.normal(k_g, (c_out,), dtype=jnp.float32)
    beta = 0.1 * jax.random.normal(k_b, (c_out,), dtype=jnp.float32)
    mean = 0.1 * jax.random.normal(k_m, (c_out,), dtype=jnp.float32)
    var = jnp.abs(1.0 + 0.1 * jax.random.normal(k_v, (c_out,), dtype=jnp.float32))
    return weight, gamma, beta, mean, var


if __name__ == "__main__":
    key = jax.random.PRNGKey(0)
    k_x, k_p, k_x2, k_p2 = jax.random.split(key, 4)

    N, C_IN, C_OUT, H, W, K = 2, 4, 8, 16, 16, 3
    x = jax.random.normal(k_x, (N, C_IN, H, W), dtype=jnp.float32)
    weight, gamma, beta, mean, var = _make_params(k_p, C_OUT, C_IN, K)

    # 1) f32, stride 1, fused-tap path (spec shapes).
    ref = _reference(x, weight, gamma, beta, mean, var, kernel_size=K, stride=1)
    out = jax.block_until_ready(conv_layer_forward(
        x, weight, gamma, beta, mean, var, kernel_size=K, stride=1))
    assert out.shape == (N, C_OUT, H, W)
    assert jnp.allclose(out, ref, atol=5e-3, rtol=5e-3), \
        float(jnp.max(jnp.abs(out - ref)))

    # 2) N=1: forces >=2 row tiles -> exercises the halo input block with real data.
    out1 = jax.block_until_ready(conv_layer_forward(
        x[:1], weight, gamma, beta, mean, var, kernel_size=K, stride=1))
    assert jnp.allclose(out1, ref[:1], atol=5e-3, rtol=5e-3), \
        float(jnp.max(jnp.abs(out1 - ref[:1])))

    # 3) bf16 MXU operands + bf16 HBM output (f32 accumulation / epilogue).
    out_bf16 = jax.block_until_ready(conv_layer_forward(
        x, weight, gamma, beta, mean, var, kernel_size=K, stride=1,
        compute_dtype=jnp.bfloat16, out_dtype=jnp.bfloat16))
    assert out_bf16.dtype == jnp.bfloat16
    assert jnp.allclose(out_bf16.astype(jnp.float32), ref, atol=1e-1, rtol=1e-1)

    # 4) stride 2 (dense conv + wrapper subsample; no strided in-kernel gathers).
    ref_s2 = _reference(x, weight, gamma, beta, mean, var, kernel_size=K, stride=2)
    out_s2 = jax.block_until_ready(conv_layer_forward(
        x, weight, gamma, beta, mean, var, kernel_size=K, stride=2))
    assert out_s2.shape == ref_s2.shape == (N, C_OUT, H // 2, W // 2)
    assert jnp.allclose(out_s2, ref_s2, atol=5e-3, rtol=5e-3), \
        float(jnp.max(jnp.abs(out_s2 - ref_s2)))

    # 5) Large C_in: per-tap (non-fused) accumulation path, N=1 -> 2 row tiles.
    C_IN2, C_OUT2, H2, W2 = 256, 32, 8, 8
    x2 = jax.random.normal(k_x2, (1, C_IN2, H2, W2), dtype=jnp.float32)
    w2, g2, b2, m2, v2 = _make_params(k_p2, C_OUT2, C_IN2, K)
    w2 = 0.2 * w2
    ref2 = _reference(x2, w2, g2, b2, m2, v2, kernel_size=K, stride=1)
    out2 = jax.block_until_ready(conv_layer_forward(
        x2, w2, g2, b2, m2, v2, kernel_size=K, stride=1))
    assert out2.shape == (1, C_OUT2, H2, W2)
    assert jnp.allclose(out2, ref2, atol=1e-2, rtol=1e-2), \
        float(jnp.max(jnp.abs(out2 - ref2)))

    print("KERNEL_OK")
</pallas_src>

<mosaic_0001>
module attributes {stable_mosaic.version = 11 : i64} {
  func.func @_conv_bn_silu_kernel(%arg0: i32, %arg1: i32, %arg2: memref<1x432x4xf32, #tpu.memory_space<vmem>>, %arg3: memref<1x72x4xf32, #tpu.memory_space<vmem>>, %arg4: memref<36x8xf32, #tpu.memory_space<vmem>>, %arg5: memref<1x8xf32, #tpu.memory_space<vmem>>, %arg6: memref<1x432x8xf32, #tpu.memory_space<vmem>>) attributes {dimension_semantics = [#tpu.dimension_semantics<parallel>, #tpu.dimension_semantics<parallel>], iteration_bounds = array<i64: 2, 1>, scalar_prefetch = 0 : i64, scratch_operands = 0 : i64, tpu.core_type = #tpu.core_type<tc>, window_params = [{transform_indices = @transform_0, window_bounds = array<i64: 1, 432, 4>}, {transform_indices = @transform_1, window_bounds = array<i64: 1, 72, 4>}, {pipeline_mode = #tpu.pipeline_mode<synchronous>, transform_indices = @transform_2, window_bounds = array<i64: 36, 8>}, {pipeline_mode = #tpu.pipeline_mode<synchronous>, transform_indices = @transform_3, window_bounds = array<i64: 1, 8>}, {transform_indices = @transform_4, window_bounds = array<i64: 1, 432, 8>}]} {
    %c0 = arith.constant 0 : index
    %c0_0 = arith.constant 0 : index
    %c0_1 = arith.constant 0 : index
    %0 = vector.load %arg2[%c0, %c0_0, %c0_1] : memref<1x432x4xf32, #tpu.memory_space<vmem>>, vector<1x432x4xf32>
    %1 = vector.shape_cast %0 : vector<1x432x4xf32> to vector<432x4xf32>
    %c0_2 = arith.constant 0 : index
    %c0_3 = arith.constant 0 : index
    %c0_4 = arith.constant 0 : index
    %2 = vector.load %arg3[%c0_2, %c0_3, %c0_4] : memref<1x72x4xf32, #tpu.memory_space<vmem>>, vector<1x72x4xf32>
    %3 = vector.shape_cast %2 : vector<1x72x4xf32> to vector<72x4xf32>
    %4 = tpu.concatenate %1, %3 in 0 : vector<432x4xf32>, vector<72x4xf32> -> vector<504x4xf32>
    %5 = vector.extract_strided_slice %4 {offsets = [0, 0], sizes = [432, 4], strides = [1, 1]} : vector<504x4xf32> to vector<432x4xf32>
    %6 = vector.extract_strided_slice %4 {offsets = [1, 0], sizes = [432, 4], strides = [1, 1]} : vector<504x4xf32> to vector<432x4xf32>
    %7 = vector.extract_strided_slice %4 {offsets = [2, 0], sizes = [432, 4], strides = [1, 1]} : vector<504x4xf32> to vector<432x4xf32>
    %8 = vector.extract_strided_slice %4 {offsets = [24, 0], sizes = [432, 4], strides = [1, 1]} : vector<504x4xf32> to vector<432x4xf32>
    %9 = vector.extract_strided_slice %4 {offsets = [25, 0], sizes = [432, 4], strides = [1, 1]} : vector<504x4xf32> to vector<432x4xf32>
    %10 = vector.extract_strided_slice %4 {offsets = [26, 0], sizes = [432, 4], strides = [1, 1]} : vector<504x4xf32> to vector<432x4xf32>
    %11 = vector.extract_strided_slice %4 {offsets = [48, 0], sizes = [432, 4], strides = [1, 1]} : vector<504x4xf32> to vector<432x4xf32>
    %12 = vector.extract_strided_slice %4 {offsets = [49, 0], sizes = [432, 4], strides = [1, 1]} : vector<504x4xf32> to vector<432x4xf32>
    %13 = vector.extract_strided_slice %4 {offsets = [50, 0], sizes = [432, 4], strides = [1, 1]} : vector<504x4xf32> to vector<432x4xf32>
    %14 = tpu.concatenate %5, %6, %7, %8, %9, %10, %11, %12, %13 in 1 : vector<432x4xf32>, vector<432x4xf32>, vector<432x4xf32>, vector<432x4xf32>, vector<432x4xf32>, vector<432x4xf32>, vector<432x4xf32>, vector<432x4xf32>, vector<432x4xf32> -> vector<432x36xf32>
    %c0_5 = arith.constant 0 : index
    %c0_6 = arith.constant 0 : index
    %15 = vector.load %arg4[%c0_5, %c0_6] : memref<36x8xf32, #tpu.memory_space<vmem>>, vector<36x8xf32>
    %cst = arith.constant dense<0.000000e+00> : vector<432x8xf32>
    %16 = tpu.matmul %14, %15, %cst {dimension_numbers = #tpu.dot_dimension_numbers<[1], [0], [0], [1], [0, 0, 1, 1], [], []>} : vector<432x36xf32>, vector<36x8xf32>, vector<432x8xf32> -> vector<432x8xf32>
    %c0_7 = arith.constant 0 : index
    %c0_8 = arith.constant 0 : index
    %17 = vector.load %arg5[%c0_7, %c0_8] : memref<1x8xf32, #tpu.memory_space<vmem>>, vector<1x8xf32>
    %18 = vector.broadcast %17 : vector<1x8xf32> to vector<432x8xf32>
    %19 = arith.addf %16, %18 : vector<432x8xf32>
    %20 = arith.negf %19 : vector<432x8xf32>
    %21 = math.exp %20 : vector<432x8xf32>
    %cst_9 = arith.constant 1.000000e+00 : f32
    %22 = vector.broadcast %cst_9 : f32 to vector<432x8xf32>
    %23 = arith.addf %22, %21 : vector<432x8xf32>
    %24 = arith.divf %22, %23 : vector<432x8xf32>
    %25 = arith.mulf %19, %24 : vector<432x8xf32>
    %c0_10 = arith.constant 0 : index
    %c0_11 = arith.constant 0 : index
    %c0_12 = arith.constant 0 : index
    %26 = vector.load %arg6[%c0_10, %c0_11, %c0_12] : memref<1x432x8xf32, #tpu.memory_space<vmem>>, vector<1x432x8xf32>
    %27 = vector.shape_cast %26 : vector<1x432x8xf32> to vector<432x8xf32>
    %28 = vector.shape_cast %25 : vector<432x8xf32> to vector<1x432x8xf32>
    tpu.vector_store %arg6[%c0_10, %c0_11, %c0_12], %28 {strides = array<i32>} : memref<1x432x8xf32, #tpu.memory_space<vmem>>, vector<1x432x8xf32>,
    return
  }
  func.func @transform_0(%arg0: i32, %arg1: i32) -> (i32, i32, i32) {
    %c0_i32 = arith.constant 0 : i32
    %c0_i32_0 = arith.constant 0 : i32
    return %arg0, %arg1, %c0_i32 : i32, i32, i32
  }
  func.func @transform_1(%arg0: i32, %arg1: i32) -> (i32, i32, i32) {
    %c1_i32 = arith.constant 1 : i32
    %0 = arith.addi %arg1, %c1_i32 : i32
    %c6_i32 = arith.constant 6 : i32
    %1 = arith.muli %0, %c6_i32 : i32
    %c0_i32 = arith.constant 0 : i32
    %c0_i32_0 = arith.constant 0 : i32
    return %arg0, %1, %c0_i32 : i32, i32, i32
  }
  func.func @transform_2(%arg0: i32, %arg1: i32) -> (i32, i32) {
    %c0_i32 = arith.constant 0 : i32
    %c0_i32_0 = arith.constant 0 : i32
    %c0_i32_1 = arith.constant 0 : i32
    return %c0_i32, %c0_i32_0 : i32, i32
  }
  func.func @transform_3(%arg0: i32, %arg1: i32) -> (i32, i32) {
    %c0_i32 = arith.constant 0 : i32
    %c0_i32_0 = arith.constant 0 : i32
    %c0_i32_1 = arith.constant 0 : i32
    return %c0_i32, %c0_i32_0 : i32, i32
  }
  func.func @transform_4(%arg0: i32, %arg1: i32) -> (i32, i32, i32) {
    %c0_i32 = arith.constant 0 : i32
    %c0_i32_0 = arith.constant 0 : i32
    return %arg0, %arg1, %c0_i32 : i32, i32, i32
  }
}

</mosaic_0001>

<bundles_post_ra>
// kernel: conv_layer_forward.1
= control target key start
LH: loop header
LB: loop body
LE: loop exit
PB: predicated region body
PF: predicated region fallthrough
CT: control target
= control target key end

     0   :  { %s4156_s15 = smov 0   ;;  %s4158_s16 = smov 0   ;;  %s7404_s0 = inlined_call_operand.vmem [shape: f32[2,512,4], index: 0, kind: input, shape index: {}, may-alias: {0,1}]   ;;  %s7405_s1 = inlined_call_operand.vmem [shape: f32[2,512,4], index: 1, kind: input, shape index: {}, may-alias: {0,1}]   ;;  %s7406_s2 = inlined_call_operand.vmem [shape: f32[36,8], index: 2, kind: input, shape index: {}]   ;;  %s7407_s3 = inlined_call_operand.vmem [shape: f32[1,8], index: 3, kind: input, shape index: {}]   ;;  %s7408_s4 = inlined_call_operand.vmem [shape: f32[2,432,8], index: 4, kind: output, shape index: {}]  }
   0x1   :  { %s4160_s17 = smov 0  }
   0x2 LB: > { %s26_s18 = sadd.s32 1, %s4117_s16  ;;  %p3484_p0 = scmp.ge.s32.totalorder %s4121_s17, 1  ;;  %s4121_s17 = sphi %s4160_s17, %s14_s17   ;;  %s4117_s16 = sphi %s4158_s16, %s8354_s16   ;;  %s4113_s15 = sphi %s4156_s15, %s8353_s15  }
   0x3   : > { %p28_p1 = scmp.ge.s32.totalorder %s26_s18, 2  ;;  %p224_p2 = scmp.lt.s32.totalorder %s4121_s17, 3 }
   0x5   : > { %s8356_s18 = smov (%p28_p1, %s26_s18), 0  ;;  %p225_p3 = pnand %p3484_p0, %p224_p2 }
   0x7   : > { %228 = sbr.rel (%p225_p3) target bundleno = 1245 (0x4dd), region = 36 }
   0xe   : > { %p282_p4 = scmp.lt.s32.totalorder %s4113_s15, 1  ;;  %vm443_vm0 = vcmask 1046528   ;;  %s4123_s23 = smov 4   ;;  %vm715_vm1 = vcmask 1045504   ;;  %vm2604_vm2 = vcmask 1043456   ;;  %vm1989_vm3 = vcmask 31744  }
   0xf   : > { %s4124_s28 = smov 8   ;;  %s4125_s29 = smov 12   ;;  %vm2044_vm4 = vcmask 64512   ;;  %vm2099_vm5 = vcmask 97280   ;;  %vm2154_vm6 = vcmask 130048   ;;  %vm2209_vm7 = vcmask 162816  }
  0x10   : > { %s8358_s15 = smov (!%p282_p4, %s4113_s15), 1  ;;  %s4126_s30 = smov 16   ;;  %vm2264_vm8 = vcmask 195584   ;;  %vm2319_vm9 = vcmask 228352   ;;  %vm2374_vm10 = vcmask 261120   ;;  %vm2441_vm11 = vcmask 293888  }
  0x11   : > { %s3602_s19 = sshll.u32 %s8358_s15, 9  ;;  %s4127_s5 = smov 20  }
  0x12   : > { %s4182_s22 = scalar_lea.vmem %s7404_s0, %s3602_s19  ;;  %s3604_s24 = sadd.s32 432, %s3602_s19 }
  0x13   : > { %v4185_v0 = vld [vmem:[%s4182_s22 + $0x10] sm:$0xff]  ;;  %v4188_v1 = vld [vmem:[%s4182_s22 + $0x18] sm:$0xff]  ;;  %v4191_v2 = vld [vmem:[%s4182_s22] sm:$0xff]  ;;  %s4626_s27 = scalar_lea.vmem %s7405_s1, %s3604_s24  ;;  %s4128_s20 = smov 24  }
  0x14   : > { %v447_v3 = vrot.slane %v4185_v0, 1  ;;  %v449_v4 = vrot.slane %v4188_v1, 1  ;;  %v4196_v5 = vld [vmem:[%s4182_s22 + $0x8] sm:$0xff]  ;;  %v444_v6 = vrot.slane %v4191_v2, 1  ;;  %v4200_v7 = vld [vmem:[%s4182_s22 + $0x20] sm:$0xff]  ;;  %v4208_v11 = vld [vmem:[%s4182_s22 + $0x30] sm:$0xff] }
  0x15   : > { %v445_v8 = vrot.slane %v4196_v5, 1  ;;  %v451_v9 = vrot.slane %v4200_v7, 1  ;;  %v4205_v10 = vld [vmem:[%s4182_s22 + $0x28] sm:$0xff]  ;;  %v455_v16 = vrot.slane %v4208_v11, 1  ;;  %v4221_v18 = vld [vmem:[%s4182_s22 + $0x38] sm:$0xff]  ;;  %v4224_v19 = vld [vmem:[%s4182_s22 + $0x40] sm:$0xff] }
  0x16   : > { %v450_v12 = vsel %vm443_vm0, %v447_v3, %v449_v4  ;;  %v453_v15 = vrot.slane %v4205_v10, 1  ;;  %v457_v21 = vrot.slane %v4221_v18, 1  ;;  %v459_v22 = vrot.slane %v4224_v19, 1  ;;  %v4238_v24 = vld [vmem:[%s4182_s22 + $0x48] sm:$0xff]  ;;  %v4241_v25 = vld [vmem:[%s4182_s22 + $0x50] sm:$0xff]  ;;  %v4256_v30 = vld [vmem:[%s4182_s22 + $0x58] sm:$0xff] }
  0x17   : > { %557 = vrot.lane.b32.xlu1 %v450_v12, %s4123_s23  ;;  %v446_v13 = vsel %vm443_vm0, %v444_v6, %v445_v8  ;;  %v4215_v14 = vsel %vm443_vm0, %v449_v4, %v451_v9  ;;  %v448_v17 = vsel %vm443_vm0, %v445_v8, %v447_v3  ;;  %v461_v27 = vrot.slane %v4238_v24, 1  ;;  %v4259_v31 = vld [vmem:[%s4182_s22 + $0x60] sm:$0xff]  ;;  %v4274_v36 = vld [vmem:[%s4182_s22 + $0x68] sm:$0xff]  ;;  %v4277_v37 = vld [vmem:[%s4182_s22 + $0x70] sm:$0xff]  ;;  %s4129_s21 = smov 28   ;;  %s3770_s26 = smul.u32 432, %s8358_s15 }
  0x18   : > { %553 = vrot.lane.b32.xlu0 %v446_v13, %s4123_s23  ;;  %7632 = vst [vmem:[#allocation2_spill] sm:$0xff] %v4215_v14  ;;  %v4230_v20 = vsel %vm443_vm0, %v453_v15, %v455_v16  ;;  %v4235_v23 = vsel %vm443_vm0, %v451_v9, %v453_v15  ;;  %v4248_v26 = vsel %vm443_vm0, %v457_v21, %v459_v22  ;;  %v463_v28 = vrot.slane %v4241_v25, 1  ;;  %v4292_v42 = vld [vmem:[%s4182_s22 + $0x78] sm:$0xff]  ;;  %v4295_v43 = vld [vmem:[%s4182_s22 + $0x80] sm:$0xff]  ;;  %v4310_v48 = vld [vmem:[%s4182_s22 + $0x88] sm:$0xff] }
  0x19   : > { %7633 = vst [vmem:[#allocation3_spill] sm:$0xff] %v4230_v20  ;;  %7634 = vst [vmem:[#allocation4_spill] sm:$0xff] %v4235_v23  ;;  %v4253_v29 = vsel %vm443_vm0, %v455_v16, %v457_v21  ;;  %v465_v33 = vrot.slane %v4256_v30, 1  ;;  %v467_v34 = vrot.slane %v4259_v31, 1  ;;  %v4271_v35 = vsel %vm443_vm0, %v459_v22, %v461_v27  ;;  %v4313_v49 = vld [vmem:[%s4182_s22 + $0x90] sm:$0xff]  ;;  %v4328_v54 = vld [vmem:[%s4182_s22 + $0x98] sm:$0xff] }
  0x1a   : > { %7635 = vst [vmem:[#allocation5_spill] sm:$0xff] %v4248_v26  ;;  %7636 = vst [vmem:[#allocation6_spill] sm:$0xff] %v4253_v29  ;;  %v4266_v32 = vsel %vm443_vm0, %v461_v27, %v463_v28  ;;  %v469_v39 = vrot.slane %v4274_v36, 1  ;;  %v471_v40 = vrot.slane %v4277_v37, 1  ;;  %v473_v45 = vrot.slane %v4292_v42, 1  ;;  %v4331_v55 = vld [vmem:[%s4182_s22 + $0xa0] sm:$0xff] }
  0x1b   : > { %559 = vrot.lane.b32.xlu1 %v4215_v14, %s4123_s23  ;;  %7637 = vst [vmem:[#allocation7_spill] sm:$0xff] %v4266_v32  ;;  %7638 = vst [vmem:[#allocation8_spill] sm:$0xff] %v4271_v35  ;;  %v4284_v38 = vsel %vm443_vm0, %v465_v33, %v467_v34  ;;  %v4289_v41 = vsel %vm443_vm0, %v463_v28, %v465_v33  ;;  %v475_v46 = vrot.slane %v4295_v43, 1  ;;  %v477_v51 = vrot.slane %v4310_v48, 1  ;;  %v4346_v60 = vld [vmem:[%s4182_s22 + $0xa8] sm:$0xff]  ;;  %v4349_v61 = vld [vmem:[%s4182_s22 + $0xb0] sm:$0xff] }
  0x1c   : > { %555 = vrot.lane.b32.xlu0 %v448_v17, %s4123_s23  ;;  %7639 = vst [vmem:[#allocation9_spill] sm:$0xff] %v4284_v38  ;;  %7640 = vst [vmem:[#allocation10_spill] sm:$0xff] %v4289_v41  ;;  %v4302_v44 = vsel %vm443_vm0, %v469_v39, %v471_v40  ;;  %v4307_v47 = vsel %vm443_vm0, %v467_v34, %v469_v39  ;;  %v479_v52 = vrot.slane %v4313_v49, 1  ;;  %v481_v57 = vrot.slane %v4328_v54, 1  ;;  %v4364_v6 = vld [vmem:[%s4182_s22 + $0xb8] sm:$0xff]  ;;  %v4367_v8 = vld [vmem:[%s4182_s22 + $0xc0] sm:$0xff] }
  0x1d   : > { %7641 = vst [vmem:[#allocation11_spill] sm:$0xff] %v4302_v44  ;;  %7642 = vst [vmem:[#allocation12_spill] sm:$0xff] %v4307_v47  ;;  %v4320_v50 = vsel %vm443_vm0, %v473_v45, %v475_v46  ;;  %v4325_v53 = vsel %vm443_vm0, %v471_v40, %v473_v45  ;;  %v483_v58 = vrot.slane %v4331_v55, 1  ;;  %v4343_v59 = vsel %vm443_vm0, %v475_v46, %v477_v51  ;;  %v4382_v16 = vld [vmem:[%s4182_s22 + $0xc8] sm:$0xff]  ;;  %v4385_v17 = vld [vmem:[%s4182_s22 + $0xd0] sm:$0xff] }
  0x1e   : > { %7643 = vst [vmem:[#allocation13_spill] sm:$0xff] %v4320_v50  ;;  %7644 = vst [vmem:[#allocation14_spill] sm:$0xff] %v4325_v53  ;;  %v4338_v56 = vsel %vm443_vm0, %v477_v51, %v479_v52  ;;  %v485_v63 = vrot.slane %v4346_v60, 1  ;;  %v487_v3 = vrot.slane %v4349_v61, 1  ;;  %v4361_v4 = vsel %vm443_vm0, %v479_v52, %v481_v57  ;;  %v4400_v33 = vld [vmem:[%s4182_s22 + $0xd8] sm:$0xff]  ;;  %v4403_v34 = vld [vmem:[%s4182_s22 + $0xe0] sm:$0xff] }
  0x1f   : > { %563 = vrot.lane.b32.xlu1 %v4230_v20, %s4123_s23  ;;  %7645 = vst [vmem:[#allocation15_spill] sm:$0xff] %v4338_v56  ;;  %7646 = vst [vmem:[#allocation16_spill] sm:$0xff] %v4343_v59  ;;  %v4356_v62 = vsel %vm443_vm0, %v481_v57, %v483_v58  ;;  %v489_v12 = vrot.slane %v4364_v6, 1  ;;  %v491_v13 = vrot.slane %v4367_v8, 1  ;;  %v493_v22 = vrot.slane %v4382_v16, 1  ;;  %v4418_v51 = vld [vmem:[%s4182_s22 + $0xe8] sm:$0xff] }
  0x20   : > { %561 = vrot.lane.b32.xlu0 %v4235_v23, %s4123_s23  ;;  %7647 = vst [vmem:[#allocation17_spill] sm:$0xff] %v4356_v62  ;;  %7648 = vst [vmem:[#allocation18_spill] sm:$0xff] %v4361_v4  ;;  %v4374_v9 = vsel %vm443_vm0, %v485_v63, %v487_v3  ;;  %v4379_v15 = vsel %vm443_vm0, %v483_v58, %v485_v63  ;;  %v495_v27 = vrot.slane %v4385_v17, 1  ;;  %v497_v40 = vrot.slane %v4400_v33, 1  ;;  %v4421_v52 = vld [vmem:[%s4182_s22 + $0xf0] sm:$0xff]  ;;  %v4618_v20 = vld [vmem:[%s4182_s22 + $0x198] sm:$0xff] }
  0x21   : > { %7649 = vst [vmem:[#allocation19_spill] sm:$0xff] %v4374_v9  ;;  %7650 = vst [vmem:[#allocation20_spill] sm:$0xff] %v4379_v15  ;;  %v4392_v21 = vsel %vm443_vm0, %v489_v12, %v491_v13  ;;  %v4397_v28 = vsel %vm443_vm0, %v487_v3, %v489_v12  ;;  %v499_v45 = vrot.slane %v4403_v34, 1  ;;  %v4415_v46 = vsel %vm443_vm0, %v491_v13, %v493_v22  ;;  %v4436_v12 = vld [vmem:[%s4182_s22 + $0xf8] sm:$0xff]  ;;  %v4439_v13 = vld [vmem:[%s4182_s22 + $0x100] sm:$0xff] }
  0x22   : > { %7651 = vst [vmem:[#allocation21_spill] sm:$0xff] %v4392_v21  ;;  %7652 = vst [vmem:[#allocation22_spill] sm:$0xff] %v4397_v28  ;;  %v4410_v39 = vsel %vm443_vm0, %v493_v22, %v495_v27  ;;  %v501_v58 = vrot.slane %v4418_v51, 1  ;;  %v503_v63 = vrot.slane %v4421_v52, 1  ;;  %v4433_v3 = vsel %vm443_vm0, %v495_v27, %v497_v40  ;;  %v4641_v14 = vld [vmem:[%s4182_s22 + $0x1a8] sm:$0xff]  ;;  %v4644_v23 = vld [vmem:[%s4626_s27] sm:$0xff] }
  0x23   : > { %567 = vrot.lane.b32.xlu1 %v4248_v26, %s4123_s23  ;;  %7653 = vst [vmem:[#allocation23_spill] sm:$0xff] %v4410_v39  ;;  %7654 = vst [vmem:[#allocation24_spill] sm:$0xff] %v4415_v46  ;;  %v4428_v57 = vsel %vm443_vm0, %v497_v40, %v499_v45  ;;  %v507_v27 = vrot.slane %v4439_v13, 1  ;;  %v4598_v26 = vld [vmem:[%s4182_s22 + $0x188] sm:$0xff] }
  0x24   : > { %565 = vrot.lane.b32.xlu0 %v4253_v29, %s4123_s23  ;;  %7655 = vst [vmem:[#allocation25_spill] sm:$0xff] %v4428_v57  ;;  %7656 = vst [vmem:[#allocation26_spill] sm:$0xff] %v4433_v3  ;;  %v4446_v22 = vsel %vm443_vm0, %v501_v58, %v503_v63  ;;  %v4451_v40 = vsel %vm443_vm0, %v499_v45, %v501_v58  ;;  %v4621_v29 = vld [vmem:[%s4182_s22 + $0x1a0] sm:$0xff] }
  0x25   : > { %7657 = vst [vmem:[#allocation27_spill] sm:$0xff] %v4446_v22  ;;  %7658 = vst [vmem:[#allocation28_spill] sm:$0xff] %v4451_v40 }
  0x26   : > { %7677 = vst [vmem:[#allocation47_spill] sm:$0xff] %v4618_v20  ;;  %7678 = vst [vmem:[#allocation48_spill] sm:$0xff] %v4621_v29 }
  0x27   : > { %571 = vrot.lane.b32.xlu1 %v4266_v32, %s4123_s23  ;;  %v4580_v32 = vld [vmem:[%s4182_s22 + $0x178] sm:$0xff]  ;;  %7681 = vst [vmem:[#allocation51_spill] sm:$0xff] %v4641_v14  ;;  %7682 = vst [vmem:[#allocation52_spill] sm:$0xff] %v4644_v23 }
  0x28   : > { %569 = vrot.lane.b32.xlu0 %v4271_v35, %s4123_s23  ;;  %v4601_v35 = vld [vmem:[%s4182_s22 + $0x190] sm:$0xff] }
  0x2b   : > { %575 = vrot.lane.b32.xlu1 %v4284_v38, %s4123_s23  ;;  %v4562_v38 = vld [vmem:[%s4182_s22 + $0x168] sm:$0xff] }
  0x2c   : > { %573 = vrot.lane.b32.xlu0 %v4289_v41, %s4123_s23  ;;  %v4583_v41 = vld [vmem:[%s4182_s22 + $0x180] sm:$0xff] }
  0x2f   : > { %579 = vrot.lane.b32.xlu1 %v4302_v44, %s4123_s23  ;;  %v4544_v44 = vld [vmem:[%s4182_s22 + $0x158] sm:$0xff] }
  0x30   : > { %577 = vrot.lane.b32.xlu0 %v4307_v47, %s4123_s23  ;;  %v4565_v47 = vld [vmem:[%s4182_s22 + $0x170] sm:$0xff] }
  0x33   : > { %583 = vrot.lane.b32.xlu1 %v4320_v50, %s4123_s23  ;;  %v4526_v50 = vld [vmem:[%s4182_s22 + $0x148] sm:$0xff] }
  0x34   : > { %581 = vrot.lane.b32.xlu0 %v4325_v53, %s4123_s23  ;;  %v4547_v53 = vld [vmem:[%s4182_s22 + $0x160] sm:$0xff] }
  0x37   : > { %587 = vrot.lane.b32.xlu1 %v4338_v56, %s4123_s23  ;;  %v4508_v56 = vld [vmem:[%s4182_s22 + $0x138] sm:$0xff] }
  0x38   : > { %585 = vrot.lane.b32.xlu0 %v4343_v59, %s4123_s23  ;;  %v4529_v59 = vld [vmem:[%s4182_s22 + $0x150] sm:$0xff] }
  0x3b   : > { %591 = vrot.lane.b32.xlu1 %v4356_v62, %s4123_s23  ;;  %v4490_v62 = vld [vmem:[%s4182_s22 + $0x128] sm:$0xff] }
  0x3c   : > { %589 = vrot.lane.b32.xlu0 %v4361_v4, %s4123_s23  ;;  %v4511_v4 = vld [vmem:[%s4182_s22 + $0x140] sm:$0xff] }
  0x3f   : > { %595 = vrot.lane.b32.xlu1 %v4374_v9, %s4123_s23  ;;  %v4472_v9 = vld [vmem:[%s4182_s22 + $0x118] sm:$0xff] }
  0x40   : > { %593 = vrot.lane.b32.xlu0 %v4379_v15, %s4123_s23  ;;  %v4493_v15 = vld [vmem:[%s4182_s22 + $0x130] sm:$0xff] }
  0x43   : > { %599 = vrot.lane.b32.xlu1 %v4392_v21, %s4123_s23  ;;  %v4454_v21 = vld [vmem:[%s4182_s22 + $0x108] sm:$0xff] }
  0x44   : > { %597 = vrot.lane.b32.xlu0 %v4397_v28, %s4123_s23  ;;  %v4475_v28 = vld [vmem:[%s4182_s22 + $0x120] sm:$0xff] }
  0x47   : > { %603 = vrot.lane.b32.xlu1 %v4410_v39, %s4123_s23  ;;  %v505_v39 = vrot.slane %v4436_v12, 1 }
  0x48   : > { %601 = vrot.lane.b32.xlu0 %v4415_v46, %s4123_s23  ;;  %v4457_v46 = vld [vmem:[%s4182_s22 + $0x110] sm:$0xff] }
  0x49   : > { %v511_v45 = vrot.slane %v4457_v46, 1  ;;  %v4469_v58 = vsel %vm443_vm0, %v503_v63, %v505_v39 }
  0x4a   : > { %7660 = vst [vmem:[#allocation30_spill] sm:$0xff] %v4469_v58 }
  0x4b   : > { %607 = vrot.lane.b32.xlu1 %v4428_v57, %s4123_s23  ;;  %v4464_v57 = vsel %vm443_vm0, %v505_v39, %v507_v27  ;;  %v515_v39 = vrot.slane %v4475_v28, 1 }
  0x4c   : > { %605 = vrot.lane.b32.xlu0 %v4433_v3, %s4123_s23  ;;  %7659 = vst [vmem:[#allocation29_spill] sm:$0xff] %v4464_v57  ;;  %v509_v3 = vrot.slane %v4454_v21, 1 }
  0x4e   : > { %v4487_v63 = vsel %vm443_vm0, %v507_v27, %v509_v3 }
  0x4f   : > { %611 = vrot.lane.b32.xlu1 %v4446_v22, %s4123_s23  ;;  %v4482_v22 = vsel %vm443_vm0, %v509_v3, %v511_v45  ;;  %7662 = vst [vmem:[#allocation32_spill] sm:$0xff] %v4487_v63  ;;  %v519_v3 = vrot.slane %v4493_v15, 1 }
  0x50   : > { %609 = vrot.lane.b32.xlu0 %v4451_v40, %s4123_s23  ;;  %7661 = vst [vmem:[#allocation31_spill] sm:$0xff] %v4482_v22  ;;  %v513_v40 = vrot.slane %v4472_v9, 1 }
  0x52   : > { %v4505_v27 = vsel %vm443_vm0, %v511_v45, %v513_v40 }
  0x53   : > { %615 = vrot.lane.b32.xlu1 %v4464_v57, %s4123_s23  ;;  %v4500_v57 = vsel %vm443_vm0, %v513_v40, %v515_v39  ;;  %7664 = vst [vmem:[#allocation34_spill] sm:$0xff] %v4505_v27  ;;  %v523_v40 = vrot.slane %v4511_v4, 1 }
  0x54   : > { %613 = vrot.lane.b32.xlu0 %v4469_v58, %s4123_s23  ;;  %7663 = vst [vmem:[#allocation33_spill] sm:$0xff] %v4500_v57  ;;  %v517_v58 = vrot.slane %v4490_v62, 1 }
  0x56   : > { %v4523_v45 = vsel %vm443_vm0, %v515_v39, %v517_v58 }
  0x57   : > { %619 = vrot.lane.b32.xlu1 %v4482_v22, %s4123_s23  ;;  %v4518_v22 = vsel %vm443_vm0, %v517_v58, %v519_v3  ;;  %7666 = vst [vmem:[#allocation36_spill] sm:$0xff] %v4523_v45  ;;  %v527_v58 = vrot.slane %v4529_v59, 1 }
  0x58   : > { %617 = vrot.lane.b32.xlu0 %v4487_v63, %s4123_s23  ;;  %7665 = vst [vmem:[#allocation35_spill] sm:$0xff] %v4518_v22  ;;  %v521_v63 = vrot.slane %v4508_v56, 1 }
  0x5a   : > { %v4541_v39 = vsel %vm443_vm0, %v519_v3, %v521_v63 }
  0x5b   : > { %623 = vrot.lane.b32.xlu1 %v4500_v57, %s4123_s23  ;;  %v4536_v57 = vsel %vm443_vm0, %v521_v63, %v523_v40  ;;  %7668 = vst [vmem:[#allocation38_spill] sm:$0xff] %v4541_v39  ;;  %v531_v63 = vrot.slane %v4547_v53, 1 }
  0x5c   : > { %621 = vrot.lane.b32.xlu0 %v4505_v27, %s4123_s23  ;;  %7667 = vst [vmem:[#allocation37_spill] sm:$0xff] %v4536_v57  ;;  %v525_v27 = vrot.slane %v4526_v50, 1 }
  0x5e   : > { %v4559_v3 = vsel %vm443_vm0, %v523_v40, %v525_v27 }
  0x5f   : > { %627 = vrot.lane.b32.xlu1 %v4518_v22, %s4123_s23  ;;  %v4554_v22 = vsel %vm443_vm0, %v525_v27, %v527_v58  ;;  %7670 = vst [vmem:[#allocation40_spill] sm:$0xff] %v4559_v3  ;;  %v535_v27 = vrot.slane %v4565_v47, 1 }
  0x60   : > { %625 = vrot.lane.b32.xlu0 %v4523_v45, %s4123_s23  ;;  %7669 = vst [vmem:[#allocation39_spill] sm:$0xff] %v4554_v22  ;;  %v529_v45 = vrot.slane %v4544_v44, 1 }
  0x62   : > { %v4577_v40 = vsel %vm443_vm0, %v527_v58, %v529_v45 }
  0x63   : > { %631 = vrot.lane.b32.xlu1 %v4536_v57, %s4123_s23  ;;  %v4572_v57 = vsel %vm443_vm0, %v529_v45, %v531_v63  ;;  %7672 = vst [vmem:[#allocation42_spill] sm:$0xff] %v4577_v40  ;;  %v539_v45 = vrot.slane %v4583_v41, 1 }
  0x64   : > { %629 = vrot.lane.b32.xlu0 %v4541_v39, %s4123_s23  ;;  %7671 = vst [vmem:[#allocation41_spill] sm:$0xff] %v4572_v57  ;;  %v533_v39 = vrot.slane %v4562_v38, 1 }
  0x66   : > { %v4595_v58 = vsel %vm443_vm0, %v531_v63, %v533_v39 }
  0x67   : > { %635 = vrot.lane.b32.xlu1 %v4554_v22, %s4123_s23  ;;  %v4590_v22 = vsel %vm443_vm0, %v533_v39, %v535_v27  ;;  %7674 = vst [vmem:[#allocation44_spill] sm:$0xff] %v4595_v58  ;;  %v543_v39 = vrot.slane %v4601_v35, 1 }
  0x68   : > { %633 = vrot.lane.b32.xlu0 %v4559_v3, %s4123_s23  ;;  %7673 = vst [vmem:[#allocation43_spill] sm:$0xff] %v4590_v22  ;;  %v537_v3 = vrot.slane %v4580_v32, 1 }
  0x6a   : > { %v4615_v63 = vsel %vm443_vm0, %v535_v27, %v537_v3  ;;  %v547_v27 = vrot.slane %v4621_v29, 1  ;;  %v7504_v29 = vrot.slane %v4644_v23, 1 }
  0x6b   : > { %639 = vrot.lane.b32.xlu1 %v4572_v57, %s4123_s23  ;;  %v4610_v57 = vsel %vm443_vm0, %v537_v3, %v539_v45  ;;  %7676 = vst [vmem:[#allocation46_spill] sm:$0xff] %v4615_v63  ;;  %v545_v3 = vrot.slane %v4618_v20, 1 }
  0x6c   : > { %637 = vrot.lane.b32.xlu0 %v4577_v40, %s4123_s23  ;;  %7675 = vst [vmem:[#allocation45_spill] sm:$0xff] %v4610_v57  ;;  %v541_v40 = vrot.slane %v4598_v26, 1 }
  0x6f   : > { %643 = vrot.lane.b32.xlu1 %v4590_v22, %s4123_s23  ;;  %v4633_v22 = vsel %vm443_vm0, %v541_v40, %v543_v39 }
  0x70   : > { %641 = vrot.lane.b32.xlu0 %v4595_v58, %s4123_s23  ;;  %7679 = vst [vmem:[#allocation49_spill] sm:$0xff] %v4633_v22  ;;  %v4638_v58 = vsel %vm443_vm0, %v539_v45, %v541_v40  ;;  %v4656_v40 = vsel %vm443_vm0, %v543_v39, %v545_v3  ;;  %v716_v39 = vrot.slane %v4191_v2, 2 }
  0x71   : > { %7680 = vst [vmem:[#allocation50_spill] sm:$0xff] %v4638_v58  ;;  %7684 = vst [vmem:[#allocation54_spill] sm:$0xff] %v4656_v40 }
  0x73   : > { %647 = vrot.lane.b32.xlu1 %v4610_v57, %s4123_s23  ;;  %v4651_v57 = vsel %vm443_vm0, %v545_v3, %v547_v27 }
  0x74   : > { %645 = vrot.lane.b32.xlu0 %v4615_v63, %s4123_s23  ;;  %7683 = vst [vmem:[#allocation53_spill] sm:$0xff] %v4651_v57  ;;  %v549_v63 = vrot.slane %v4641_v14, 1 }
  0x76   : > { %v4665_v45 = vsel %vm443_vm0, %v549_v63, %v7504_v29  ;;  %v4670_v14 = vsel %vm443_vm0, %v547_v27, %v549_v63  ;;  %v721_v29 = vrot.slane %v4188_v1, 2  ;;  %v725_v63 = vrot.slane %v4205_v10, 2 }
  0x77   : > { %651 = vrot.lane.b32.xlu1 %v4633_v22, %s4123_s23  ;;  %7685 = vst [vmem:[#allocation55_spill] sm:$0xff] %v4665_v45  ;;  %v717_v22 = vrot.slane %v4196_v5, 2  ;;  %7686 = vst [vmem:[#allocation56_spill] sm:$0xff] %v4670_v14  ;;  %v723_v5 = vrot.slane %v4200_v7, 2  ;;  %v727_v27 = vrot.slane %v4208_v11, 2 }
  0x78   : > { %649 = vrot.lane.b32.xlu0 %v4638_v58, %s4123_s23  ;;  %v719_v58 = vrot.slane %v4185_v0, 2 }
  0x79   : > { %v718_v0 = vsel %vm715_vm1, %v716_v39, %v717_v22  ;;  %v4684_v2 = vsel %vm715_vm1, %v721_v29, %v723_v5  ;;  %v729_v39 = vrot.slane %v4221_v18, 2 }
  0x7a   : > { %v720_v3 = vsel %vm715_vm1, %v717_v22, %v719_v58  ;;  %7687 = vst [vmem:[#allocation57_spill] sm:$0xff] %v4684_v2  ;;  %v4693_v22 = vsel %vm715_vm1, %v725_v63, %v727_v27 }
  0x7b   : > { %655 = vrot.lane.b32.xlu1 %v4651_v57, %s4123_s23  ;;  %7688 = vst [vmem:[#allocation58_spill] sm:$0xff] %v4693_v22  ;;  %v4700_v57 = vsel %vm715_vm1, %v723_v5, %v725_v63  ;;  %v4716_v5 = vsel %vm715_vm1, %v727_v27, %v729_v39 }
  0x7c   : > { %653 = vrot.lane.b32.xlu0 %v4656_v40, %s4123_s23  ;;  %7690 = vst [vmem:[#allocation60_spill] sm:$0xff] %v4700_v57  ;;  %7694 = vst [vmem:[#allocation64_spill] sm:$0xff] %v4716_v5 }
  0x7f   : > { %659 = vrot.lane.b32.xlu1 %v4665_v45, %s4123_s23  ;;  %v722_v45 = vsel %vm715_vm1, %v719_v58, %v721_v29  ;;  %v733_v58 = vrot.slane %v4238_v24, 2 }
  0x80   : > { %657 = vrot.lane.b32.xlu0 %v4670_v14, %s4123_s23  ;;  %s4130_s23 = smov 32  }
  0x83   : > { %827 = vrot.lane.b32.xlu1 %v720_v3, %s4124_s28  ;;  %v731_v3 = vrot.slane %v4224_v19, 2 }
  0x84   : > { %825 = vrot.lane.b32.xlu0 %v718_v0, %s4124_s28 }
  0x85   : > { %v4709_v29 = vsel %vm715_vm1, %v729_v39, %v731_v3  ;;  %v4732_v27 = vsel %vm715_vm1, %v731_v3, %v733_v58 }
  0x86   : > { %7692 = vst [vmem:[#allocation62_spill] sm:$0xff] %v4709_v29  ;;  %7698 = vst [vmem:[#allocation68_spill] sm:$0xff] %v4732_v27 }
  0x87   : > { %831 = vrot.lane.b32.xlu1 %v4684_v2, %s4124_s28 }
  0x88   : > { %829 = vrot.lane.b32.xlu0 %v722_v45, %s4124_s28  ;;  %v735_v45 = vrot.slane %v4241_v25, 2 }
  0x89   : > { %v4697_v0 = vpop.permute.xlu1 %557 }
  0x8a   : > { %7689 = vst [vmem:[#allocation59_spill] sm:$0xff] %v4697_v0  ;;  %v4702_v14 = vpop.permute.xlu0 %553  ;;  %v4725_v0 = vsel %vm715_vm1, %v733_v58, %v735_v45 }
  0x8b   : > { %7691 = vst [vmem:[#allocation61_spill] sm:$0xff] %v4702_v14  ;;  %835 = vrot.lane.b32.xlu1 %v4693_v22, %s4124_s28  ;;  %7696 = vst [vmem:[#allocation66_spill] sm:$0xff] %v4725_v0  ;;  %v737_v14 = vrot.slane %v4256_v30, 2  ;;  %v739_v22 = vrot.slane %v4259_v31, 2 }
  0x8c   : > { %833 = vrot.lane.b32.xlu0 %v4700_v57, %s4124_s28 }
  0x8d   : > { %v4713_v2 = vpop.permute.xlu1 %559  ;;  %v4748_v3 = vsel %vm715_vm1, %v735_v45, %v737_v14 }
  0x8e   : > { %7693 = vst [vmem:[#allocation63_spill] sm:$0xff] %v4713_v2  ;;  %v4718_v63 = vpop.permute.xlu0 %555  ;;  %v4741_v2 = vsel %vm715_vm1, %v737_v14, %v739_v22  ;;  %7702 = vst [vmem:[#allocation72_spill] sm:$0xff] %v4748_v3 }
  0x8f   : > { %7695 = vst [vmem:[#allocation65_spill] sm:$0xff] %v4718_v63  ;;  %839 = vrot.lane.b32.xlu1 %v4709_v29, %s4124_s28  ;;  %7700 = vst [vmem:[#allocation70_spill] sm:$0xff] %v4741_v2  ;;  %v741_v63 = vrot.slane %v4274_v36, 2  ;;  %v743_v29 = vrot.slane %v4277_v37, 2 }
  0x90   : > { %837 = vrot.lane.b32.xlu0 %v4716_v5, %s4124_s28 }
  0x91   : > { %v4729_v57 = vpop.permute.xlu1 %563  ;;  %v4764_v14 = vsel %vm715_vm1, %v739_v22, %v741_v63 }
  0x92   : > { %7697 = vst [vmem:[#allocation67_spill] sm:$0xff] %v4729_v57  ;;  %v4734_v39 = vpop.permute.xlu0 %561  ;;  %v4757_v57 = vsel %vm715_vm1, %v741_v63, %v743_v29  ;;  %7706 = vst [vmem:[#allocation76_spill] sm:$0xff] %v4764_v14 }
  0x93   : > { %7699 = vst [vmem:[#allocation69_spill] sm:$0xff] %v4734_v39  ;;  %843 = vrot.lane.b32.xlu1 %v4725_v0, %s4124_s28  ;;  %7704 = vst [vmem:[#allocation74_spill] sm:$0xff] %v4757_v57  ;;  %v745_v39 = vrot.slane %v4292_v42, 2  ;;  %v747_v0 = vrot.slane %v4295_v43, 2 }
  0x94   : > { %841 = vrot.lane.b32.xlu0 %v4732_v27, %s4124_s28 }
  0x95   : > { %v4745_v5 = vpop.permute.xlu1 %567  ;;  %v4780_v22 = vsel %vm715_vm1, %v743_v29, %v745_v39 }
  0x96   : > { %7701 = vst [vmem:[#allocation71_spill] sm:$0xff] %v4745_v5  ;;  %v4750_v58 = vpop.permute.xlu0 %565  ;;  %v4773_v5 = vsel %vm715_vm1, %v745_v39, %v747_v0  ;;  %7710 = vst [vmem:[#allocation80_spill] sm:$0xff] %v4780_v22 }
  0x97   : > { %7703 = vst [vmem:[#allocation73_spill] sm:$0xff] %v4750_v58  ;;  %847 = vrot.lane.b32.xlu1 %v4741_v2, %s4124_s28  ;;  %7708 = vst [vmem:[#allocation78_spill] sm:$0xff] %v4773_v5  ;;  %v749_v58 = vrot.slane %v4310_v48, 2  ;;  %v751_v2 = vrot.slane %v4313_v49, 2 }
  0x98   : > { %845 = vrot.lane.b32.xlu0 %v4748_v3, %s4124_s28 }
  0x99   : > { %v4761_v27 = vpop.permute.xlu1 %571  ;;  %v4796_v29 = vsel %vm715_vm1, %v747_v0, %v749_v58 }
  0x9a   : > { %7705 = vst [vmem:[#allocation75_spill] sm:$0xff] %v4761_v27  ;;  %v4766_v45 = vpop.permute.xlu0 %569  ;;  %v4789_v27 = vsel %vm715_vm1, %v749_v58, %v751_v2  ;;  %7714 = vst [vmem:[#allocation84_spill] sm:$0xff] %v4796_v29 }
  0x9b   : > { %7707 = vst [vmem:[#allocation77_spill] sm:$0xff] %v4766_v45  ;;  %851 = vrot.lane.b32.xlu1 %v4757_v57, %s4124_s28  ;;  %7712 = vst [vmem:[#allocation82_spill] sm:$0xff] %v4789_v27  ;;  %v753_v45 = vrot.slane %v4328_v54, 2  ;;  %v755_v57 = vrot.slane %v4331_v55, 2 }
  0x9c   : > { %849 = vrot.lane.b32.xlu0 %v4764_v14, %s4124_s28 }
  0x9d   : > { %v4777_v3 = vpop.permute.xlu1 %575  ;;  %v4812_v0 = vsel %vm715_vm1, %v751_v2, %v753_v45 }
  0x9e   : > { %7709 = vst [vmem:[#allocation79_spill] sm:$0xff] %v4777_v3  ;;  %v4782_v63 = vpop.permute.xlu0 %573  ;;  %v4805_v3 = vsel %vm715_vm1, %v753_v45, %v755_v57  ;;  %7718 = vst [vmem:[#allocation88_spill] sm:$0xff] %v4812_v0 }
  0x9f   : > { %7711 = vst [vmem:[#allocation81_spill] sm:$0xff] %v4782_v63  ;;  %855 = vrot.lane.b32.xlu1 %v4773_v5, %s4124_s28  ;;  %7716 = vst [vmem:[#allocation86_spill] sm:$0xff] %v4805_v3  ;;  %v757_v63 = vrot.slane %v4346_v60, 2  ;;  %v759_v5 = vrot.slane %v4349_v61, 2 }
  0xa0   : > { %853 = vrot.lane.b32.xlu0 %v4780_v22, %s4124_s28 }
  0xa1   : > { %v4793_v14 = vpop.permute.xlu1 %579  ;;  %v4828_v2 = vsel %vm715_vm1, %v755_v57, %v757_v63 }
  0xa2   : > { %7713 = vst [vmem:[#allocation83_spill] sm:$0xff] %v4793_v14  ;;  %v4798_v39 = vpop.permute.xlu0 %577  ;;  %v4821_v14 = vsel %vm715_vm1, %v757_v63, %v759_v5  ;;  %7722 = vst [vmem:[#allocation92_spill] sm:$0xff] %v4828_v2 }
  0xa3   : > { %7715 = vst [vmem:[#allocation85_spill] sm:$0xff] %v4798_v39  ;;  %859 = vrot.lane.b32.xlu1 %v4789_v27, %s4124_s28  ;;  %7720 = vst [vmem:[#allocation90_spill] sm:$0xff] %v4821_v14  ;;  %v761_v39 = vrot.slane %v4364_v6, 2  ;;  %v763_v27 = vrot.slane %v4367_v8, 2 }
  0xa4   : > { %857 = vrot.lane.b32.xlu0 %v4796_v29, %s4124_s28 }
  0xa5   : > { %v4809_v22 = vpop.permute.xlu1 %583  ;;  %v4844_v57 = vsel %vm715_vm1, %v759_v5, %v761_v39 }
  0xa6   : > { %7717 = vst [vmem:[#allocation87_spill] sm:$0xff] %v4809_v22  ;;  %v4814_v58 = vpop.permute.xlu0 %581  ;;  %v4837_v22 = vsel %vm715_vm1, %v761_v39, %v763_v27  ;;  %7726 = vst [vmem:[#allocation96_spill] sm:$0xff] %v4844_v57 }
  0xa7   : > { %7719 = vst [vmem:[#allocation89_spill] sm:$0xff] %v4814_v58  ;;  %863 = vrot.lane.b32.xlu1 %v4805_v3, %s4124_s28  ;;  %7724 = vst [vmem:[#allocation94_spill] sm:$0xff] %v4837_v22  ;;  %v765_v58 = vrot.slane %v4382_v16, 2  ;;  %v767_v3 = vrot.slane %v4385_v17, 2 }
  0xa8   : > { %861 = vrot.lane.b32.xlu0 %v4812_v0, %s4124_s28 }
  0xa9   : > { %v4825_v29 = vpop.permute.xlu1 %587  ;;  %v4860_v5 = vsel %vm715_vm1, %v763_v27, %v765_v58 }
  0xaa   : > { %7721 = vst [vmem:[#allocation91_spill] sm:$0xff] %v4825_v29  ;;  %v4830_v45 = vpop.permute.xlu0 %585  ;;  %v4853_v29 = vsel %vm715_vm1, %v765_v58, %v767_v3  ;;  %7730 = vst [vmem:[#allocation100_spill] sm:$0xff] %v4860_v5 }
  0xab   : > { %7723 = vst [vmem:[#allocation93_spill] sm:$0xff] %v4830_v45  ;;  %867 = vrot.lane.b32.xlu1 %v4821_v14, %s4124_s28  ;;  %7728 = vst [vmem:[#allocation98_spill] sm:$0xff] %v4853_v29  ;;  %v769_v45 = vrot.slane %v4400_v33, 2  ;;  %v771_v14 = vrot.slane %v4403_v34, 2 }
  0xac   : > { %865 = vrot.lane.b32.xlu0 %v4828_v2, %s4124_s28 }
  0xad   : > { %v4841_v0 = vpop.permute.xlu1 %591  ;;  %v4876_v27 = vsel %vm715_vm1, %v767_v3, %v769_v45 }
  0xae   : > { %7725 = vst [vmem:[#allocation95_spill] sm:$0xff] %v4841_v0  ;;  %v4846_v63 = vpop.permute.xlu0 %589  ;;  %v4869_v0 = vsel %vm715_vm1, %v769_v45, %v771_v14  ;;  %7734 = vst [vmem:[#allocation104_spill] sm:$0xff] %v4876_v27 }
  0xaf   : > { %7727 = vst [vmem:[#allocation97_spill] sm:$0xff] %v4846_v63  ;;  %871 = vrot.lane.b32.xlu1 %v4837_v22, %s4124_s28  ;;  %7732 = vst [vmem:[#allocation102_spill] sm:$0xff] %v4869_v0  ;;  %v773_v63 = vrot.slane %v4418_v51, 2  ;;  %v775_v22 = vrot.slane %v4421_v52, 2 }
  0xb0   : > { %869 = vrot.lane.b32.xlu0 %v4844_v57, %s4124_s28 }
  0xb1   : > { %v4857_v2 = vpop.permute.xlu1 %595  ;;  %v4892_v3 = vsel %vm715_vm1, %v771_v14, %v773_v63 }
  0xb2   : > { %7729 = vst [vmem:[#allocation99_spill] sm:$0xff] %v4857_v2  ;;  %v4862_v39 = vpop.permute.xlu0 %593  ;;  %v4885_v2 = vsel %vm715_vm1, %v773_v63, %v775_v22  ;;  %7738 = vst [vmem:[#allocation108_spill] sm:$0xff] %v4892_v3 }
  0xb3   : > { %7731 = vst [vmem:[#allocation101_spill] sm:$0xff] %v4862_v39  ;;  %875 = vrot.lane.b32.xlu1 %v4853_v29, %s4124_s28  ;;  %7736 = vst [vmem:[#allocation106_spill] sm:$0xff] %v4885_v2  ;;  %v777_v39 = vrot.slane %v4436_v12, 2  ;;  %v779_v29 = vrot.slane %v4439_v13, 2 }
  0xb4   : > { %873 = vrot.lane.b32.xlu0 %v4860_v5, %s4124_s28 }
  0xb5   : > { %v4873_v57 = vpop.permute.xlu1 %599  ;;  %v4908_v14 = vsel %vm715_vm1, %v775_v22, %v777_v39 }
  0xb6   : > { %7733 = vst [vmem:[#allocation103_spill] sm:$0xff] %v4873_v57  ;;  %v4878_v58 = vpop.permute.xlu0 %597  ;;  %v4901_v57 = vsel %vm715_vm1, %v777_v39, %v779_v29  ;;  %7742 = vst [vmem:[#allocation112_spill] sm:$0xff] %v4908_v14 }
  0xb7   : > { %7735 = vst [vmem:[#allocation105_spill] sm:$0xff] %v4878_v58  ;;  %879 = vrot.lane.b32.xlu1 %v4869_v0, %s4124_s28  ;;  %7740 = vst [vmem:[#allocation110_spill] sm:$0xff] %v4901_v57  ;;  %v781_v58 = vrot.slane %v4454_v21, 2  ;;  %v783_v0 = vrot.slane %v4457_v46, 2 }
  0xb8   : > { %877 = vrot.lane.b32.xlu0 %v4876_v27, %s4124_s28 }
  0xb9   : > { %v4889_v5 = vpop.permute.xlu1 %603  ;;  %v4924_v22 = vsel %vm715_vm1, %v779_v29, %v781_v58 }
  0xba   : > { %7737 = vst [vmem:[#allocation107_spill] sm:$0xff] %v4889_v5  ;;  %v4894_v45 = vpop.permute.xlu0 %601  ;;  %v785_v5 = vrot.slane %v4472_v9, 2  ;;  %7746 = vst [vmem:[#allocation116_spill] sm:$0xff] %v4924_v22 }
  0xbb   : > { %7739 = vst [vmem:[#allocation109_spill] sm:$0xff] %v4894_v45  ;;  %883 = vrot.lane.b32.xlu1 %v4885_v2, %s4124_s28  ;;  %v4917_v45 = vsel %vm715_vm1, %v781_v58, %v783_v0  ;;  %v787_v2 = vrot.slane %v4475_v28, 2 }
  0xbc   : > { %881 = vrot.lane.b32.xlu0 %v4892_v3, %s4124_s28  ;;  %7744 = vst [vmem:[#allocation114_spill] sm:$0xff] %v4917_v45  ;;  %v4940_v29 = vsel %vm715_vm1, %v783_v0, %v785_v5 }
  0xbd   : > { %v4905_v27 = vpop.permute.xlu1 %607  ;;  %7750 = vst [vmem:[#allocation120_spill] sm:$0xff] %v4940_v29 }
  0xbe   : > { %7741 = vst [vmem:[#allocation111_spill] sm:$0xff] %v4905_v27  ;;  %v4910_v63 = vpop.permute.xlu0 %605  ;;  %v789_v27 = vrot.slane %v4490_v62, 2 }
  0xbf   : > { %7743 = vst [vmem:[#allocation113_spill] sm:$0xff] %v4910_v63  ;;  %887 = vrot.lane.b32.xlu1 %v4901_v57, %s4124_s28  ;;  %v4933_v63 = vsel %vm715_vm1, %v785_v5, %v787_v2  ;;  %v791_v57 = vrot.slane %v4493_v15, 2 }
  0xc0   : > { %885 = vrot.lane.b32.xlu0 %v4908_v14, %s4124_s28  ;;  %7748 = vst [vmem:[#allocation118_spill] sm:$0xff] %v4933_v63  ;;  %v4956_v0 = vsel %vm715_vm1, %v787_v2, %v789_v27 }
  0xc1   : > { %v4921_v3 = vpop.permute.xlu1 %611  ;;  %7754 = vst [vmem:[#allocation124_spill] sm:$0xff] %v4956_v0 }
  0xc2   : > { %7745 = vst [vmem:[#allocation115_spill] sm:$0xff] %v4921_v3  ;;  %v4926_v39 = vpop.permute.xlu0 %609  ;;  %v4949_v3 = vsel %vm715_vm1, %v789_v27, %v791_v57 }
  0xc3   : > { %7747 = vst [vmem:[#allocation117_spill] sm:$0xff] %v4926_v39  ;;  %891 = vrot.lane.b32.xlu1 %v4917_v45, %s4124_s28  ;;  %7752 = vst [vmem:[#allocation122_spill] sm:$0xff] %v4949_v3  ;;  %v793_v39 = vrot.slane %v4508_v56, 2  ;;  %v795_v45 = vrot.slane %v4511_v4, 2 }
  0xc4   : > { %889 = vrot.lane.b32.xlu0 %v4924_v22, %s4124_s28 }
  0xc5   : > { %v4937_v14 = vpop.permute.xlu1 %615  ;;  %v4972_v2 = vsel %vm715_vm1, %v791_v57, %v793_v39 }
  0xc6   : > { %7749 = vst [vmem:[#allocation119_spill] sm:$0xff] %v4937_v14  ;;  %v4942_v58 = vpop.permute.xlu0 %613  ;;  %v4965_v14 = vsel %vm715_vm1, %v793_v39, %v795_v45  ;;  %7758 = vst [vmem:[#allocation128_spill] sm:$0xff] %v4972_v2 }
  0xc7   : > { %7751 = vst [vmem:[#allocation121_spill] sm:$0xff] %v4942_v58  ;;  %895 = vrot.lane.b32.xlu1 %v4933_v63, %s4124_s28  ;;  %7756 = vst [vmem:[#allocation126_spill] sm:$0xff] %v4965_v14  ;;  %v797_v58 = vrot.slane %v4526_v50, 2  ;;  %v799_v63 = vrot.slane %v4529_v59, 2 }
  0xc8   : > { %893 = vrot.lane.b32.xlu0 %v4940_v29, %s4124_s28 }
  0xc9   : > { %v4953_v22 = vpop.permute.xlu1 %619  ;;  %v4988_v57 = vsel %vm715_vm1, %v795_v45, %v797_v58 }
  0xca   : > { %7753 = vst [vmem:[#allocation123_spill] sm:$0xff] %v4953_v22  ;;  %v4958_v5 = vpop.permute.xlu0 %617  ;;  %v4981_v22 = vsel %vm715_vm1, %v797_v58, %v799_v63  ;;  %7762 = vst [vmem:[#allocation132_spill] sm:$0xff] %v4988_v57 }
  0xcb   : > { %7755 = vst [vmem:[#allocation125_spill] sm:$0xff] %v4958_v5  ;;  %899 = vrot.lane.b32.xlu1 %v4949_v3, %s4124_s28  ;;  %7760 = vst [vmem:[#allocation130_spill] sm:$0xff] %v4981_v22  ;;  %v801_v5 = vrot.slane %v4544_v44, 2  ;;  %v803_v3 = vrot.slane %v4547_v53, 2 }
  0xcc   : > { %897 = vrot.lane.b32.xlu0 %v4956_v0, %s4124_s28 }
  0xcd   : > { %v4969_v29 = vpop.permute.xlu1 %623  ;;  %v5004_v45 = vsel %vm715_vm1, %v799_v63, %v801_v5 }
  0xce   : > { %7757 = vst [vmem:[#allocation127_spill] sm:$0xff] %v4969_v29  ;;  %v4974_v27 = vpop.permute.xlu0 %621  ;;  %v4997_v29 = vsel %vm715_vm1, %v801_v5, %v803_v3  ;;  %7766 = vst [vmem:[#allocation136_spill] sm:$0xff] %v5004_v45 }
  0xcf   : > { %7759 = vst [vmem:[#allocation129_spill] sm:$0xff] %v4974_v27  ;;  %903 = vrot.lane.b32.xlu1 %v4965_v14, %s4124_s28  ;;  %7764 = vst [vmem:[#allocation134_spill] sm:$0xff] %v4997_v29  ;;  %v805_v27 = vrot.slane %v4562_v38, 2  ;;  %v807_v14 = vrot.slane %v4565_v47, 2 }
  0xd0   : > { %901 = vrot.lane.b32.xlu0 %v4972_v2, %s4124_s28 }
  0xd1   : > { %v4985_v0 = vpop.permute.xlu1 %627  ;;  %v5020_v63 = vsel %vm715_vm1, %v803_v3, %v805_v27 }
  0xd2   : > { %7761 = vst [vmem:[#allocation131_spill] sm:$0xff] %v4985_v0  ;;  %v4990_v39 = vpop.permute.xlu0 %625  ;;  %v5013_v0 = vsel %vm715_vm1, %v805_v27, %v807_v14  ;;  %7770 = vst [vmem:[#allocation140_spill] sm:$0xff] %v5020_v63 }
  0xd3   : > { %7763 = vst [vmem:[#allocation133_spill] sm:$0xff] %v4990_v39  ;;  %907 = vrot.lane.b32.xlu1 %v4981_v22, %s4124_s28  ;;  %7768 = vst [vmem:[#allocation138_spill] sm:$0xff] %v5013_v0  ;;  %v809_v39 = vrot.slane %v4580_v32, 2  ;;  %v811_v22 = vrot.slane %v4583_v41, 2 }
  0xd4   : > { %905 = vrot.lane.b32.xlu0 %v4988_v57, %s4124_s28 }
  0xd5   : > { %v5001_v2 = vpop.permute.xlu1 %631  ;;  %v5036_v3 = vsel %vm715_vm1, %v807_v14, %v809_v39 }
  0xd6   : > { %7765 = vst [vmem:[#allocation135_spill] sm:$0xff] %v5001_v2  ;;  %v5006_v58 = vpop.permute.xlu0 %629  ;;  %v5029_v2 = vsel %vm715_vm1, %v809_v39, %v811_v22  ;;  %7774 = vst [vmem:[#allocation144_spill] sm:$0xff] %v5036_v3 }
  0xd7   : > { %7767 = vst [vmem:[#allocation137_spill] sm:$0xff] %v5006_v58  ;;  %911 = vrot.lane.b32.xlu1 %v4997_v29, %s4124_s28  ;;  %7772 = vst [vmem:[#allocation142_spill] sm:$0xff] %v5029_v2  ;;  %v813_v58 = vrot.slane %v4598_v26, 2  ;;  %v815_v29 = vrot.slane %v4601_v35, 2 }
  0xd8   : > { %909 = vrot.lane.b32.xlu0 %v5004_v45, %s4124_s28 }
  0xd9   : > { %v5017_v57 = vpop.permute.xlu1 %635  ;;  %v5052_v14 = vsel %vm715_vm1, %v811_v22, %v813_v58 }
  0xda   : > { %7769 = vst [vmem:[#allocation139_spill] sm:$0xff] %v5017_v57  ;;  %v5022_v5 = vpop.permute.xlu0 %633  ;;  %v5045_v57 = vsel %vm715_vm1, %v813_v58, %v815_v29  ;;  %7779 = vst [vmem:[#allocation147_spill] sm:$0xff] %v5052_v14 }
  0xdb   : > { %7771 = vst [vmem:[#allocation141_spill] sm:$0xff] %v5022_v5  ;;  %915 = vrot.lane.b32.xlu1 %v5013_v0, %s4124_s28  ;;  %7776 = vst [vmem:[#allocation146_spill] sm:$0xff] %v5045_v57  ;;  %v817_v5 = vrot.slane %v4618_v20, 2  ;;  %v7777_v0 = vld [vmem:[#allocation48_spill] sm:$0xff] }
  0xdc   : > { %913 = vrot.lane.b32.xlu0 %v5020_v63, %s4124_s28  ;;  %v819_v63 = vrot.slane %v7777_v0, 2 }
  0xdd   : > { %v5033_v45 = vpop.permute.xlu1 %639  ;;  %v5068_v22 = vsel %vm715_vm1, %v815_v29, %v817_v5 }
  0xde   : > { %7773 = vst [vmem:[#allocation143_spill] sm:$0xff] %v5033_v45  ;;  %v5038_v27 = vpop.permute.xlu0 %637  ;;  %v5061_v45 = vsel %vm715_vm1, %v817_v5, %v819_v63  ;;  %7784 = vst [vmem:[#allocation150_spill] sm:$0xff] %v5068_v22 }
  0xdf   : > { %7775 = vst [vmem:[#allocation145_spill] sm:$0xff] %v5038_v27  ;;  %919 = vrot.lane.b32.xlu1 %v5029_v2, %s4124_s28  ;;  %7781 = vst [vmem:[#allocation149_spill] sm:$0xff] %v5061_v45  ;;  %v7782_v27 = vld [vmem:[#allocation51_spill] sm:$0xff] }
  0xe0   : > { %917 = vrot.lane.b32.xlu0 %v5036_v3, %s4124_s28  ;;  %v821_v2 = vrot.slane %v7782_v27, 2  ;;  %v7601_v3 = vrot.slane %v4644_v23, 2 }
  0xe1   : > { %v5049_v40 = vpop.permute.xlu1 %643 }
  0xe2   : > { %7778 = vst [vmem:[#allocation48_spill] sm:$0xff] %v5049_v40  ;;  %v5054_v39 = vpop.permute.xlu0 %641  ;;  %v5079_v40 = vsel %vm715_vm1, %v821_v2, %v7601_v3 }
  0xe3   : > { %7780 = vst [vmem:[#allocation148_spill] sm:$0xff] %v5054_v39  ;;  %923 = vrot.lane.b32.xlu1 %v5045_v57, %s4124_s28  ;;  %7786 = vst [vmem:[#allocation152_spill] sm:$0xff] %v5079_v40 }
  0xe4   : > { %921 = vrot.lane.b32.xlu0 %v5052_v14, %s4124_s28  ;;  %v7916_v14 = vld [vmem:[#allocation41_spill] sm:$0xff] }
  0xe5   : > { %v5065_v20 = vpop.permute.xlu1 %647 }
  0xe6   : > { %7783 = vst [vmem:[#allocation51_spill] sm:$0xff] %v5065_v20  ;;  %v5070_v58 = vpop.permute.xlu0 %645  ;;  %v5084_v20 = vsel %vm715_vm1, %v819_v63, %v821_v2 }
  0xe7   : > { %7785 = vst [vmem:[#allocation151_spill] sm:$0xff] %v5070_v58  ;;  %927 = vrot.lane.b32.xlu1 %v5061_v45, %s4124_s28  ;;  %7788 = vst [vmem:[#allocation154_spill] sm:$0xff] %v5084_v20 }
  0xe8   : > { %925 = vrot.lane.b32.xlu0 %v5068_v22, %s4124_s28 }
  0xe9   : > { %v5081_v39 = vpop.permute.xlu1 %651 }
  0xea   : > { %7787 = vst [vmem:[#allocation153_spill] sm:$0xff] %v5081_v39  ;;  %v5086_v29 = vpop.permute.xlu0 %649  ;;  %v7847_v39 = vld [vmem:[#allocation8_spill] sm:$0xff] }
  0xeb   : > { %7789 = vst [vmem:[#allocation155_spill] sm:$0xff] %v5086_v29  ;;  %931 = vrot.lane.b32.xlu1 %v5079_v40, %s4124_s28  ;;  %v7854_v29 = vld [vmem:[#allocation9_spill] sm:$0xff] }
  0xec   : > { %929 = vrot.lane.b32.xlu0 %v5084_v20, %s4124_s28  ;;  %v7874_v20 = vld [vmem:[#allocation19_spill] sm:$0xff]  ;;  %s6900_s28 = scalar_lea.vmem %s7408_s4, %s3770_s26 }
  0xed   : > { %v5092_v5 = vpop.permute.xlu1 %655 }
  0xee   : > { %7790 = vst [vmem:[#allocation156_spill] sm:$0xff] %v5092_v5  ;;  %v5094_v58 = vpop.permute.xlu0 %653 }
  0xef   : > { %7791 = vst [vmem:[#allocation157_spill] sm:$0xff] %v5094_v58  ;;  %991 = vrot.lane.b32.xlu1 %v4200_v7, %s4125_s29  ;;  %v7845_v58 = vld [vmem:[#allocation6_spill] sm:$0xff] }
  0xf0   : > { %989 = vrot.lane.b32.xlu0 %v4188_v1, %s4125_s29 }
  0xf1   : > { %v5100_v2 = vpop.permute.xlu1 %659 }
  0xf2   : > { %7792 = vst [vmem:[#allocation158_spill] sm:$0xff] %v5100_v2  ;;  %v5102_v63 = vpop.permute.xlu0 %657  ;;  %v7842_v2 = vld [vmem:[#allocation2_spill] sm:$0xff] }
  0xf3   : > { %7793 = vst [vmem:[#allocation159_spill] sm:$0xff] %v5102_v63  ;;  %995 = vrot.lane.b32.xlu1 %v4208_v11, %s4125_s29 }
  0xf4   : > { %993 = vrot.lane.b32.xlu0 %v4205_v10, %s4125_s29 }
  0xf5   : > { %v5108_v3 = vpop.permute.xlu1 %827 }
  0xf6   : > { %v5110_v5 = vpop.permute.xlu0 %825 }
  0xf7   : > { %999 = vrot.lane.b32.xlu1 %v4224_v19, %s4125_s29 }
  0xf8   : > { %997 = vrot.lane.b32.xlu0 %v4221_v18, %s4125_s29 }
  0xf9   : > { %v5116_v1 = vpop.permute.xlu1 %831 }
  0xfa   : > { %v5118_v7 = vpop.permute.xlu0 %829 }
  0xfb   : > { %1003 = vrot.lane.b32.xlu1 %v4241_v25, %s4125_s29 }
  0xfc   : > { %1001 = vrot.lane.b32.xlu0 %v4238_v24, %s4125_s29 }
  0xfd   : > { %v5124_v10 = vpop.permute.xlu1 %835 }
  0xfe   : > { %7794 = vst [vmem:[#allocation160_spill] sm:$0xff] %v5124_v10  ;;  %v5126_v11 = vpop.permute.xlu0 %833 }
  0xff   : > { %7795 = vst [vmem:[#allocation161_spill] sm:$0xff] %v5126_v11  ;;  %1007 = vrot.lane.b32.xlu1 %v4259_v31, %s4125_s29  ;;  %v7979_v11 = vld [vmem:[#allocation90_spill] sm:$0xff] }
 0x100   : > { %1005 = vrot.lane.b32.xlu0 %v4256_v30, %s4125_s29 }
 0x101   : > { %v5132_v18 = vpop.permute.xlu1 %839 }
 0x102   : > { %7796 = vst [vmem:[#allocation162_spill] sm:$0xff] %v5132_v18  ;;  %v5134_v19 = vpop.permute.xlu0 %837 }
 0x103   : > { %7797 = vst [vmem:[#allocation163_spill] sm:$0xff] %v5134_v19  ;;  %1011 = vrot.lane.b32.xlu1 %v4277_v37, %s4125_s29 }
 0x104   : > { %1009 = vrot.lane.b32.xlu0 %v4274_v36, %s4125_s29 }
 0x105   : > { %v5140_v24 = vpop.permute.xlu1 %843 }
 0x106   : > { %7798 = vst [vmem:[#allocation164_spill] sm:$0xff] %v5140_v24  ;;  %v5142_v25 = vpop.permute.xlu0 %841  ;;  %v7911_v24 = vld [vmem:[#allocation42_spill] sm:$0xff] }
 0x107   : > { %7799 = vst [vmem:[#allocation165_spill] sm:$0xff] %v5142_v25  ;;  %1015 = vrot.lane.b32.xlu1 %v4295_v43, %s4125_s29 }
 0x108   : > { %1013 = vrot.lane.b32.xlu0 %v4292_v42, %s4125_s29 }
 0x109   : > { %v5148_v30 = vpop.permute.xlu1 %847 }
 0x10a   : > { %7800 = vst [vmem:[#allocation166_spill] sm:$0xff] %v5148_v30  ;;  %v5150_v31 = vpop.permute.xlu0 %845  ;;  %v7886_v30 = vld [vmem:[#allocation25_spill] sm:$0xff] }
 0x10b   : > { %7801 = vst [vmem:[#allocation167_spill] sm:$0xff] %v5150_v31  ;;  %1019 = vrot.lane.b32.xlu1 %v4313_v49, %s4125_s29  ;;  %v7904_v31 = vld [vmem:[#allocation35_spill] sm:$0xff] }
 0x10c   : > { %1017 = vrot.lane.b32.xlu0 %v4310_v48, %s4125_s29 }
 0x10d   : > { %v5156_v36 = vpop.permute.xlu1 %851 }
 0x10e   : > { %7802 = vst [vmem:[#allocation168_spill] sm:$0xff] %v5156_v36  ;;  %v5158_v37 = vpop.permute.xlu0 %849  ;;  %v7873_v36 = vld [vmem:[#allocation22_spill] sm:$0xff] }
 0x10f   : > { %7803 = vst [vmem:[#allocation169_spill] sm:$0xff] %v5158_v37  ;;  %1023 = vrot.lane.b32.xlu1 %v4331_v55, %s4125_s29 }
 0x110   : > { %1021 = vrot.lane.b32.xlu0 %v4328_v54, %s4125_s29 }
 0x111   : > { %v5164_v42 = vpop.permute.xlu1 %855 }
 0x112   : > { %7804 = vst [vmem:[#allocation170_spill] sm:$0xff] %v5164_v42  ;;  %v5166_v43 = vpop.permute.xlu0 %853 }
 0x113   : > { %7805 = vst [vmem:[#allocation171_spill] sm:$0xff] %v5166_v43  ;;  %1027 = vrot.lane.b32.xlu1 %v4349_v61, %s4125_s29  ;;  %v7869_v43 = vld [vmem:[#allocation20_spill] sm:$0xff] }
 0x114   : > { %1025 = vrot.lane.b32.xlu0 %v4346_v60, %s4125_s29 }
 0x115   : > { %v5172_v48 = vpop.permute.xlu1 %859 }
 0x116   : > { %7806 = vst [vmem:[#allocation172_spill] sm:$0xff] %v5172_v48  ;;  %v5174_v49 = vpop.permute.xlu0 %857 }
 0x117   : > { %7807 = vst [vmem:[#allocation173_spill] sm:$0xff] %v5174_v49  ;;  %1031 = vrot.lane.b32.xlu1 %v4367_v8, %s4125_s29  ;;  %v7865_v49 = vld [vmem:[#allocation18_spill] sm:$0xff] }
 0x118   : > { %1029 = vrot.lane.b32.xlu0 %v4364_v6, %s4125_s29 }
 0x119   : > { %v5180_v54 = vpop.permute.xlu1 %863 }
 0x11a   : > { %7808 = vst [vmem:[#allocation174_spill] sm:$0xff] %v5180_v54  ;;  %v5182_v55 = vpop.permute.xlu0 %861 }
 0x11b   : > { %7809 = vst [vmem:[#allocation175_spill] sm:$0xff] %v5182_v55  ;;  %1035 = vrot.lane.b32.xlu1 %v4385_v17, %s4125_s29  ;;  %v7861_v55 = vld [vmem:[#allocation16_spill] sm:$0xff] }
 0x11c   : > { %1033 = vrot.lane.b32.xlu0 %v4382_v16, %s4125_s29 }
 0x11d   : > { %v5188_v60 = vpop.permute.xlu1 %867 }
 0x11e   : > { %7810 = vst [vmem:[#allocation176_spill] sm:$0xff] %v5188_v60  ;;  %v5190_v61 = vpop.permute.xlu0 %865 }
 0x11f   : > { %7811 = vst [vmem:[#allocation177_spill] sm:$0xff] %v5190_v61  ;;  %1039 = vrot.lane.b32.xlu1 %v4403_v34, %s4125_s29  ;;  %v7857_v61 = vld [vmem:[#allocation14_spill] sm:$0xff] }
 0x120   : > { %1037 = vrot.lane.b32.xlu0 %v4400_v33, %s4125_s29 }
 0x121   : > { %v5196_v6 = vpop.permute.xlu1 %871 }
 0x122   : > { %7812 = vst [vmem:[#allocation178_spill] sm:$0xff] %v5196_v6  ;;  %v5198_v8 = vpop.permute.xlu0 %869  ;;  %v7850_v6 = vld [vmem:[#allocation7_spill] sm:$0xff] }
 0x123   : > { %7813 = vst [vmem:[#allocation179_spill] sm:$0xff] %v5198_v8  ;;  %1043 = vrot.lane.b32.xlu1 %v4421_v52, %s4125_s29 }
 0x124   : > { %1041 = vrot.lane.b32.xlu0 %v4418_v51, %s4125_s29 }
 0x125   : > { %v5204_v16 = vpop.permute.xlu1 %875 }
 0x126   : > { %7814 = vst [vmem:[#allocation180_spill] sm:$0xff] %v5204_v16  ;;  %v5206_v17 = vpop.permute.xlu0 %873 }
 0x127   : > { %7815 = vst [vmem:[#allocation181_spill] sm:$0xff] %v5206_v17  ;;  %1047 = vrot.lane.b32.xlu1 %v4439_v13, %s4125_s29 }
 0x128   : > { %1045 = vrot.lane.b32.xlu0 %v4436_v12, %s4125_s29 }
 0x129   : > { %v5212_v33 = vpop.permute.xlu1 %879 }
 0x12a   : > { %7816 = vst [vmem:[#allocation182_spill] sm:$0xff] %v5212_v33  ;;  %v5214_v34 = vpop.permute.xlu0 %877  ;;  %v5306_v33 = vld [vmem:[%s4626_s27 + $0x8] sm:$0xff] }
 0x12b   : > { %7817 = vst [vmem:[#allocation183_spill] sm:$0xff] %v5214_v34  ;;  %1051 = vrot.lane.b32.xlu1 %v4457_v46, %s4125_s29 }
 0x12c   : > { %1049 = vrot.lane.b32.xlu0 %v4454_v21, %s4125_s29 }
 0x12d   : > { %v5220_v51 = vpop.permute.xlu1 %883 }
 0x12e   : > { %v5222_v52 = vpop.permute.xlu0 %881 }
 0x12f   : > { %1055 = vrot.lane.b32.xlu1 %v4475_v28, %s4125_s29 }
 0x130   : > { %1053 = vrot.lane.b32.xlu0 %v4472_v9, %s4125_s29 }
 0x131   : > { %v5228_v12 = vpop.permute.xlu1 %887 }
 0x132   : > { %7818 = vst [vmem:[#allocation184_spill] sm:$0xff] %v5228_v12  ;;  %v5230_v13 = vpop.permute.xlu0 %885  ;;  %v7971_v12 = vld [vmem:[#allocation82_spill] sm:$0xff] }
 0x133   : > { %7819 = vst [vmem:[#allocation185_spill] sm:$0xff] %v5230_v13  ;;  %1059 = vrot.lane.b32.xlu1 %v4493_v15, %s4125_s29 }
 0x134   : > { %1057 = vrot.lane.b32.xlu0 %v4490_v62, %s4125_s29 }
 0x135   : > { %v5236_v21 = vpop.permute.xlu1 %891 }
 0x136   : > { %7820 = vst [vmem:[#allocation186_spill] sm:$0xff] %v5236_v21  ;;  %v5238_v46 = vpop.permute.xlu0 %889  ;;  %v1152_v21 = vrot.slane %v5306_v33, 1 }
 0x137   : > { %7821 = vst [vmem:[#allocation187_spill] sm:$0xff] %v5238_v46  ;;  %1063 = vrot.lane.b32.xlu1 %v4511_v4, %s4125_s29 }
 0x138   : > { %1061 = vrot.lane.b32.xlu0 %v4508_v56, %s4125_s29 }
 0x139   : > { %v5244_v9 = vpop.permute.xlu1 %895 }
 0x13a   : > { %7822 = vst [vmem:[#allocation188_spill] sm:$0xff] %v5244_v9  ;;  %v5246_v28 = vpop.permute.xlu0 %893  ;;  %v7912_v9 = vld [vmem:[#allocation39_spill] sm:$0xff] }
 0x13b   : > { %7823 = vst [vmem:[#allocation189_spill] sm:$0xff] %v5246_v28  ;;  %1067 = vrot.lane.b32.xlu1 %v4529_v59, %s4125_s29  ;;  %v7915_v28 = vld [vmem:[#allocation44_spill] sm:$0xff] }
 0x13c   : > { %1065 = vrot.lane.b32.xlu0 %v4526_v50, %s4125_s29 }
 0x13d   : > { %v5252_v62 = vpop.permute.xlu1 %899 }
 0x13e   : > { %7824 = vst [vmem:[#allocation190_spill] sm:$0xff] %v5252_v62  ;;  %v5254_v15 = vpop.permute.xlu0 %897  ;;  %v7882_v62 = vld [vmem:[#allocation23_spill] sm:$0xff] }
 0x13f   : > { %7825 = vst [vmem:[#allocation191_spill] sm:$0xff] %v5254_v15  ;;  %1071 = vrot.lane.b32.xlu1 %v4547_v53, %s4125_s29  ;;  %v7907_v15 = vld [vmem:[#allocation40_spill] sm:$0xff] }
 0x140   : > { %1069 = vrot.lane.b32.xlu0 %v4544_v44, %s4125_s29 }
 0x141   : > { %v5260_v56 = vpop.permute.xlu1 %903 }
 0x142   : > { %7826 = vst [vmem:[#allocation192_spill] sm:$0xff] %v5260_v56  ;;  %v5262_v4 = vpop.permute.xlu0 %901 }
 0x143   : > { %7827 = vst [vmem:[#allocation193_spill] sm:$0xff] %v5262_v4  ;;  %1075 = vrot.lane.b32.xlu1 %v4565_v47, %s4125_s29  ;;  %v7878_v4 = vld [vmem:[#allocation21_spill] sm:$0xff] }
 0x144   : > { %1073 = vrot.lane.b32.xlu0 %v4562_v38, %s4125_s29 }
 0x145   : > { %v5268_v50 = vpop.permute.xlu1 %907 }
 0x146   : > { %7828 = vst [vmem:[#allocation194_spill] sm:$0xff] %v5268_v50  ;;  %v5270_v59 = vpop.permute.xlu0 %905 }
 0x147   : > { %7829 = vst [vmem:[#allocation195_spill] sm:$0xff] %v5270_v59  ;;  %1079 = vrot.lane.b32.xlu1 %v4583_v41, %s4125_s29  ;;  %v7834_v41 = vld [vmem:[#allocation47_spill] sm:$0xff]  ;;  %v7870_v59 = vld [vmem:[#allocation17_spill] sm:$0xff] }
 0x148   : > { %1077 = vrot.lane.b32.xlu0 %v4580_v32, %s4125_s29 }
 0x149   : > { %v5276_v44 = vpop.permute.xlu1 %911 }
 0x14a   : > { %7830 = vst [vmem:[#allocation196_spill] sm:$0xff] %v5276_v44  ;;  %v5278_v53 = vpop.permute.xlu0 %909 }
 0x14b   : > { %7831 = vst [vmem:[#allocation197_spill] sm:$0xff] %v5278_v53  ;;  %1083 = vrot.lane.b32.xlu1 %v4601_v35, %s4125_s29  ;;  %v7866_v53 = vld [vmem:[#allocation15_spill] sm:$0xff] }
 0x14c   : > { %1081 = vrot.lane.b32.xlu0 %v4598_v26, %s4125_s29  ;;  %v5301_v26 = vld [vmem:[%s4626_s27 + $0x10] sm:$0xff] }
 0x14d   : > { %v5284_v38 = vpop.permute.xlu1 %915 }
 0x14e   : > { %7832 = vst [vmem:[#allocation198_spill] sm:$0xff] %v5284_v38  ;;  %v5286_v47 = vpop.permute.xlu0 %913 }
 0x14f   : > { %7833 = vst [vmem:[#allocation199_spill] sm:$0xff] %v5286_v47  ;;  %1087 = vrot.lane.b32.xlu1 %v7777_v0, %s4125_s29  ;;  %v7862_v47 = vld [vmem:[#allocation13_spill] sm:$0xff] }
 0x150   : > { %1085 = vrot.lane.b32.xlu0 %v7834_v41, %s4125_s29 }
 0x151   : > { %v5292_v32 = vpop.permute.xlu1 %919 }
 0x152   : > { %7835 = vst [vmem:[#allocation47_spill] sm:$0xff] %v5292_v32  ;;  %v5294_v34 = vpop.permute.xlu0 %917 }
 0x153   : > { %7836 = vst [vmem:[#allocation200_spill] sm:$0xff] %v5294_v34  ;;  %1091 = vrot.lane.b32.xlu1 %v4644_v23, %s4125_s29  ;;  %v7858_v34 = vld [vmem:[#allocation11_spill] sm:$0xff] }
 0x154   : > { %1089 = vrot.lane.b32.xlu0 %v7782_v27, %s4125_s29  ;;  %v7841_v27 = vld [vmem:[#allocation4_spill] sm:$0xff] }
 0x155   : > { %v5303_v35 = vpop.permute.xlu1 %923 }
 0x156   : > { %7837 = vst [vmem:[#allocation201_spill] sm:$0xff] %v5303_v35  ;;  %v5308_v0 = vpop.permute.xlu0 %921  ;;  %v7846_v35 = vld [vmem:[#allocation3_spill] sm:$0xff] }
 0x157   : > { %7838 = vst [vmem:[#allocation202_spill] sm:$0xff] %v5308_v0  ;;  %1095 = vrot.lane.b32.xlu1 %v5301_v26, %s4125_s29  ;;  %v7853_v0 = vld [vmem:[#allocation12_spill] sm:$0xff] }
 0x158   : > { %1093 = vrot.lane.b32.xlu0 %v5306_v33, %s4125_s29 }
 0x159   : > { %v5314_v41 = vpop.permute.xlu1 %927 }
 0x15a   : > { %7839 = vst [vmem:[#allocation203_spill] sm:$0xff] %v5314_v41  ;;  %v5316_v63 = vpop.permute.xlu0 %925 }
 0x15b   : > { %7840 = vst [vmem:[#allocation204_spill] sm:$0xff] %v5316_v63  ;;  %1160 = vrot.lane.b32.xlu1 %v7841_v27, %s4126_s30  ;;  %v7848_v27 = vld [vmem:[#allocation5_spill] sm:$0xff] }
 0x15c   : > { %1158 = vrot.lane.b32.xlu0 %v7842_v2, %s4126_s30 }
 0x15d   : > { %v5322_v17 = vpop.permute.xlu1 %931 }
 0x15e   : > { %7843 = vst [vmem:[#allocation4_spill] sm:$0xff] %v5322_v17  ;;  %v5324_v16 = vpop.permute.xlu0 %929 }
 0x15f   : > { %7844 = vst [vmem:[#allocation2_spill] sm:$0xff] %v5324_v16  ;;  %1164 = vrot.lane.b32.xlu1 %v7845_v58, %s4126_s30  ;;  %v7849_v16 = vld [vmem:[#allocation10_spill] sm:$0xff] }
 0x160   : > { %1162 = vrot.lane.b32.xlu0 %v7846_v35, %s4126_s30 }
 0x161   : > { %v5330_v41 = vpop.permute.xlu1 %991 }
 0x162   : > { %v5332_v63 = vpop.permute.xlu0 %989 }
 0x163   : > { %1168 = vrot.lane.b32.xlu1 %v7847_v39, %s4126_s30 }
 0x164   : > { %1166 = vrot.lane.b32.xlu0 %v7848_v27, %s4126_s30 }
 0x165   : > { %v5338_v2 = vpop.permute.xlu1 %995 }
 0x166   : > { %v5340_v17 = vpop.permute.xlu0 %993 }
 0x167   : > { %1172 = vrot.lane.b32.xlu1 %v7849_v16, %s4126_s30 }
 0x168   : > { %1170 = vrot.lane.b32.xlu0 %v7850_v6, %s4126_s30 }
 0x169   : > { %v5346_v35 = vpop.permute.xlu1 %999 }
 0x16a   : > { %7851 = vst [vmem:[#allocation6_spill] sm:$0xff] %v5346_v35  ;;  %v5348_v8 = vpop.permute.xlu0 %997  ;;  %v7966_v35 = vld [vmem:[#allocation84_spill] sm:$0xff] }
 0x16b   : > { %7852 = vst [vmem:[#allocation3_spill] sm:$0xff] %v5348_v8  ;;  %1176 = vrot.lane.b32.xlu1 %v7853_v0, %s4126_s30  ;;  %v7975_v8 = vld [vmem:[#allocation86_spill] sm:$0xff] }
 0x16c   : > { %1174 = vrot.lane.b32.xlu0 %v7854_v29, %s4126_s30 }
 0x16d   : > { %v5354_v32 = vpop.permute.xlu1 %1003 }
 0x16e   : > { %7855 = vst [vmem:[#allocation8_spill] sm:$0xff] %v5354_v32  ;;  %v5356_v60 = vpop.permute.xlu0 %1001  ;;  %v7923_v32 = vld [vmem:[#allocation50_spill] sm:$0xff] }
 0x16f   : > { %7856 = vst [vmem:[#allocation5_spill] sm:$0xff] %v5356_v60  ;;  %1180 = vrot.lane.b32.xlu1 %v7857_v61, %s4126_s30  ;;  %v7928_v60 = vld [vmem:[#allocation49_spill] sm:$0xff] }
 0x170   : > { %1178 = vrot.lane.b32.xlu0 %v7858_v34, %s4126_s30 }
 0x171   : > { %v5362_v38 = vpop.permute.xlu1 %1007 }
 0x172   : > { %7859 = vst [vmem:[#allocation10_spill] sm:$0xff] %v5362_v38  ;;  %v5364_v54 = vpop.permute.xlu0 %1005 }
 0x173   : > { %7860 = vst [vmem:[#allocation7_spill] sm:$0xff] %v5364_v54  ;;  %1184 = vrot.lane.b32.xlu1 %v7861_v55, %s4126_s30 }
 0x174   : > { %1182 = vrot.lane.b32.xlu0 %v7862_v47, %s4126_s30 }
 0x175   : > { %v5370_v44 = vpop.permute.xlu1 %1011 }
 0x176   : > { %7863 = vst [vmem:[#allocation12_spill] sm:$0xff] %v5370_v44  ;;  %v5372_v48 = vpop.permute.xlu0 %1009 }
 0x177   : > { %7864 = vst [vmem:[#allocation9_spill] sm:$0xff] %v5372_v48  ;;  %1188 = vrot.lane.b32.xlu1 %v7865_v49, %s4126_s30  ;;  %v8009_v49 = vld [vmem:[#allocation122_spill] sm:$0xff] }
 0x178   : > { %1186 = vrot.lane.b32.xlu0 %v7866_v53, %s4126_s30 }
 0x179   : > { %v5378_v50 = vpop.permute.xlu1 %1015 }
 0x17a   : > { %7867 = vst [vmem:[#allocation14_spill] sm:$0xff] %v5378_v50  ;;  %v5380_v42 = vpop.permute.xlu0 %1013 }
 0x17b   : > { %7868 = vst [vmem:[#allocation11_spill] sm:$0xff] %v5380_v42  ;;  %1192 = vrot.lane.b32.xlu1 %v7869_v43, %s4126_s30  ;;  %v7877_v42 = vld [vmem:[#allocation24_spill] sm:$0xff]  ;;  %v7963_v43 = vld [vmem:[#allocation74_spill] sm:$0xff] }
 0x17c   : > { %1190 = vrot.lane.b32.xlu0 %v7870_v59, %s4126_s30 }
 0x17d   : > { %v5386_v40 = vpop.permute.xlu1 %1019 }
 0x17e   : > { %7871 = vst [vmem:[#allocation16_spill] sm:$0xff] %v5386_v40  ;;  %v5388_v56 = vpop.permute.xlu0 %1017 }
 0x17f   : > { %7872 = vst [vmem:[#allocation13_spill] sm:$0xff] %v5388_v56  ;;  %1196 = vrot.lane.b32.xlu1 %v7873_v36, %s4126_s30  ;;  %v7881_v56 = vld [vmem:[#allocation26_spill] sm:$0xff]  ;;  %v7920_v36 = vld [vmem:[#allocation43_spill] sm:$0xff] }
 0x180   : > { %1194 = vrot.lane.b32.xlu0 %v7874_v20, %s4126_s30 }
 0x181   : > { %v5394_v37 = vpop.permute.xlu1 %1023 }
 0x182   : > { %7875 = vst [vmem:[#allocation15_spill] sm:$0xff] %v5394_v37  ;;  %v5396_v50 = vpop.permute.xlu0 %1021 }
 0x183   : > { %7876 = vst [vmem:[#allocation205_spill] sm:$0xff] %v5396_v50  ;;  %1200 = vrot.lane.b32.xlu1 %v7877_v42, %s4126_s30  ;;  %v7885_v50 = vld [vmem:[#allocation28_spill] sm:$0xff]  ;;  %v7908_v42 = vld [vmem:[#allocation37_spill] sm:$0xff] }
 0x184   : > { %1198 = vrot.lane.b32.xlu0 %v7878_v4, %s4126_s30  ;;  %v7919_v4 = vld [vmem:[#allocation46_spill] sm:$0xff] }
 0x185   : > { %v5402_v45 = vpop.permute.xlu1 %1027 }
 0x186   : > { %7879 = vst [vmem:[#allocation206_spill] sm:$0xff] %v5402_v45  ;;  %v5404_v40 = vpop.permute.xlu0 %1025 }
 0x187   : > { %7880 = vst [vmem:[#allocation207_spill] sm:$0xff] %v5404_v40  ;;  %1204 = vrot.lane.b32.xlu1 %v7881_v56, %s4126_s30  ;;  %v7889_v40 = vld [vmem:[#allocation30_spill] sm:$0xff]  ;;  %v7890_v56 = vld [vmem:[#allocation27_spill] sm:$0xff] }
 0x188   : > { %1202 = vrot.lane.b32.xlu0 %v7882_v62, %s4126_s30 }
 0x189   : > { %v5410_v44 = vpop.permute.xlu1 %1031 }
 0x18a   : > { %7883 = vst [vmem:[#allocation208_spill] sm:$0xff] %v5410_v44  ;;  %v5412_v37 = vpop.permute.xlu0 %1029 }
 0x18b   : > { %7884 = vst [vmem:[#allocation209_spill] sm:$0xff] %v5412_v37  ;;  %1208 = vrot.lane.b32.xlu1 %v7885_v50, %s4126_s30  ;;  %v7893_v37 = vld [vmem:[#allocation32_spill] sm:$0xff]  ;;  %v7894_v50 = vld [vmem:[#allocation29_spill] sm:$0xff] }
 0x18c   : > { %1206 = vrot.lane.b32.xlu0 %v7886_v30, %s4126_s30 }
 0x18d   : > { %v5418_v22 = vpop.permute.xlu1 %1035 }
 0x18e   : > { %7887 = vst [vmem:[#allocation210_spill] sm:$0xff] %v5418_v22  ;;  %v5420_v45 = vpop.permute.xlu0 %1033 }
 0x18f   : > { %7888 = vst [vmem:[#allocation211_spill] sm:$0xff] %v5420_v45  ;;  %1212 = vrot.lane.b32.xlu1 %v7889_v40, %s4126_s30  ;;  %v7897_v45 = vld [vmem:[#allocation34_spill] sm:$0xff]  ;;  %v7898_v40 = vld [vmem:[#allocation31_spill] sm:$0xff] }
 0x190   : > { %1210 = vrot.lane.b32.xlu0 %v7890_v56, %s4126_s30 }
 0x191   : > { %v5426_v48 = vpop.permute.xlu1 %1039 }
 0x192   : > { %7891 = vst [vmem:[#allocation212_spill] sm:$0xff] %v5426_v48  ;;  %v5428_v44 = vpop.permute.xlu0 %1037 }
 0x193   : > { %7892 = vst [vmem:[#allocation213_spill] sm:$0xff] %v5428_v44  ;;  %1216 = vrot.lane.b32.xlu1 %v7893_v37, %s4126_s30  ;;  %v7899_v44 = vld [vmem:[#allocation36_spill] sm:$0xff]  ;;  %v7900_v37 = vld [vmem:[#allocation33_spill] sm:$0xff] }
 0x194   : > { %1214 = vrot.lane.b32.xlu0 %v7894_v50, %s4126_s30 }
 0x195   : > { %v5434_v30 = vpop.permute.xlu1 %1043 }
 0x196   : > { %7895 = vst [vmem:[#allocation214_spill] sm:$0xff] %v5434_v30  ;;  %v5436_v22 = vpop.permute.xlu0 %1041 }
 0x197   : > { %7896 = vst [vmem:[#allocation215_spill] sm:$0xff] %v5436_v22  ;;  %1220 = vrot.lane.b32.xlu1 %v7897_v45, %s4126_s30  ;;  %v7903_v22 = vld [vmem:[#allocation38_spill] sm:$0xff] }
 0x198   : > { %1218 = vrot.lane.b32.xlu0 %v7898_v40, %s4126_s30 }
 0x199   : > { %v5442_v56 = vpop.permute.xlu1 %1047 }
 0x19a   : > { %v5444_v48 = vpop.permute.xlu0 %1045 }
 0x19b   : > { %1224 = vrot.lane.b32.xlu1 %v7899_v44, %s4126_s30 }
 0x19c   : > { %1222 = vrot.lane.b32.xlu0 %v7900_v37, %s4126_s30 }
 0x19d   : > { %v5450_v50 = vpop.permute.xlu1 %1051 }
 0x19e   : > { %7901 = vst [vmem:[#allocation34_spill] sm:$0xff] %v5450_v50  ;;  %v5452_v30 = vpop.permute.xlu0 %1049  ;;  %v7967_v50 = vld [vmem:[#allocation78_spill] sm:$0xff] }
 0x19f   : > { %7902 = vst [vmem:[#allocation36_spill] sm:$0xff] %v5452_v30  ;;  %1228 = vrot.lane.b32.xlu1 %v7903_v22, %s4126_s30 }
 0x1a0   : > { %1226 = vrot.lane.b32.xlu0 %v7904_v31, %s4126_s30 }
 0x1a1   : > { %v5458_v40 = vpop.permute.xlu1 %1055 }
 0x1a2   : > { %7905 = vst [vmem:[#allocation33_spill] sm:$0xff] %v5458_v40  ;;  %v5460_v62 = vpop.permute.xlu0 %1053  ;;  %v7924_v40 = vld [vmem:[#allocation45_spill] sm:$0xff] }
 0x1a3   : > { %7906 = vst [vmem:[#allocation38_spill] sm:$0xff] %v5460_v62  ;;  %1232 = vrot.lane.b32.xlu1 %v7907_v15, %s4126_s30  ;;  %v7932_v62 = vld [vmem:[#allocation56_spill] sm:$0xff] }
 0x1a4   : > { %1230 = vrot.lane.b32.xlu0 %v7908_v42, %s4126_s30 }
 0x1a5   : > { %v5466_v57 = vpop.permute.xlu1 %1059 }
 0x1a6   : > { %7909 = vst [vmem:[#allocation35_spill] sm:$0xff] %v5466_v57  ;;  %v5468_v38 = vpop.permute.xlu0 %1057 }
 0x1a7   : > { %7910 = vst [vmem:[#allocation40_spill] sm:$0xff] %v5468_v38  ;;  %1236 = vrot.lane.b32.xlu1 %v7911_v24, %s4126_s30 }
 0x1a8   : > { %1234 = vrot.lane.b32.xlu0 %v7912_v9, %s4126_s30 }
 0x1a9   : > { %v5474_v54 = vpop.permute.xlu1 %1063 }
 0x1aa   : > { %7913 = vst [vmem:[#allocation37_spill] sm:$0xff] %v5474_v54  ;;  %v5476_v25 = vpop.permute.xlu0 %1061 }
 0x1ab   : > { %7914 = vst [vmem:[#allocation42_spill] sm:$0xff] %v5476_v25  ;;  %1240 = vrot.lane.b32.xlu1 %v7915_v28, %s4126_s30 }
 0x1ac   : > { %1238 = vrot.lane.b32.xlu0 %v7916_v14, %s4126_s30 }
 0x1ad   : > { %v5482_v57 = vpop.permute.xlu1 %1067 }
 0x1ae   : > { %7917 = vst [vmem:[#allocation39_spill] sm:$0xff] %v5482_v57  ;;  %v5484_v38 = vpop.permute.xlu0 %1065 }
 0x1af   : > { %7918 = vst [vmem:[#allocation41_spill] sm:$0xff] %v5484_v38  ;;  %1244 = vrot.lane.b32.xlu1 %v7919_v4, %s4126_s30  ;;  %v7927_v38 = vld [vmem:[#allocation54_spill] sm:$0xff] }
 0x1b0   : > { %1242 = vrot.lane.b32.xlu0 %v7920_v36, %s4126_s30  ;;  %v8008_v36 = vld [vmem:[#allocation128_spill] sm:$0xff] }
 0x1b1   : > { %v5490_v54 = vpop.permute.xlu1 %1071 }
 0x1b2   : > { %7921 = vst [vmem:[#allocation216_spill] sm:$0xff] %v5490_v54  ;;  %v5492_v25 = vpop.permute.xlu0 %1069 }
 0x1b3   : > { %7922 = vst [vmem:[#allocation217_spill] sm:$0xff] %v5492_v25  ;;  %1248 = vrot.lane.b32.xlu1 %v7923_v32, %s4126_s30  ;;  %v5510_v25 = vld [vmem:[%s4626_s27 + $0x18] sm:$0xff] }
 0x1b4   : > { %1246 = vrot.lane.b32.xlu0 %v7924_v40, %s4126_s30  ;;  %7930 = vst [vmem:[#allocation221_spill] sm:$0xff] %v5510_v25  ;;  %v7962_v40 = vld [vmem:[#allocation80_spill] sm:$0xff] }
 0x1b5   : > { %v5498_v18 = vpop.permute.xlu1 %1075 }
 0x1b6   : > { %7925 = vst [vmem:[#allocation218_spill] sm:$0xff] %v5498_v18  ;;  %v5500_v57 = vpop.permute.xlu0 %1073  ;;  %v1154_v18 = vrot.slane %v5301_v26, 1 }
 0x1b7   : > { %7926 = vst [vmem:[#allocation219_spill] sm:$0xff] %v5500_v57  ;;  %1252 = vrot.lane.b32.xlu1 %v7927_v38, %s4126_s30  ;;  %v7933_v57 = vld [vmem:[#allocation53_spill] sm:$0xff]  ;;  %v7934_v38 = vrot.slane %v4644_v23, 1 }
 0x1b8   : > { %1250 = vrot.lane.b32.xlu0 %v7928_v60, %s4126_s30  ;;  %v7615_v60 = vrot.slane %v5510_v25, 1  ;;  %v7950_v25 = vld [vmem:[#allocation58_spill] sm:$0xff] }
 0x1b9   : > { %v5507_v54 = vpop.permute.xlu1 %1079  ;;  %v5522_v33 = vsel %vm443_vm0, %v7934_v38, %v1152_v21  ;;  %v5541_v38 = vsel %vm443_vm0, %v1152_v21, %v1154_v18 }
 0x1ba   : > { %7929 = vst [vmem:[#allocation220_spill] sm:$0xff] %v5507_v54  ;;  %v5512_v32 = vpop.permute.xlu0 %1077  ;;  %7935 = vst [vmem:[#allocation223_spill] sm:$0xff] %v5522_v33  ;;  %v5536_v26 = vsel %vm443_vm0, %v1154_v18, %v7615_v60  ;;  %v7945_v60 = vld [vmem:[#allocation60_spill] sm:$0xff] }
 0x1bb   : > { %7931 = vst [vmem:[#allocation222_spill] sm:$0xff] %v5512_v32  ;;  %1256 = vrot.lane.b32.xlu1 %v7932_v62, %s4126_s30  ;;  %v7938_v32 = vld [vmem:[#allocation55_spill] sm:$0xff]  ;;  %7939 = vst [vmem:[#allocation226_spill] sm:$0xff] %v5536_v26 }
 0x1bc   : > { %1254 = vrot.lane.b32.xlu0 %v7933_v57, %s4126_s30  ;;  %7941 = vst [vmem:[#allocation228_spill] sm:$0xff] %v5541_v38  ;;  %v7959_v57 = vld [vmem:[#allocation70_spill] sm:$0xff] }
 0x1bd   : > { %v5525_v54 = vpop.permute.xlu1 %1083 }
 0x1be   : > { %7936 = vst [vmem:[#allocation224_spill] sm:$0xff] %v5525_v54  ;;  %v5527_v19 = vpop.permute.xlu0 %1081 }
 0x1bf   : > { %7937 = vst [vmem:[#allocation225_spill] sm:$0xff] %v5527_v19  ;;  %1260 = vrot.lane.b32.xlu1 %v5522_v33, %s4126_s30 }
 0x1c0   : > { %1258 = vrot.lane.b32.xlu0 %v7938_v32, %s4126_s30  ;;  %v7958_v32 = vld [vmem:[#allocation76_spill] sm:$0xff] }
 0x1c1   : > { %v5538_v23 = vpop.permute.xlu1 %1087 }
 0x1c2   : > { %7940 = vst [vmem:[#allocation227_spill] sm:$0xff] %v5538_v23  ;;  %v5543_v62 = vpop.permute.xlu0 %1085  ;;  %v7946_v23 = vld [vmem:[#allocation57_spill] sm:$0xff] }
 0x1c3   : > { %7942 = vst [vmem:[#allocation229_spill] sm:$0xff] %v5543_v62  ;;  %1264 = vrot.lane.b32.xlu1 %v5536_v26, %s4126_s30  ;;  %v7949_v62 = vld [vmem:[#allocation64_spill] sm:$0xff] }
 0x1c4   : > { %1262 = vrot.lane.b32.xlu0 %v5541_v38, %s4126_s30  ;;  %v7951_v26 = vld [vmem:[#allocation68_spill] sm:$0xff]  ;;  %v7955_v38 = vld [vmem:[#allocation66_spill] sm:$0xff] }
 0x1c5   : > { %v5549_v54 = vpop.permute.xlu1 %1091 }
 0x1c6   : > { %7943 = vst [vmem:[#allocation230_spill] sm:$0xff] %v5549_v54  ;;  %v5551_v19 = vpop.permute.xlu0 %1089 }
 0x1c7   : > { %7944 = vst [vmem:[#allocation231_spill] sm:$0xff] %v5551_v19  ;;  %1328 = vrot.lane.b32.xlu1 %v7945_v60, %s4127_s5  ;;  %v7952_v60 = vld [vmem:[#allocation62_spill] sm:$0xff] }
 0x1c8   : > { %1326 = vrot.lane.b32.xlu0 %v7946_v23, %s4127_s5 }
 0x1c9   : > { %v5557_v18 = vpop.permute.xlu1 %1095 }
 0x1ca   : > { %7947 = vst [vmem:[#allocation60_spill] sm:$0xff] %v5557_v18  ;;  %v5559_v21 = vpop.permute.xlu0 %1093 }
 0x1cb   : > { %7948 = vst [vmem:[#allocation57_spill] sm:$0xff] %v5559_v21  ;;  %1332 = vrot.lane.b32.xlu1 %v7949_v62, %s4127_s5  ;;  %v7954_v21 = vld [vmem:[#allocation72_spill] sm:$0xff] }
 0x1cc   : > { %1330 = vrot.lane.b32.xlu0 %v7950_v25, %s4127_s5 }
 0x1cd   : > { %v5565_v54 = vpop.permute.xlu1 %1160 }
 0x1ce   : > { %v5567_v19 = vpop.permute.xlu0 %1158 }
 0x1cf   : > { %1336 = vrot.lane.b32.xlu1 %v7951_v26, %s4127_s5 }
 0x1d0   : > { %1334 = vrot.lane.b32.xlu0 %v7952_v60, %s4127_s5 }
 0x1d1   : > { %v5573_v23 = vpop.permute.xlu1 %1164 }
 0x1d2   : > { %7953 = vst [vmem:[#allocation64_spill] sm:$0xff] %v5573_v23  ;;  %v5575_v18 = vpop.permute.xlu0 %1162 }
 0x1d3   : > { %1340 = vrot.lane.b32.xlu1 %v7954_v21, %s4127_s5 }
 0x1d4   : > { %1338 = vrot.lane.b32.xlu0 %v7955_v38, %s4127_s5 }
 0x1d5   : > { %v5581_v25 = vpop.permute.xlu1 %1168 }
 0x1d6   : > { %7956 = vst [vmem:[#allocation58_spill] sm:$0xff] %v5581_v25  ;;  %v5583_v33 = vpop.permute.xlu0 %1166 }
 0x1d7   : > { %7957 = vst [vmem:[#allocation68_spill] sm:$0xff] %v5583_v33  ;;  %1344 = vrot.lane.b32.xlu1 %v7958_v32, %s4127_s5 }
 0x1d8   : > { %1342 = vrot.lane.b32.xlu0 %v7959_v57, %s4127_s5 }
 0x1d9   : > { %v5589_v46 = vpop.permute.xlu1 %1172 }
 0x1da   : > { %7960 = vst [vmem:[#allocation62_spill] sm:$0xff] %v5589_v46  ;;  %v5591_v20 = vpop.permute.xlu0 %1170 }
 0x1db   : > { %7961 = vst [vmem:[#allocation72_spill] sm:$0xff] %v5591_v20  ;;  %1348 = vrot.lane.b32.xlu1 %v7962_v40, %s4127_s5  ;;  %v7970_v20 = vld [vmem:[#allocation88_spill] sm:$0xff] }
 0x1dc   : > { %1346 = vrot.lane.b32.xlu0 %v7963_v43, %s4127_s5 }
 0x1dd   : > { %v5597_v4 = vpop.permute.xlu1 %1176 }
 0x1de   : > { %7964 = vst [vmem:[#allocation66_spill] sm:$0xff] %v5597_v4  ;;  %v5599_v25 = vpop.permute.xlu0 %1174 }
 0x1df   : > { %7965 = vst [vmem:[#allocation76_spill] sm:$0xff] %v5599_v25  ;;  %1352 = vrot.lane.b32.xlu1 %v7966_v35, %s4127_s5  ;;  %v7974_v25 = vld [vmem:[#allocation92_spill] sm:$0xff] }
 0x1e0   : > { %1350 = vrot.lane.b32.xlu0 %v7967_v50, %s4127_s5 }
 0x1e1   : > { %v5605_v10 = vpop.permute.xlu1 %1180 }
 0x1e2   : > { %7968 = vst [vmem:[#allocation70_spill] sm:$0xff] %v5605_v10  ;;  %v5607_v46 = vpop.permute.xlu0 %1178 }
 0x1e3   : > { %7969 = vst [vmem:[#allocation80_spill] sm:$0xff] %v5607_v46  ;;  %1356 = vrot.lane.b32.xlu1 %v7970_v20, %s4127_s5  ;;  %v7978_v46 = vld [vmem:[#allocation96_spill] sm:$0xff]  ;;  %v2432_v20 = vld [vmem:[%s7406_s2 + $0x18] sm:$0xff] }
 0x1e4   : > { %1354 = vrot.lane.b32.xlu0 %v7971_v12, %s4127_s5 }
 0x1e5   : > { %v5613_v33 = vpop.permute.xlu1 %1184 }
 0x1e6   : > { %7972 = vst [vmem:[#allocation74_spill] sm:$0xff] %v5613_v33  ;;  %v5615_v4 = vpop.permute.xlu0 %1182 }
 0x1e7   : > { %7973 = vst [vmem:[#allocation84_spill] sm:$0xff] %v5615_v4  ;;  %1360 = vrot.lane.b32.xlu1 %v7974_v25, %s4127_s5  ;;  %v7982_v4 = vld [vmem:[#allocation100_spill] sm:$0xff]  ;;  %v7983_v25 = vld [vmem:[#allocation94_spill] sm:$0xff] }
 0x1e8   : > { %1358 = vrot.lane.b32.xlu0 %v7975_v8, %s4127_s5 }
 0x1e9   : > { %v5621_v30 = vpop.permute.xlu1 %1188 }
 0x1ea   : > { %7976 = vst [vmem:[#allocation78_spill] sm:$0xff] %v5621_v30  ;;  %v5623_v10 = vpop.permute.xlu0 %1186 }
 0x1eb   : > { %7977 = vst [vmem:[#allocation82_spill] sm:$0xff] %v5623_v10  ;;  %1364 = vrot.lane.b32.xlu1 %v7978_v46, %s4127_s5  ;;  %v7986_v10 = vld [vmem:[#allocation104_spill] sm:$0xff]  ;;  %v7987_v46 = vld [vmem:[#allocation98_spill] sm:$0xff] }
 0x1ec   : > { %1362 = vrot.lane.b32.xlu0 %v7979_v11, %s4127_s5 }
 0x1ed   : > { %v5629_v13 = vpop.permute.xlu1 %1192 }
 0x1ee   : > { %7980 = vst [vmem:[#allocation232_spill] sm:$0xff] %v5629_v13  ;;  %v5631_v33 = vpop.permute.xlu0 %1190 }
 0x1ef   : > { %7981 = vst [vmem:[#allocation233_spill] sm:$0xff] %v5631_v33  ;;  %1368 = vrot.lane.b32.xlu1 %v7982_v4, %s4127_s5  ;;  %v7990_v33 = vld [vmem:[#allocation108_spill] sm:$0xff]  ;;  %v7991_v4 = vld [vmem:[#allocation102_spill] sm:$0xff] }
 0x1f0   : > { %1366 = vrot.lane.b32.xlu0 %v7983_v25, %s4127_s5 }
 0x1f1   : > { %v5637_v8 = vpop.permute.xlu1 %1196 }
 0x1f2   : > { %7984 = vst [vmem:[#allocation234_spill] sm:$0xff] %v5637_v8  ;;  %v5639_v30 = vpop.permute.xlu0 %1194 }
 0x1f3   : > { %7985 = vst [vmem:[#allocation235_spill] sm:$0xff] %v5639_v30  ;;  %1372 = vrot.lane.b32.xlu1 %v7986_v10, %s4127_s5  ;;  %v7994_v30 = vld [vmem:[#allocation112_spill] sm:$0xff]  ;;  %v7995_v10 = vld [vmem:[#allocation106_spill] sm:$0xff] }
 0x1f4   : > { %1370 = vrot.lane.b32.xlu0 %v7987_v46, %s4127_s5 }
 0x1f5   : > { %v5645_v11 = vpop.permute.xlu1 %1200 }
 0x1f6   : > { %7988 = vst [vmem:[#allocation236_spill] sm:$0xff] %v5645_v11  ;;  %v5647_v13 = vpop.permute.xlu0 %1198 }
 0x1f7   : > { %7989 = vst [vmem:[#allocation237_spill] sm:$0xff] %v5647_v13  ;;  %1376 = vrot.lane.b32.xlu1 %v7990_v33, %s4127_s5  ;;  %v7998_v13 = vld [vmem:[#allocation116_spill] sm:$0xff]  ;;  %v7999_v33 = vld [vmem:[#allocation110_spill] sm:$0xff] }
 0x1f8   : > { %1374 = vrot.lane.b32.xlu0 %v7991_v4, %s4127_s5 }
 0x1f9   : > { %v5653_v25 = vpop.permute.xlu1 %1204 }
 0x1fa   : > { %7992 = vst [vmem:[#allocation238_spill] sm:$0xff] %v5653_v25  ;;  %v5655_v8 = vpop.permute.xlu0 %1202 }
 0x1fb   : > { %7993 = vst [vmem:[#allocation239_spill] sm:$0xff] %v5655_v8  ;;  %1380 = vrot.lane.b32.xlu1 %v7994_v30, %s4127_s5  ;;  %v8002_v8 = vld [vmem:[#allocation120_spill] sm:$0xff]  ;;  %v8003_v30 = vld [vmem:[#allocation114_spill] sm:$0xff] }
 0x1fc   : > { %1378 = vrot.lane.b32.xlu0 %v7995_v10, %s4127_s5  ;;  %v8005_v10 = vld [vmem:[#allocation118_spill] sm:$0xff] }
 0x1fd   : > { %v5661_v46 = vpop.permute.xlu1 %1208 }
 0x1fe   : > { %7996 = vst [vmem:[#allocation240_spill] sm:$0xff] %v5661_v46  ;;  %v5663_v11 = vpop.permute.xlu0 %1206  ;;  %v2430_v46 = vld [vmem:[%s7406_s2 + $0x8] sm:$0xff] }
 0x1ff   : > { %7997 = vst [vmem:[#allocation241_spill] sm:$0xff] %v5663_v11  ;;  %1384 = vrot.lane.b32.xlu1 %v7998_v13, %s4127_s5  ;;  %v2429_v11 = vld [vmem:[%s7406_s2] sm:$0xff] }
 0x200   : > { %1382 = vrot.lane.b32.xlu0 %v7999_v33, %s4127_s5  ;;  %v3756_v33 = vpack.c.bf16 %v2430_v46, %v2429_v11 }
 0x201   : > { %v5669_v4 = vpop.permute.xlu1 %1212 }
 0x202   : > { %8000 = vst [vmem:[#allocation242_spill] sm:$0xff] %v5669_v4  ;;  %v5671_v25 = vpop.permute.xlu0 %1210  ;;  %3757 = vmatprep.subr.bf16.mxu0 %v3756_v33  ;;  %3764 = vmatprep.subr.bf16.mxu1 %v3756_v33 }
 0x203   : > { %8001 = vst [vmem:[#allocation243_spill] sm:$0xff] %v5671_v25  ;;  %1388 = vrot.lane.b32.xlu1 %v8002_v8, %s4127_s5  ;;  %v8004_v25 = vld [vmem:[#allocation124_spill] sm:$0xff]  ;;  %3759 = vmatpush3.bf16.msra.mxu0 %v3756_v33 }
 0x204   : > { %1386 = vrot.lane.b32.xlu0 %v8003_v30, %s4127_s5  ;;  %v2431_v30 = vld [vmem:[%s7406_s2 + $0x10] sm:$0xff]  ;;  %3767 = vmatpush3.bf16.msra.mxu1 %v3756_v33  ;;  %v8013_v33 = vld [vmem:[#allocation126_spill] sm:$0xff] }
 0x205   : > { %v5683_v13 = vpop.permute.xlu1 %1216  ;;  %v3760_v11 = vpack.c.bf16 %v2432_v20, %v2431_v30  ;;  %v2433_v20 = vld [vmem:[%s7406_s2 + $0x20] sm:$0xf]  ;;  %v8012_v30 = vld [vmem:[#allocation132_spill] sm:$0xff] }
 0x206   : > { %v5685_v4 = vpop.permute.xlu0 %1214 }
 0x207   : > { %1392 = vrot.lane.b32.xlu1 %v8004_v25, %s4127_s5  ;;  %3761 = vmatprep.subr.bf16.mxu0 %v3760_v11 }
 0x208   : > { %1390 = vrot.lane.b32.xlu0 %v8005_v10, %s4127_s5  ;;  %3763 = vmatpush3.bf16.msra.mxu0 %v3760_v11 }
 0x209   : > { %v5697_v59 = vpop.permute.xlu1 %1220  ;;  %3765 = vmatprep.subr.bf16.mxu1 %v3760_v11  ;;  %3673 = vmatprep.subr.msk.mxu0 %vm2604_vm2, %v2433_v20 }
 0x20a   : > { %8006 = vst [vmem:[#allocation120_spill] sm:$0xff] %v5697_v59  ;;  %v5699_v46 = vpop.permute.xlu0 %1218  ;;  %3768 = vmatpush3.bf16.msra.mxu1 %v3760_v11  ;;  %v5726_v11 = vld [vmem:[%s4182_s22 + $0x30] sm:$0xff] }
 0x20b   : > { %8007 = vst [vmem:[#allocation124_spill] sm:$0xff] %v5699_v46  ;;  %1396 = vrot.lane.b32.xlu1 %v8008_v36, %s4127_s5  ;;  %3766 = vmatprep.subr.msk.mxu1 %vm2604_vm2, %v2433_v20 }
 0x20c   : > { %1394 = vrot.lane.b32.xlu0 %v8009_v49, %s4127_s5  ;;  %3674 = vmatpush3.msk.msra.mxu0 %vm2604_vm2, %v2433_v20 }
 0x20d   : > { %v5705_v28 = vpop.permute.xlu1 %1224 }
 0x20e   : > { %8010 = vst [vmem:[#allocation118_spill] sm:$0xff] %v5705_v28  ;;  %v5707_v23 = vpop.permute.xlu0 %1222  ;;  %3769 = vmatpush3.msk.msra.mxu1 %vm2604_vm2, %v2433_v20 }
 0x20f   : > { %8011 = vst [vmem:[#allocation128_spill] sm:$0xff] %v5707_v23  ;;  %1400 = vrot.lane.b32.xlu1 %v8012_v30, %s4127_s5  ;;  %v5721_v23 = vld [vmem:[%s4182_s22 + $0x38] sm:$0xff] }
 0x210   : > { %1398 = vrot.lane.b32.xlu0 %v8013_v33, %s4127_s5 }
 0x211   : > { %v5716_v59 = vpop.permute.xlu1 %1228 }
 0x212   : > { %8014 = vst [vmem:[#allocation122_spill] sm:$0xff] %v5716_v59  ;;  %v5718_v28 = vpop.permute.xlu0 %1226 }
 0x213   : > { %8015 = vst [vmem:[#allocation132_spill] sm:$0xff] %v5718_v28  ;;  %1492 = vrot.lane.b32.xlu1 %v5721_v23, %s4128_s20 }
 0x214   : > { %1490 = vrot.lane.b32.xlu0 %v5726_v11, %s4128_s20 }
 0x215   : > { %v5730_v46 = vpop.permute.xlu1 %1232 }
 0x216   : > { %8016 = vst [vmem:[#allocation126_spill] sm:$0xff] %v5730_v46  ;;  %v5732_v59 = vpop.permute.xlu0 %1230 }
 0x217   : > { %8017 = vst [vmem:[#allocation244_spill] sm:$0xff] %v5732_v59  ;;  %1661 = vrot.lane.b32.xlu1 %v7848_v27, %s4129_s21  ;;  %v5751_v27 = vld [vmem:[%s4182_s22 + $0x110] sm:$0xff] }
 0x218   : > { %1659 = vrot.lane.b32.xlu0 %v7845_v58, %s4129_s21  ;;  %v5756_v58 = vld [vmem:[%s4182_s22 + $0x40] sm:$0xff] }
 0x219   : > { %v5738_v20 = vpop.permute.xlu1 %1236 }
 0x21a   : > { %8018 = vst [vmem:[#allocation245_spill] sm:$0xff] %v5738_v20  ;;  %v5740_v28 = vpop.permute.xlu0 %1234 }
 0x21b   : > { %8019 = vst [vmem:[#allocation246_spill] sm:$0xff] %v5740_v28  ;;  %1829 = vrot.lane.b32.xlu1 %v7952_v60, %s4130_s23  ;;  %v5765_v28 = vld [vmem:[%s4182_s22 + $0x118] sm:$0xff] }
 0x21c   : > { %1827 = vrot.lane.b32.xlu0 %v7949_v62, %s4130_s23  ;;  %v5770_v62 = vld [vmem:[%s4182_s22 + $0x48] sm:$0xff] }
 0x21d   : > { %v5746_v46 = vpop.permute.xlu1 %1240 }
 0x21e   : > { %8020 = vst [vmem:[#allocation247_spill] sm:$0xff] %v5746_v46  ;;  %v5748_v59 = vpop.permute.xlu0 %1238 }
 0x21f   : > { %8021 = vst [vmem:[#allocation248_spill] sm:$0xff] %v5748_v59  ;;  %1546 = vrot.lane.b32.xlu1 %v5751_v27, %s4128_s20 }
 0x220   : > { %1494 = vrot.lane.b32.xlu0 %v5756_v58, %s4128_s20 }
 0x221   : > { %v5760_v20 = vpop.permute.xlu1 %1244 }
 0x222   : > { %8022 = vst [vmem:[#allocation249_spill] sm:$0xff] %v5760_v20  ;;  %v5762_v60 = vpop.permute.xlu0 %1242 }
 0x223   : > { %8023 = vst [vmem:[#allocation250_spill] sm:$0xff] %v5762_v60  ;;  %1548 = vrot.lane.b32.xlu1 %v5765_v28, %s4128_s20 }
 0x224   : > { %1496 = vrot.lane.b32.xlu0 %v5770_v62, %s4128_s20 }
 0x225   : > { %v5774_v46 = vpop.permute.xlu1 %1248 }
 0x226   : > { %8024 = vst [vmem:[#allocation251_spill] sm:$0xff] %v5774_v46  ;;  %v5776_v59 = vpop.permute.xlu0 %1246 }
 0x227   : > { %8025 = vst [vmem:[#allocation252_spill] sm:$0xff] %v5776_v59  ;;  %1715 = vrot.lane.b32.xlu1 %v7897_v45, %s4129_s21 }
 0x228   : > { %1663 = vrot.lane.b32.xlu0 %v7847_v39, %s4129_s21 }
 0x229   : > { %v5782_v20 = vpop.permute.xlu1 %1252 }
 0x22a   : > { %8026 = vst [vmem:[#allocation253_spill] sm:$0xff] %v5782_v20  ;;  %v5784_v60 = vpop.permute.xlu0 %1250 }
 0x22b   : > { %8027 = vst [vmem:[#allocation254_spill] sm:$0xff] %v5784_v60  ;;  %1717 = vrot.lane.b32.xlu1 %v7900_v37, %s4129_s21 }
 0x22c   : > { %1665 = vrot.lane.b32.xlu0 %v7850_v6, %s4129_s21 }
 0x22d   : > { %v5790_v46 = vpop.permute.xlu1 %1256 }
 0x22e   : > { %8028 = vst [vmem:[#allocation255_spill] sm:$0xff] %v5790_v46  ;;  %v5792_v59 = vpop.permute.xlu0 %1254  ;;  %v5811_v46 = vld [vmem:[%s4182_s22 + $0x120] sm:$0xff] }
 0x22f   : > { %8029 = vst [vmem:[#allocation256_spill] sm:$0xff] %v5792_v59  ;;  %1883 = vrot.lane.b32.xlu1 %v8002_v8, %s4130_s23  ;;  %v5816_v8 = vld [vmem:[%s4182_s22 + $0x50] sm:$0xff] }
 0x230   : > { %1831 = vrot.lane.b32.xlu0 %v7951_v26, %s4130_s23 }
 0x231   : > { %v5798_v45 = vpop.permute.xlu1 %1260 }
 0x232   : > { %8030 = vst [vmem:[#allocation257_spill] sm:$0xff] %v5798_v45  ;;  %v5800_v39 = vpop.permute.xlu0 %1258  ;;  %v5825_v45 = vld [vmem:[%s4182_s22 + $0x128] sm:$0xff] }
 0x233   : > { %8031 = vst [vmem:[#allocation258_spill] sm:$0xff] %v5800_v39  ;;  %1885 = vrot.lane.b32.xlu1 %v8005_v10, %s4130_s23  ;;  %8034 = vst [vmem:[#allocation261_spill] sm:$0xff] %v5825_v45 }
 0x234   : > { %1833 = vrot.lane.b32.xlu0 %v7955_v38, %s4130_s23  ;;  %v5830_v38 = vld [vmem:[%s4182_s22 + $0x58] sm:$0xff] }
 0x235   : > { %v5806_v37 = vpop.permute.xlu1 %1264  ;;  %8035 = vst [vmem:[#allocation262_spill] sm:$0xff] %v5830_v38 }
 0x236   : > { %8032 = vst [vmem:[#allocation259_spill] sm:$0xff] %v5806_v37  ;;  %v5808_v6 = vpop.permute.xlu0 %1262 }
 0x237   : > { %8033 = vst [vmem:[#allocation260_spill] sm:$0xff] %v5808_v6  ;;  %1550 = vrot.lane.b32.xlu1 %v5811_v46, %s4128_s20 }
 0x238   : > { %1498 = vrot.lane.b32.xlu0 %v5816_v8, %s4128_s20 }
 0x239   : > { %v5820_v26 = vpop.permute.xlu1 %1328 }
 0x23a   : > { %v5822_v10 = vpop.permute.xlu0 %1326 }
 0x23b   : > { %1552 = vrot.lane.b32.xlu1 %v5825_v45, %s4128_s20  ;;  %v5871_v45 = vld [vmem:[%s4182_s22 + $0x130] sm:$0xff] }
 0x23c   : > { %1500 = vrot.lane.b32.xlu0 %v5830_v38, %s4128_s20  ;;  %8037 = vst [vmem:[#allocation264_spill] sm:$0xff] %v5871_v45  ;;  %v5885_v38 = vld [vmem:[%s4182_s22 + $0x138] sm:$0xff] }
 0x23d   : > { %v5834_v6 = vpop.permute.xlu1 %1332  ;;  %8040 = vst [vmem:[#allocation267_spill] sm:$0xff] %v5885_v38 }
 0x23e   : > { %v5836_v37 = vpop.permute.xlu0 %1330 }
 0x23f   : > { %1719 = vrot.lane.b32.xlu1 %v7899_v44, %s4129_s21 }
 0x240   : > { %1667 = vrot.lane.b32.xlu0 %v7849_v16, %s4129_s21 }
 0x241   : > { %v5842_v39 = vpop.permute.xlu1 %1336 }
 0x242   : > { %v5844_v59 = vpop.permute.xlu0 %1334 }
 0x243   : > { %1721 = vrot.lane.b32.xlu1 %v7904_v31, %s4129_s21 }
 0x244   : > { %1669 = vrot.lane.b32.xlu0 %v7854_v29, %s4129_s21 }
 0x245   : > { %v5850_v20 = vpop.permute.xlu1 %1340 }
 0x246   : > { %v5852_v60 = vpop.permute.xlu0 %1338 }
 0x247   : > { %1887 = vrot.lane.b32.xlu1 %v8004_v25, %s4130_s23 }
 0x248   : > { %1835 = vrot.lane.b32.xlu0 %v7954_v21, %s4130_s23  ;;  %v5876_v21 = vld [vmem:[%s4182_s22 + $0x60] sm:$0xff] }
 0x249   : > { %v5858_v16 = vpop.permute.xlu1 %1344 }
 0x24a   : > { %v5860_v44 = vpop.permute.xlu0 %1342 }
 0x24b   : > { %1889 = vrot.lane.b32.xlu1 %v8009_v49, %s4130_s23 }
 0x24c   : > { %1837 = vrot.lane.b32.xlu0 %v7959_v57, %s4130_s23  ;;  %v5890_v57 = vld [vmem:[%s4182_s22 + $0x68] sm:$0xff] }
 0x24d   : > { %v5866_v29 = vpop.permute.xlu1 %1348  ;;  %8041 = vst [vmem:[#allocation268_spill] sm:$0xff] %v5890_v57 }
 0x24e   : > { %8036 = vst [vmem:[#allocation263_spill] sm:$0xff] %v5866_v29  ;;  %v5868_v31 = vpop.permute.xlu0 %1346 }
 0x24f   : > { %1554 = vrot.lane.b32.xlu1 %v5871_v45, %s4128_s20 }
 0x250   : > { %1502 = vrot.lane.b32.xlu0 %v5876_v21, %s4128_s20 }
 0x251   : > { %v5880_v25 = vpop.permute.xlu1 %1352 }
 0x252   : > { %8038 = vst [vmem:[#allocation265_spill] sm:$0xff] %v5880_v25  ;;  %v5882_v49 = vpop.permute.xlu0 %1350 }
 0x253   : > { %8039 = vst [vmem:[#allocation266_spill] sm:$0xff] %v5882_v49  ;;  %1556 = vrot.lane.b32.xlu1 %v5885_v38, %s4128_s20 }
 0x254   : > { %1504 = vrot.lane.b32.xlu0 %v5890_v57, %s4128_s20 }
 0x255   : > { %v5894_v45 = vpop.permute.xlu1 %1356 }
 0x256   : > { %8042 = vst [vmem:[#allocation269_spill] sm:$0xff] %v5894_v45  ;;  %v5896_v29 = vpop.permute.xlu0 %1354 }
 0x257   : > { %8043 = vst [vmem:[#allocation270_spill] sm:$0xff] %v5896_v29  ;;  %1723 = vrot.lane.b32.xlu1 %v7903_v22, %s4129_s21 }
 0x258   : > { %1671 = vrot.lane.b32.xlu0 %v7853_v0, %s4129_s21 }
 0x259   : > { %v5902_v25 = vpop.permute.xlu1 %1360 }
 0x25a   : > { %8044 = vst [vmem:[#allocation271_spill] sm:$0xff] %v5902_v25  ;;  %v5904_v38 = vpop.permute.xlu0 %1358 }
 0x25b   : > { %8045 = vst [vmem:[#allocation272_spill] sm:$0xff] %v5904_v38  ;;  %1725 = vrot.lane.b32.xlu1 %v7908_v42, %s4129_s21  ;;  %v6007_v38 = vld [vmem:[%s4182_s22 + $0x88] sm:$0xff] }
 0x25c   : > { %1673 = vrot.lane.b32.xlu0 %v7858_v34, %s4129_s21  ;;  %8063 = vst [vmem:[#allocation288_spill] sm:$0xff] %v6007_v38 }
 0x25d   : > { %v5910_v45 = vpop.permute.xlu1 %1364 }
 0x25e   : > { %8046 = vst [vmem:[#allocation273_spill] sm:$0xff] %v5910_v45  ;;  %v5912_v29 = vpop.permute.xlu0 %1362  ;;  %v5931_v45 = vld [vmem:[%s4182_s22 + $0x140] sm:$0xff] }
 0x25f   : > { %8047 = vst [vmem:[#allocation274_spill] sm:$0xff] %v5912_v29  ;;  %1891 = vrot.lane.b32.xlu1 %v8008_v36, %s4130_s23  ;;  %8052 = vst [vmem:[#allocation279_spill] sm:$0xff] %v5931_v45  ;;  %v5936_v36 = vld [vmem:[%s4182_s22 + $0x70] sm:$0xff] }
 0x260   : > { %1839 = vrot.lane.b32.xlu0 %v7958_v32, %s4130_s23  ;;  %8053 = vst [vmem:[#allocation280_spill] sm:$0xff] %v5936_v36 }
 0x261   : > { %v5918_v22 = vpop.permute.xlu1 %1368 }
 0x262   : > { %8048 = vst [vmem:[#allocation275_spill] sm:$0xff] %v5918_v22  ;;  %v5920_v0 = vpop.permute.xlu0 %1366  ;;  %v5945_v22 = vld [vmem:[%s4182_s22 + $0x148] sm:$0xff] }
 0x263   : > { %8049 = vst [vmem:[#allocation276_spill] sm:$0xff] %v5920_v0  ;;  %1893 = vrot.lane.b32.xlu1 %v8013_v33, %s4130_s23  ;;  %8056 = vst [vmem:[#allocation283_spill] sm:$0xff] %v5945_v22 }
 0x264   : > { %1841 = vrot.lane.b32.xlu0 %v7963_v43, %s4130_s23  ;;  %v5950_v43 = vld [vmem:[%s4182_s22 + $0x78] sm:$0xff] }
 0x265   : > { %v5926_v42 = vpop.permute.xlu1 %1372  ;;  %8057 = vst [vmem:[#allocation284_spill] sm:$0xff] %v5950_v43 }
 0x266   : > { %8050 = vst [vmem:[#allocation277_spill] sm:$0xff] %v5926_v42  ;;  %v5928_v34 = vpop.permute.xlu0 %1370 }
 0x267   : > { %8051 = vst [vmem:[#allocation278_spill] sm:$0xff] %v5928_v34  ;;  %1558 = vrot.lane.b32.xlu1 %v5931_v45, %s4128_s20  ;;  %v4042_v45 = vld [vmem:[%s4182_s22] sm:$0xff] }
 0x268   : > { %1506 = vrot.lane.b32.xlu0 %v5936_v36, %s4128_s20 }
 0x269   : > { %v5940_v32 = vpop.permute.xlu1 %1376 }
 0x26a   : > { %8054 = vst [vmem:[#allocation281_spill] sm:$0xff] %v5940_v32  ;;  %v5942_v33 = vpop.permute.xlu0 %1374 }
 0x26b   : > { %8055 = vst [vmem:[#allocation282_spill] sm:$0xff] %v5942_v33  ;;  %1560 = vrot.lane.b32.xlu1 %v5945_v22, %s4128_s20 }
 0x26c   : > { %1508 = vrot.lane.b32.xlu0 %v5950_v43, %s4128_s20  ;;  %v4041_v43 = vld [vmem:[%s4182_s22 + $0x8] sm:$0xff] }
 0x26d   : > { %v5954_v42 = vpop.permute.xlu1 %1380 }
 0x26e   : > { %8058 = vst [vmem:[#allocation285_spill] sm:$0xff] %v5954_v42  ;;  %v5956_v34 = vpop.permute.xlu0 %1378 }
 0x26f   : > { %8059 = vst [vmem:[#allocation286_spill] sm:$0xff] %v5956_v34  ;;  %1727 = vrot.lane.b32.xlu1 %v7907_v15, %s4129_s21 }
 0x270   : > { %1675 = vrot.lane.b32.xlu0 %v7857_v61, %s4129_s21 }
 0x271   : > { %v5962_v33 = vpop.permute.xlu1 %1384 }
 0x272   : > { %v5964_v32 = vpop.permute.xlu0 %1382 }
 0x273   : > { %1729 = vrot.lane.b32.xlu1 %v7912_v9, %s4129_s21  ;;  %v8060_v9 = vld [vmem:[#allocation130_spill] sm:$0xff] }
 0x274   : > { %1677 = vrot.lane.b32.xlu0 %v7862_v47, %s4129_s21 }
 0x275   : > { %v5970_v42 = vpop.permute.xlu1 %1388 }
 0x276   : > { %v5972_v34 = vpop.permute.xlu0 %1386 }
 0x277   : > { %1895 = vrot.lane.b32.xlu1 %v8012_v30, %s4130_s23  ;;  %v5991_v30 = vld [vmem:[%s4182_s22 + $0x150] sm:$0xff] }
 0x278   : > { %1843 = vrot.lane.b32.xlu0 %v7962_v40, %s4130_s23  ;;  %8061 = vst [vmem:[#allocation130_spill] sm:$0xff] %v5991_v30  ;;  %v5996_v40 = vld [vmem:[%s4182_s22 + $0x80] sm:$0xff] }
 0x279   : > { %v5978_v61 = vpop.permute.xlu1 %1392  ;;  %8062 = vst [vmem:[#allocation287_spill] sm:$0xff] %v5996_v40 }
 0x27a   : > { %v5980_v15 = vpop.permute.xlu0 %1390 }
 0x27b   : > { %1897 = vrot.lane.b32.xlu1 %v8060_v9, %s4130_s23 }
 0x27c   : > { %1845 = vrot.lane.b32.xlu0 %v7967_v50, %s4130_s23  ;;  %v4039_v50 = vld [vmem:[%s4182_s22 + $0x158] sm:$0xff] }
 0x27d   : > { %v5986_v47 = vpop.permute.xlu1 %1396 }
 0x27e   : > { %v5988_v0 = vpop.permute.xlu0 %1394 }
 0x27f   : > { %1562 = vrot.lane.b32.xlu1 %v5991_v30, %s4128_s20 }
 0x280   : > { %1510 = vrot.lane.b32.xlu0 %v5996_v40, %s4128_s20  ;;  %v8064_v40 = vld [vmem:[#allocation65_spill] sm:$0xff] }
 0x281   : > { %v6000_v29 = vpop.permute.xlu1 %1400  ;;  %v1991_v36 = vsel %vm1989_vm3, %v4041_v43, %v8064_v40 }
 0x282   : > { %v6002_v25 = vpop.permute.xlu0 %1398 }
 0x283   : > { %1564 = vrot.lane.b32.xlu1 %v4039_v50, %s4128_s20  ;;  %v8065_v50 = vld [vmem:[#allocation61_spill] sm:$0xff] }
 0x284   : > { %1512 = vrot.lane.b32.xlu0 %v6007_v38, %s4128_s20  ;;  %v1990_v49 = vsel %vm1989_vm3, %v4042_v45, %v8065_v50  ;;  %v2046_v38 = vsel %vm2044_vm4, %v1991_v36, %v5108_v3 }
 0x285   : > { %v1493_v30 = vpop.permute.xlu1 %1492  ;;  %v2045_v57 = vsel %vm2044_vm4, %v1990_v49, %v5110_v5  ;;  %v2101_v43 = vsel %vm2099_vm5, %v2046_v38, %v5330_v41  ;;  %v8066_v49 = vld [vmem:[#allocation136_spill] sm:$0xff] }
 0x286   : > { %v1491_v22 = vpop.permute.xlu0 %1490  ;;  %v2156_v45 = vsel %vm2154_vm6, %v2101_v43, %v5565_v54 }
 0x287   : > { %1731 = vrot.lane.b32.xlu1 %v7911_v24, %s4129_s21  ;;  %v2100_v24 = vsel %vm2099_vm5, %v2045_v57, %v5332_v63 }
 0x288   : > { %1679 = vrot.lane.b32.xlu0 %v7861_v55, %s4129_s21  ;;  %v2155_v36 = vsel %vm2154_vm6, %v2100_v24, %v5567_v19  ;;  %v2211_v55 = vsel %vm2209_vm7, %v2156_v45, %v5820_v26  ;;  %v8068_v24 = vld [vmem:[#allocation117_spill] sm:$0xff]  ;;  %v4044_v45 = vld [vmem:[%s4182_s22 + $0x160] sm:$0xff] }
 0x289   : > { %v1662_v40 = vpop.permute.xlu1 %1661  ;;  %v2210_v5 = vsel %vm2209_vm7, %v2155_v36, %v5822_v10  ;;  %v2266_v63 = vsel %vm2264_vm8, %v2211_v55, %v1493_v30 }
 0x28a   : > { %v1660_v3 = vpop.permute.xlu0 %1659  ;;  %v2265_v54 = vsel %vm2264_vm8, %v2210_v5, %v1491_v22  ;;  %v2321_v41 = vsel %vm2319_vm9, %v2266_v63, %v1662_v40  ;;  %v6062_v40 = vld [vmem:[%s4182_s22 + $0xe0] sm:$0xff]  ;;  %v4046_v5 = vld [vmem:[%s4182_s22 + $0x90] sm:$0xff] }
 0x28b   : > { %1733 = vrot.lane.b32.xlu1 %v7916_v14, %s4129_s21  ;;  %v2320_v26 = vsel %vm2319_vm9, %v2265_v54, %v1660_v3  ;;  %v8069_v3 = vld [vmem:[#allocation59_spill] sm:$0xff] }
 0x28c   : > { %1681 = vrot.lane.b32.xlu0 %v7866_v53, %s4129_s21 }
 0x28d   : > { %v1830_v19 = vpop.permute.xlu1 %1829 }
 0x28e   : > { %v2376_v38 = vsel %vm2374_vm10, %v2321_v41, %v1830_v19  ;;  %v1828_v14 = vpop.permute.xlu0 %1827 }
 0x28f   : > { %1899 = vrot.lane.b32.xlu1 %v8066_v49, %s4130_s23  ;;  %v2375_v10 = vsel %vm2374_vm10, %v2320_v26, %v1828_v14  ;;  %v6085_v14 = vld [vmem:[%s4182_s22 + $0xe8] sm:$0xff] }
 0x290   : > { %1847 = vrot.lane.b32.xlu0 %v7966_v35, %s4130_s23  ;;  %3675 = vmatprep.mubr.msk.f32.mxu0 %vm2441_vm11, %v2375_v10  ;;  %v8067_v35 = vld [vmem:[#allocation134_spill] sm:$0xff]  ;;  %v4048_v10 = vld [vmem:[%s4182_s22 + $0x168] sm:$0xff] }
 0x291   : > { %3676 = vmatmul.mubr.msk.f32.vlgmr.msra.gmra.mrb[0].mxu0 %vm2441_vm11, %v2376_v38  ;;  %v1547_v53 = vpop.permute.xlu1 %1546 }
 0x292   : > { %v1495_v57 = vpop.permute.xlu0 %1494 }
 0x293   : > { %1849 = vrot.lane.b32.xlu1 %v7971_v12, %s4130_s23  ;;  %v2018_v12 = vsel %vm1989_vm3, %v6062_v40, %v8068_v24  ;;  %v8071_v24 = vld [vmem:[#allocation63_spill] sm:$0xff] }
 0x294   : > { %1402 = vrot.lane.b32.xlu0 %v8060_v9, %s4127_s5  ;;  %v4045_v9 = vld [vmem:[%s4182_s22 + $0x10] sm:$0xff]  ;;  %v2073_v55 = vsel %vm2044_vm4, %v2018_v12, %v5222_v52  ;;  %v8070_v52 = vld [vmem:[#allocation115_spill] sm:$0xff] }
 0x295   : > { %v1549_v22 = vpop.permute.xlu1 %1548  ;;  %v1992_v36 = vsel %vm1989_vm3, %v4045_v9, %v8069_v3  ;;  %v2128_v54 = vsel %vm2099_vm5, %v2073_v55, %v5444_v48  ;;  %v4050_v3 = vld [vmem:[%s4182_s22 + $0x98] sm:$0xff] }
 0x296   : > { %v1497_v30 = vpop.permute.xlu0 %1496  ;;  %v2047_v63 = vsel %vm2044_vm4, %v1992_v36, %v5118_v7  ;;  %v2183_v26 = vsel %vm2154_vm6, %v2128_v54, %v5685_v4 }
 0x297   : > { %1404 = vrot.lane.b32.xlu1 %v8066_v49, %s4127_s5  ;;  %v2102_v19 = vsel %vm2099_vm5, %v2047_v63, %v5340_v17  ;;  %v2019_v49 = vsel %vm1989_vm3, %v6085_v14, %v8070_v52  ;;  %v2238_v48 = vsel %vm2209_vm7, %v2183_v26, %v5964_v32  ;;  %v4049_v17 = vld [vmem:[%s4182_s22 + $0x18] sm:$0xff] }
 0x298   : > { %1901 = vrot.lane.b32.xlu0 %v8067_v35, %s4130_s23  ;;  %v2157_v7 = vsel %vm2154_vm6, %v2102_v19, %v5575_v18  ;;  %v1993_v4 = vsel %vm1989_vm3, %v4049_v17, %v8071_v24  ;;  %v2074_v12 = vsel %vm2044_vm4, %v2019_v49, %v5220_v51  ;;  %v2293_v9 = vsel %vm2264_vm8, %v2238_v48, %v1547_v53  ;;  %v8078_v17 = vld [vmem:[#allocation88_spill] sm:$0xff] }
 0x299   : > { %v1716_v50 = vpop.permute.xlu1 %1715  ;;  %v2048_v18 = vsel %vm2044_vm4, %v1993_v4, %v5116_v1  ;;  %v2129_v32 = vsel %vm2099_vm5, %v2074_v12, %v5442_v56  ;;  %v8072_v1 = vld [vmem:[#allocation64_spill] sm:$0xff]  ;;  %v8079_v12 = vld [vmem:[#allocation86_spill] sm:$0xff] }
 0x29a   : > { %v1664_v43 = vpop.permute.xlu0 %1663  ;;  %v2348_v55 = vsel %vm2319_vm9, %v2293_v9, %v1716_v50  ;;  %v2103_v51 = vsel %vm2099_vm5, %v2048_v18, %v5338_v2  ;;  %v8073_v50 = vld [vmem:[#allocation44_spill] sm:$0xff]  ;;  %v8080_v18 = vld [vmem:[#allocation121_spill] sm:$0xff] }
 0x29b   : > { %1566 = vrot.lane.b32.xlu1 %v4044_v45, %s4128_s20  ;;  %v2212_v45 = vsel %vm2209_vm7, %v2157_v7, %v5836_v37  ;;  %v2184_v37 = vsel %vm2154_vm6, %v2129_v32, %v5683_v13  ;;  %v2158_v19 = vsel %vm2154_vm6, %v2103_v51, %v8072_v1  ;;  %v8082_v51 = vld [vmem:[#allocation185_spill] sm:$0xff] }
 0x29c   : > { %1514 = vrot.lane.b32.xlu0 %v4046_v5, %s4128_s20  ;;  %v2267_v36 = vsel %vm2264_vm8, %v2212_v45, %v1495_v57  ;;  %v2239_v56 = vsel %vm2209_vm7, %v2184_v37, %v5962_v33  ;;  %v2213_v13 = vsel %vm2209_vm7, %v2158_v19, %v5834_v6  ;;  %v8083_v37 = vld [vmem:[#allocation138_spill] sm:$0xff] }
 0x29d   : > { %v1718_v41 = vpop.permute.xlu1 %1717  ;;  %v2322_v53 = vsel %vm2319_vm9, %v2267_v36, %v1664_v43  ;;  %v2294_v2 = vsel %vm2264_vm8, %v2239_v56, %v1549_v22  ;;  %v8074_v43 = vld [vmem:[#allocation18_spill] sm:$0xff]  ;;  %v2268_v26 = vsel %vm2264_vm8, %v2213_v13, %v1497_v30  ;;  %v8075_v22 = vld [vmem:[#allocation43_spill] sm:$0xff] }
 0x29e   : > { %v1666_v38 = vpop.permute.xlu0 %1665  ;;  %v2349_v33 = vsel %vm2319_vm9, %v2294_v2, %v1718_v41  ;;  %v4052_v36 = vld [vmem:[%s4182_s22 + $0x20] sm:$0xff]  ;;  %v8086_v56 = vld [vmem:[#allocation3_spill] sm:$0xff] }
 0x29f   : > { %1568 = vrot.lane.b32.xlu1 %v4048_v10, %s4128_s20  ;;  %v2323_v49 = vsel %vm2319_vm9, %v2268_v26, %v1666_v38  ;;  %v8076_v10 = vld [vmem:[#allocation17_spill] sm:$0xff]  ;;  %v8077_v38 = vld [vmem:[#allocation140_spill] sm:$0xff]  ;;  %v8088_v26 = vld [vmem:[#allocation119_spill] sm:$0xff] }
 0x2a0   : > { %1516 = vrot.lane.b32.xlu0 %v4050_v3, %s4128_s20  ;;  %v6152_v3 = vld [vmem:[%s4182_s22 + $0xf0] sm:$0xff] }
 0x2a1   : > { %v1884_v5 = vpop.permute.xlu1 %1883  ;;  %v2020_v32 = vsel %vm1989_vm3, %v6152_v3, %v8080_v18 }
 0x2a2   : > { %v1832_v63 = vpop.permute.xlu0 %1831  ;;  %v2403_v54 = vsel %vm2374_vm10, %v2348_v55, %v1884_v5  ;;  %v8081_v55 = vld [vmem:[#allocation69_spill] sm:$0xff] }
 0x2a3   : > { %v2377_v57 = vsel %vm2374_vm10, %v2322_v53, %v1832_v63  ;;  %1735 = vrot.lane.b32.xlu1 %v8073_v50, %s4129_s21  ;;  %3717 = vmatprep.mubr.msk.f32.mxu1 %vm2441_vm11, %v2403_v54  ;;  %v1994_v5 = vsel %vm1989_vm3, %v4052_v36, %v8081_v55  ;;  %v8084_v53 = vld [vmem:[#allocation161_spill] sm:$0xff]  ;;  %v8085_v54 = vld [vmem:[#allocation36_spill] sm:$0xff]  ;;  %v8093_v55 = vld [vmem:[#allocation34_spill] sm:$0xff] }
 0x2a4   : > { %1683 = vrot.lane.b32.xlu0 %v8074_v43, %s4129_s21  ;;  %3678 = vmatprep.mubr.msk.f32.mxu0 %vm2441_vm11, %v2377_v57  ;;  %v2049_v63 = vsel %vm2044_vm4, %v1994_v5, %v8084_v53  ;;  %v8087_v50 = vld [vmem:[#allocation124_spill] sm:$0xff]  ;;  %v6175_v43 = vld [vmem:[%s4182_s22 + $0xf8] sm:$0xff] }
 0x2a5   : > { %v1886_v52 = vpop.permute.xlu1 %1885  ;;  %v2104_v57 = vsel %vm2099_vm5, %v2049_v63, %v8086_v56  ;;  %v8094_v63 = vld [vmem:[#allocation6_spill] sm:$0xff] }
 0x2a6   : > { %v2404_v7 = vsel %vm2374_vm10, %v2349_v33, %v1886_v52  ;;  %v1834_v48 = vpop.permute.xlu0 %1833  ;;  %v2021_v33 = vsel %vm1989_vm3, %v6175_v43, %v8088_v26  ;;  %v8089_v52 = vld [vmem:[#allocation68_spill] sm:$0xff]  ;;  %v4057_v26 = vld [vmem:[%s4182_s22 + $0x178] sm:$0xff] }
 0x2a7   : > { %v2378_v6 = vsel %vm2374_vm10, %v2323_v49, %v1834_v48  ;;  %1737 = vrot.lane.b32.xlu1 %v8075_v22, %s4129_s21  ;;  %3718 = vmatmul.mubr.msk.f32.vlgmr.msra.gmra.mrb[0].mxu1 %vm2441_vm11, %v2404_v7  ;;  %v2159_v49 = vsel %vm2154_vm6, %v2104_v57, %v8089_v52  ;;  %v4054_v48 = vld [vmem:[%s4182_s22 + $0x170] sm:$0xff]  ;;  %v8090_v22 = vld [vmem:[#allocation67_spill] sm:$0xff] }
 0x2a8   : > { %1685 = vrot.lane.b32.xlu0 %v8076_v10, %s4129_s21  ;;  %3679 = vmatmul.mubr.msk.f32.gmra.mrb[2].mxu0 %vm2441_vm11, %v2378_v6  ;;  %v4055_v6 = vld [vmem:[%s4182_s22 + $0x28] sm:$0xff] }
 0x2a9   : > { %v1551_v30 = vpop.permute.xlu1 %1550  ;;  %v1995_v10 = vsel %vm1989_vm3, %v4055_v6, %v8090_v22  ;;  %v4058_v52 = vld [vmem:[%s4182_s22 + $0xa8] sm:$0xff] }
 0x2aa   : > { %v1499_v41 = vpop.permute.xlu0 %1498 }
 0x2ab   : > { %1903 = vrot.lane.b32.xlu1 %v8077_v38, %s4130_s23 }
 0x2ac   : > { %1851 = vrot.lane.b32.xlu0 %v8078_v17, %s4130_s23 }
 0x2ad   : > { %v1553_v24 = vpop.permute.xlu1 %1552 }
 0x2ae   : > { %v1501_v4 = vpop.permute.xlu0 %1500 }
 0x2af   : > { %1853 = vrot.lane.b32.xlu1 %v8079_v12, %s4130_s23  ;;  %v2214_v12 = vsel %vm2209_vm7, %v2159_v49, %v5844_v59 }
 0x2b0   : > { %1406 = vrot.lane.b32.xlu0 %v8067_v35, %s4127_s5  ;;  %v2075_v35 = vsel %vm2044_vm4, %v2020_v32, %v8082_v51  ;;  %v4056_v32 = vld [vmem:[%s4182_s22 + $0xa0] sm:$0xff]  ;;  %v2269_v51 = vsel %vm2264_vm8, %v2214_v12, %v1499_v41 }
 0x2b1   : > { %v1720_v45 = vpop.permute.xlu1 %1719  ;;  %v2130_v1 = vsel %vm2099_vm5, %v2075_v35, %v8085_v54 }
 0x2b2   : > { %v1668_v9 = vpop.permute.xlu0 %1667  ;;  %v2185_v13 = vsel %vm2154_vm6, %v2130_v1, %v8087_v50  ;;  %v8096_v50 = vld [vmem:[#allocation58_spill] sm:$0xff] }
 0x2b3   : > { %1408 = vrot.lane.b32.xlu1 %v8077_v38, %s4127_s5  ;;  %v2240_v7 = vsel %vm2209_vm7, %v2185_v13, %v5972_v34  ;;  %v8091_v38 = vld [vmem:[#allocation184_spill] sm:$0xff]  ;;  %v2324_v1 = vsel %vm2319_vm9, %v2269_v51, %v1668_v9 }
 0x2b4   : > { %1905 = vrot.lane.b32.xlu0 %v8083_v37, %s4130_s23  ;;  %v2076_v17 = vsel %vm2044_vm4, %v2021_v33, %v8091_v38  ;;  %v2295_v18 = vsel %vm2264_vm8, %v2240_v7, %v1551_v30  ;;  %v8092_v34 = vld [vmem:[#allocation160_spill] sm:$0xff]  ;;  %v8100_v38 = vld [vmem:[#allocation19_spill] sm:$0xff] }
 0x2b5   : > { %v1722_v19 = vpop.permute.xlu1 %1721  ;;  %v2050_v36 = vsel %vm2044_vm4, %v1995_v10, %v8092_v34  ;;  %v2131_v5 = vsel %vm2099_vm5, %v2076_v17, %v8093_v55  ;;  %v2350_v35 = vsel %vm2319_vm9, %v2295_v18, %v1720_v45  ;;  %v8095_v30 = vld [vmem:[#allocation120_spill] sm:$0xff]  ;;  %v6242_v55 = vld [vmem:[%s4182_s22 + $0x100] sm:$0xff] }
 0x2b6   : > { %v1670_v2 = vpop.permute.xlu0 %1669  ;;  %v2105_v59 = vsel %vm2099_vm5, %v2050_v36, %v8094_v63  ;;  %v2186_v54 = vsel %vm2154_vm6, %v2131_v5, %v8095_v30  ;;  %v8098_v10 = vld [vmem:[#allocation20_spill] sm:$0xff]  ;;  %v8103_v5 = vld [vmem:[#allocation125_spill] sm:$0xff] }
 0x2b7   : > { %1570 = vrot.lane.b32.xlu1 %v4054_v48, %s4128_s20  ;;  %v2160_v13 = vsel %vm2154_vm6, %v2105_v59, %v8096_v50  ;;  %v2241_v41 = vsel %vm2209_vm7, %v2186_v54, %v5970_v42  ;;  %v8101_v18 = vld [vmem:[#allocation144_spill] sm:$0xff]  ;;  %v2022_v51 = vsel %vm1989_vm3, %v6242_v55, %v8103_v5  ;;  %v8106_v59 = vld [vmem:[#allocation187_spill] sm:$0xff] }
 0x2b8   : > { %1518 = vrot.lane.b32.xlu0 %v4056_v32, %s4128_s20  ;;  %v2215_v33 = vsel %vm2209_vm7, %v2160_v13, %v5842_v39  ;;  %v2296_v9 = vsel %vm2264_vm8, %v2241_v41, %v1553_v24  ;;  %v8097_v24 = vld [vmem:[#allocation46_spill] sm:$0xff]  ;;  %v8102_v32 = vld [vmem:[#allocation92_spill] sm:$0xff]  ;;  %v2077_v30 = vsel %vm2044_vm4, %v2022_v51, %v8106_v59  ;;  %v8107_v54 = vld [vmem:[#allocation163_spill] sm:$0xff] }
 0x2b9   : > { %v1888_v53 = vpop.permute.xlu1 %1887  ;;  %v2270_v49 = vsel %vm2264_vm8, %v2215_v33, %v1501_v4  ;;  %v2351_v42 = vsel %vm2319_vm9, %v2296_v9, %v1722_v19  ;;  %v8109_v13 = vld [vmem:[#allocation5_spill] sm:$0xff]  ;;  %v6265_v33 = vld [vmem:[%s4182_s22 + $0x108] sm:$0xff]  ;;  %v8118_v51 = vld [vmem:[#allocation8_spill] sm:$0xff] }
 0x2ba   : > { %v2405_v56 = vsel %vm2374_vm10, %v2350_v35, %v1888_v53  ;;  %v1836_v57 = vpop.permute.xlu0 %1835  ;;  %v2325_v48 = vsel %vm2319_vm9, %v2270_v49, %v1670_v2  ;;  %v8099_v2 = vld [vmem:[#allocation45_spill] sm:$0xff]  ;;  %v8104_v35 = vld [vmem:[#allocation90_spill] sm:$0xff]  ;;  %v8111_v9 = vld [vmem:[#allocation123_spill] sm:$0xff] }
 0x2bb   : > { %v2379_v45 = vsel %vm2374_vm10, %v2324_v1, %v1836_v57  ;;  %1572 = vrot.lane.b32.xlu1 %v4057_v26, %s4128_s20  ;;  %3720 = vmatprep.mubr.msk.f32.mxu1 %vm2441_vm11, %v2405_v56  ;;  %v8105_v53 = vld [vmem:[#allocation73_spill] sm:$0xff]  ;;  %v8108_v56 = vld [vmem:[#allocation38_spill] sm:$0xff] }
 0x2bc   : > { %1520 = vrot.lane.b32.xlu0 %v4058_v52, %s4128_s20  ;;  %3681 = vmatprep.mubr.msk.f32.mxu0 %vm2441_vm11, %v2379_v45  ;;  %v1996_v63 = vsel %vm1989_vm3, %v5726_v11, %v8105_v53  ;;  %v2132_v57 = vsel %vm2099_vm5, %v2077_v30, %v8108_v56  ;;  %v8110_v45 = vld [vmem:[#allocation128_spill] sm:$0xff]  ;;  %v8120_v30 = vld [vmem:[#allocation62_spill] sm:$0xff] }
 0x2bd   : > { %v1890_v7 = vpop.permute.xlu1 %1889  ;;  %v2051_v1 = vsel %vm2044_vm4, %v1996_v63, %v8107_v54  ;;  %v2187_v26 = vsel %vm2154_vm6, %v2132_v57, %v8110_v45  ;;  %v8112_v52 = vld [vmem:[#allocation72_spill] sm:$0xff] }
 0x2be   : > { %v2406_v6 = vsel %vm2374_vm10, %v2351_v42, %v1890_v7  ;;  %v1838_v22 = vpop.permute.xlu0 %1837  ;;  %v2106_v41 = vsel %vm2099_vm5, %v2051_v1, %v8109_v13  ;;  %v2242_v42 = vsel %vm2209_vm7, %v2187_v26, %v5980_v15  ;;  %v8113_v7 = vld [vmem:[#allocation71_spill] sm:$0xff]  ;;  %v8116_v15 = vld [vmem:[#allocation162_spill] sm:$0xff]  ;;  %v4062_v57 = vld [vmem:[%s4182_s22 + $0xb0] sm:$0xff] }
 0x2bf   : > { %v2380_v39 = vsel %vm2374_vm10, %v2325_v48, %v1838_v22  ;;  %1739 = vrot.lane.b32.xlu1 %v8097_v24, %s4129_s21  ;;  %3721 = vmatmul.mubr.msk.f32.gmra.mrb[2].mxu1 %vm2441_vm11, %v2406_v6  ;;  %v2161_v49 = vsel %vm2154_vm6, %v2106_v41, %v8112_v52  ;;  %v1997_v48 = vsel %vm1989_vm3, %v5721_v23, %v8113_v7  ;;  %v8114_v6 = vld [vmem:[#allocation186_spill] sm:$0xff]  ;;  %v8123_v7 = vld [vmem:[#allocation49_spill] sm:$0xff] }
 0x2c0   : > { %1687 = vrot.lane.b32.xlu0 %v8098_v10, %s4129_s21  ;;  %3682 = vmatmul.mubr.msk.f32.gmra.mrb[4].mxu0 %vm2441_vm11, %v2380_v39  ;;  %v2216_v39 = vsel %vm2209_vm7, %v2161_v49, %v5852_v60  ;;  %v8115_v10 = vld [vmem:[#allocation142_spill] sm:$0xff] }
 0x2c1   : > { %v1555_v4 = vpop.permute.xlu1 %1554  ;;  %v4061_v1 = vld [vmem:[%s4182_s22 + $0x180] sm:$0xff] }
 0x2c2   : > { %v1503_v19 = vpop.permute.xlu0 %1502  ;;  %v2297_v24 = vsel %vm2264_vm8, %v2242_v42, %v1555_v4  ;;  %v8121_v52 = vld [vmem:[#allocation50_spill] sm:$0xff] }
 0x2c3   : > { %1741 = vrot.lane.b32.xlu1 %v8099_v2, %s4129_s21  ;;  %v2052_v2 = vsel %vm2044_vm4, %v1997_v48, %v8116_v15  ;;  %v2271_v23 = vsel %vm2264_vm8, %v2216_v39, %v1503_v19  ;;  %v8124_v48 = vld [vmem:[#allocation21_spill] sm:$0xff]  ;;  %v8126_v15 = vld [vmem:[#allocation147_spill] sm:$0xff] }
 0x2c4   : > { %1689 = vrot.lane.b32.xlu0 %v8100_v38, %s4129_s21  ;;  %v8117_v38 = vld [vmem:[#allocation33_spill] sm:$0xff]  ;;  %v2107_v60 = vsel %vm2099_vm5, %v2052_v2, %v8118_v51 }
 0x2c5   : > { %v1557_v17 = vpop.permute.xlu1 %1556  ;;  %v2162_v54 = vsel %vm2154_vm6, %v2107_v60, %v8120_v30  ;;  %v8125_v39 = vld [vmem:[#allocation129_spill] sm:$0xff]  ;;  %v8131_v60 = vld [vmem:[#allocation40_spill] sm:$0xff]  ;;  %v8134_v30 = vld [vmem:[#allocation127_spill] sm:$0xff] }
 0x2c6   : > { %v1505_v12 = vpop.permute.xlu0 %1504  ;;  %v8127_v2 = vld [vmem:[#allocation77_spill] sm:$0xff] }
 0x2c7   : > { %1907 = vrot.lane.b32.xlu1 %v8101_v18, %s4130_s23 }
 0x2c8   : > { %1855 = vrot.lane.b32.xlu0 %v8102_v32, %s4130_s23 }
 0x2c9   : > { %v1724_v34 = vpop.permute.xlu1 %1723 }
 0x2ca   : > { %v1672_v36 = vpop.permute.xlu0 %1671  ;;  %v2352_v32 = vsel %vm2319_vm9, %v2297_v24, %v1724_v34  ;;  %v2024_v24 = vsel %vm1989_vm3, %v5751_v27, %v8125_v39 }
 0x2cb   : > { %1857 = vrot.lane.b32.xlu1 %v8104_v35, %s4130_s23  ;;  %v8119_v35 = vld [vmem:[#allocation118_spill] sm:$0xff]  ;;  %v2326_v53 = vsel %vm2319_vm9, %v2271_v23, %v1672_v36  ;;  %v2217_v36 = vsel %vm2209_vm7, %v2162_v54, %v5850_v20  ;;  %v4063_v20 = vld [vmem:[%s4182_s22 + $0x188] sm:$0xff]  ;;  %v2025_v54 = vsel %vm1989_vm3, %v5765_v28, %v8134_v30  ;;  %v8147_v30 = vld [vmem:[#allocation133_spill] sm:$0xff] }
 0x2cc   : > { %1410 = vrot.lane.b32.xlu0 %v8083_v37, %s4127_s5  ;;  %v2023_v37 = vsel %vm1989_vm3, %v6265_v33, %v8111_v9 }
 0x2cd   : > { %v1726_v50 = vpop.permute.xlu1 %1725  ;;  %v2078_v22 = vsel %vm2044_vm4, %v2023_v37, %v8114_v6 }
 0x2ce   : > { %v1674_v11 = vpop.permute.xlu0 %1673 }
 0x2cf   : > { %1412 = vrot.lane.b32.xlu1 %v8101_v18, %s4127_s5  ;;  %v2133_v18 = vsel %vm2099_vm5, %v2078_v22, %v8117_v38  ;;  %v1998_v38 = vsel %vm1989_vm3, %v5756_v58, %v8127_v2  ;;  %v8144_v2 = vld [vmem:[#allocation146_spill] sm:$0xff] }
 0x2d0   : > { %1909 = vrot.lane.b32.xlu0 %v8115_v10, %s4130_s23  ;;  %v2188_v4 = vsel %vm2154_vm6, %v2133_v18, %v8119_v35  ;;  %v8128_v18 = vld [vmem:[#allocation189_spill] sm:$0xff] }
 0x2d1   : > { %v1892_v5 = vpop.permute.xlu1 %1891  ;;  %v2243_v19 = vsel %vm2209_vm7, %v2188_v4, %v5978_v61  ;;  %v2272_v61 = vsel %vm2264_vm8, %v2217_v36, %v1505_v12  ;;  %v2079_v23 = vsel %vm2044_vm4, %v2024_v24, %v8128_v18  ;;  %v8132_v4 = vld [vmem:[#allocation7_spill] sm:$0xff]  ;;  %v8136_v36 = vld [vmem:[#allocation94_spill] sm:$0xff] }
 0x2d2   : > { %v2407_v63 = vsel %vm2374_vm10, %v2352_v32, %v1892_v5  ;;  %v1840_v59 = vpop.permute.xlu0 %1839  ;;  %v2298_v56 = vsel %vm2264_vm8, %v2243_v19, %v1557_v17  ;;  %v2327_v45 = vsel %vm2319_vm9, %v2272_v61, %v1674_v11  ;;  %v4064_v17 = vld [vmem:[%s4182_s22 + $0xb8] sm:$0xff]  ;;  %v8122_v11 = vld [vmem:[#allocation22_spill] sm:$0xff]  ;;  %v8129_v32 = vld [vmem:[#allocation96_spill] sm:$0xff]  ;;  %v2134_v35 = vsel %vm2099_vm5, %v2079_v23, %v8131_v60 }
 0x2d3   : > { %v2381_v34 = vsel %vm2374_vm10, %v2326_v53, %v1840_v59  ;;  %1574 = vrot.lane.b32.xlu1 %v4061_v1, %s4128_s20  ;;  %3723 = vmatprep.mubr.msk.f32.mxu1 %vm2441_vm11, %v2407_v63  ;;  %v2353_v13 = vsel %vm2319_vm9, %v2298_v56, %v1726_v50  ;;  %v8130_v5 = vld [vmem:[#allocation165_spill] sm:$0xff]  ;;  %v8133_v63 = vld [vmem:[#allocation132_spill] sm:$0xff]  ;;  %v8137_v56 = vld [vmem:[#allocation75_spill] sm:$0xff] }
 0x2d4   : > { %1522 = vrot.lane.b32.xlu0 %v4062_v57, %s4128_s20  ;;  %3684 = vmatprep.mubr.msk.f32.mxu0 %vm2441_vm11, %v2381_v34  ;;  %v2053_v51 = vsel %vm2044_vm4, %v1998_v38, %v8130_v5  ;;  %v2189_v59 = vsel %vm2154_vm6, %v2134_v35, %v8133_v63  ;;  %v8135_v19 = vld [vmem:[#allocation76_spill] sm:$0xff]  ;;  %v1999_v57 = vsel %vm1989_vm3, %v5770_v62, %v8137_v56  ;;  %v4066_v5 = vld [vmem:[%s4182_s22 + $0xc0] sm:$0xff]  ;;  %v4067_v60 = vld [vmem:[%s4182_s22 + $0x198] sm:$0xff] }
 0x2d5   : > { %v1894_v41 = vpop.permute.xlu1 %1893  ;;  %v2108_v53 = vsel %vm2099_vm5, %v2053_v51, %v8132_v4  ;;  %v2244_v1 = vsel %vm2209_vm7, %v2189_v59, %v5988_v0  ;;  %v8138_v61 = vld [vmem:[#allocation188_spill] sm:$0xff]  ;;  %v4068_v35 = vld [vmem:[%s4182_s22 + $0xc8] sm:$0xff] }
 0x2d6   : > { %v2408_v26 = vsel %vm2374_vm10, %v2353_v13, %v1894_v41  ;;  %v1842_v9 = vpop.permute.xlu0 %1841  ;;  %v2163_v34 = vsel %vm2154_vm6, %v2108_v53, %v8135_v19  ;;  %v2080_v13 = vsel %vm2044_vm4, %v2025_v54, %v8138_v61  ;;  %v8145_v53 = vld [vmem:[#allocation54_spill] sm:$0xff]  ;;  %v8146_v63 = vld [vmem:[#allocation24_spill] sm:$0xff]  ;;  %v2026_v54 = vsel %vm1989_vm3, %v5811_v46, %v8147_v30  ;;  %v8148_v19 = vld [vmem:[#allocation53_spill] sm:$0xff] }
 0x2d7   : > { %v2382_v37 = vsel %vm2374_vm10, %v2327_v45, %v1842_v9  ;;  %1576 = vrot.lane.b32.xlu1 %v4063_v20, %s4128_s20  ;;  %3724 = vmatmul.mubr.msk.f32.gmra.mrb[4].mxu1 %vm2441_vm11, %v2408_v26  ;;  %v2218_v41 = vsel %vm2209_vm7, %v2163_v34, %v5860_v44  ;;  %v8139_v45 = vld [vmem:[#allocation164_spill] sm:$0xff]  ;;  %v8140_v26 = vld [vmem:[#allocation35_spill] sm:$0xff]  ;;  %v8142_v44 = vld [vmem:[#allocation122_spill] sm:$0xff] }
 0x2d8   : > { %1524 = vrot.lane.b32.xlu0 %v4064_v17, %s4128_s20  ;;  %3685 = vmatmul.mubr.msk.f32.gmra.mrb[6].mxu0 %vm2441_vm11, %v2382_v37  ;;  %v2054_v0 = vsel %vm2044_vm4, %v1999_v57, %v8139_v45  ;;  %v2135_v9 = vsel %vm2099_vm5, %v2080_v13, %v8140_v26  ;;  %v8141_v17 = vld [vmem:[#allocation10_spill] sm:$0xff]  ;;  %v8149_v34 = vld [vmem:[#allocation81_spill] sm:$0xff]  ;;  %v8151_v57 = vld [vmem:[#allocation23_spill] sm:$0xff] }
 0x2d9   : > { %v1559_v12 = vpop.permute.xlu1 %1558  ;;  %v8152_v61 = vld [vmem:[#allocation167_spill] sm:$0xff]  ;;  %v8154_v45 = vld [vmem:[#allocation9_spill] sm:$0xff]  ;;  %v8155_v26 = vld [vmem:[#allocation244_spill] sm:$0xff] }
 0x2da   : > { %v1507_v50 = vpop.permute.xlu0 %1506  ;;  %v2299_v28 = vsel %vm2264_vm8, %v2244_v1, %v1559_v12  ;;  %v2190_v12 = vsel %vm2154_vm6, %v2135_v9, %v8142_v44  ;;  %v2000_v1 = vsel %vm1989_vm3, %v5816_v8, %v8149_v34 }
 0x2db   : > { %1743 = vrot.lane.b32.xlu1 %v8121_v52, %s4129_s21  ;;  %v2273_v37 = vsel %vm2264_vm8, %v2218_v41, %v1507_v50  ;;  %v2109_v52 = vsel %vm2099_vm5, %v2054_v0, %v8141_v17  ;;  %v2245_v50 = vsel %vm2209_vm7, %v2190_v12, %v5986_v47  ;;  %v2055_v13 = vsel %vm2044_vm4, %v2000_v1, %v8152_v61  ;;  %v8153_v41 = vld [vmem:[#allocation42_spill] sm:$0xff]  ;;  %v8158_v17 = vld [vmem:[#allocation80_spill] sm:$0xff]  ;;  %v8171_v1 = vld [vmem:[#allocation149_spill] sm:$0xff] }
 0x2dc   : > { %1691 = vrot.lane.b32.xlu0 %v8122_v11, %s4129_s21  ;;  %v2110_v0 = vsel %vm2099_vm5, %v2055_v13, %v8154_v45  ;;  %v8159_v12 = vld [vmem:[#allocation150_spill] sm:$0xff] }
 0x2dd   : > { %v1561_v49 = vpop.permute.xlu1 %1560 }
 0x2de   : > { %v1509_v42 = vpop.permute.xlu0 %1508  ;;  %v2300_v24 = vsel %vm2264_vm8, %v2245_v50, %v1561_v49  ;;  %v4065_v49 = vld [vmem:[%s4182_s22 + $0x190] sm:$0xff] }
 0x2df   : > { %1745 = vrot.lane.b32.xlu1 %v8123_v7, %s4129_s21  ;;  %v8162_v50 = vld [vmem:[#allocation12_spill] sm:$0xff] }
 0x2e0   : > { %1693 = vrot.lane.b32.xlu0 %v8124_v48, %s4129_s21  ;;  %v8143_v48 = vld [vmem:[#allocation66_spill] sm:$0xff] }
 0x2e1   : > { %v1728_v6 = vpop.permute.xlu1 %1727  ;;  %v2164_v39 = vsel %vm2154_vm6, %v2109_v52, %v8143_v48  ;;  %v2165_v52 = vsel %vm2154_vm6, %v2110_v0, %v8158_v17  ;;  %v4071_v0 = vld [vmem:[%s4182_s22 + $0x1a8] sm:$0xff]  ;;  %v8175_v17 = vld [vmem:[#allocation264_spill] sm:$0xff] }
 0x2e2   : > { %v1676_v22 = vpop.permute.xlu0 %1675  ;;  %v2354_v62 = vsel %vm2319_vm9, %v2299_v28, %v1728_v6 }
 0x2e3   : > { %1911 = vrot.lane.b32.xlu1 %v8126_v15, %s4130_s23  ;;  %v2328_v11 = vsel %vm2319_vm9, %v2273_v37, %v1676_v22  ;;  %v2219_v22 = vsel %vm2209_vm7, %v2164_v39, %v5858_v16  ;;  %v8156_v37 = vld [vmem:[#allocation79_spill] sm:$0xff]  ;;  %v8161_v39 = vld [vmem:[#allocation100_spill] sm:$0xff] }
 0x2e4   : > { %1859 = vrot.lane.b32.xlu0 %v8129_v32, %s4130_s23  ;;  %v2274_v47 = vsel %vm2264_vm8, %v2219_v22, %v1509_v42 }
 0x2e5   : > { %v1730_v27 = vpop.permute.xlu1 %1729 }
 0x2e6   : > { %v1678_v58 = vpop.permute.xlu0 %1677  ;;  %v2355_v38 = vsel %vm2319_vm9, %v2300_v24, %v1730_v27 }
 0x2e7   : > { %1861 = vrot.lane.b32.xlu1 %v8136_v36, %s4130_s23  ;;  %v2329_v18 = vsel %vm2319_vm9, %v2274_v47, %v1678_v58  ;;  %v8150_v36 = vld [vmem:[#allocation191_spill] sm:$0xff]  ;;  %v8163_v47 = vld [vmem:[#allocation70_spill] sm:$0xff] }
 0x2e8   : > { %1414 = vrot.lane.b32.xlu0 %v8115_v10, %s4127_s5  ;;  %v2081_v56 = vsel %vm2044_vm4, %v2026_v54, %v8150_v36 }
 0x2e9   : > { %v1896_v20 = vpop.permute.xlu1 %1895  ;;  %v2136_v28 = vsel %vm2099_vm5, %v2081_v56, %v8153_v41  ;;  %v4069_v41 = vld [vmem:[%s4182_s22 + $0x1a0] sm:$0xff] }
 0x2ea   : > { %v2409_v10 = vsel %vm2374_vm10, %v2354_v62, %v1896_v20  ;;  %v1844_v7 = vpop.permute.xlu0 %1843  ;;  %v2191_v9 = vsel %vm2154_vm6, %v2136_v28, %v8155_v26  ;;  %v8157_v62 = vld [vmem:[#allocation262_spill] sm:$0xff]  ;;  %v4070_v28 = vld [vmem:[%s4182_s22 + $0xd0] sm:$0xff] }
 0x2eb   : > { %v2383_v6 = vsel %vm2374_vm10, %v2328_v11, %v1844_v7  ;;  %1416 = vrot.lane.b32.xlu1 %v8126_v15, %s4127_s5  ;;  %3726 = vmatprep.mubr.msk.f32.mxu1 %vm2441_vm11, %v2409_v10  ;;  %v2001_v20 = vsel %vm1989_vm3, %v8157_v62, %v8156_v37  ;;  %v2246_v44 = vsel %vm2209_vm7, %v2191_v9, %v6002_v25  ;;  %v8160_v11 = vld [vmem:[#allocation166_spill] sm:$0xff]  ;;  %v8172_v9 = vld [vmem:[#allocation56_spill] sm:$0xff] }
 0x2ec   : > { %1913 = vrot.lane.b32.xlu0 %v8144_v2, %s4130_s23  ;;  %3687 = vmatprep.mubr.msk.f32.mxu0 %vm2441_vm11, %v2383_v6  ;;  %v2056_v10 = vsel %vm2044_vm4, %v2001_v20, %v8160_v11  ;;  %v2220_v7 = vsel %vm2209_vm7, %v2165_v52, %v5868_v31  ;;  %v8174_v20 = vld [vmem:[#allocation137_spill] sm:$0xff] }
 0x2ed   : > { %v1898_v15 = vpop.permute.xlu1 %1897  ;;  %v2111_v6 = vsel %vm2099_vm5, %v2056_v10, %v8162_v50  ;;  %v2028_v52 = vsel %vm1989_vm3, %v8175_v17, %v8174_v20  ;;  %v8178_v10 = vld [vmem:[#allocation193_spill] sm:$0xff]  ;;  %v8198_v20 = vld [vmem:[#allocation39_spill] sm:$0xff] }
 0x2ee   : > { %v2410_v23 = vsel %vm2374_vm10, %v2355_v38, %v1898_v15  ;;  %v1846_v32 = vpop.permute.xlu0 %1845  ;;  %v2166_v38 = vsel %vm2154_vm6, %v2111_v6, %v8163_v47  ;;  %v8181_v6 = vld [vmem:[#allocation41_spill] sm:$0xff] }
 0x2ef   : > { %v2384_v16 = vsel %vm2374_vm10, %v2329_v18, %v1846_v32  ;;  %1578 = vrot.lane.b32.xlu1 %v4065_v49, %s4128_s20  ;;  %3727 = vmatmul.mubr.msk.f32.gmra.mrb[6].mxu1 %vm2441_vm11, %v2410_v23  ;;  %v8164_v23 = vld [vmem:[#allocation263_spill] sm:$0xff]  ;;  %v8165_v49 = vld [vmem:[#allocation98_spill] sm:$0xff] }
 0x2f0   : > { %1526 = vrot.lane.b32.xlu0 %v4066_v5, %s4128_s20  ;;  %3688 = vmatmul.mubr.msk.f32.gmra.mrb[8].mxu0 %vm2441_vm11, %v2384_v16  ;;  %v2221_v32 = vsel %vm2209_vm7, %v2166_v38, %v8164_v23  ;;  %v8166_v5 = vld [vmem:[#allocation131_spill] sm:$0xff]  ;;  %v8183_v38 = vld [vmem:[#allocation246_spill] sm:$0xff] }
 0x2f1   : > { %v1563_v42 = vpop.permute.xlu1 %1562 }
 0x2f2   : > { %v1511_v51 = vpop.permute.xlu0 %1510  ;;  %v2301_v48 = vsel %vm2264_vm8, %v2246_v44, %v1563_v42  ;;  %v8167_v42 = vld [vmem:[#allocation261_spill] sm:$0xff]  ;;  %v8176_v44 = vld [vmem:[#allocation55_spill] sm:$0xff] }
 0x2f3   : > { %1580 = vrot.lane.b32.xlu1 %v4067_v60, %s4128_s20  ;;  %v2275_v22 = vsel %vm2264_vm8, %v2220_v7, %v1511_v51  ;;  %v2027_v51 = vsel %vm1989_vm3, %v8167_v42, %v8166_v5  ;;  %v2083_v7 = vsel %vm2044_vm4, %v2028_v52, %v8178_v10  ;;  %v8187_v5 = vld [vmem:[#allocation154_spill] sm:$0xff]  ;;  %v8188_v42 = vld [vmem:[#allocation168_spill] sm:$0xff] }
 0x2f4   : > { %1528 = vrot.lane.b32.xlu0 %v4068_v35, %s4128_s20  ;;  %v8168_v35 = vld [vmem:[#allocation190_spill] sm:$0xff] }
 0x2f5   : > { %v1565_v27 = vpop.permute.xlu1 %1564 }
 0x2f6   : > { %v1513_v4 = vpop.permute.xlu0 %1512 }
 0x2f7   : > { %1747 = vrot.lane.b32.xlu1 %v8145_v53, %s4129_s21  ;;  %v2276_v60 = vsel %vm2264_vm8, %v2221_v32, %v1513_v4  ;;  %v2082_v53 = vsel %vm2044_vm4, %v2027_v51, %v8168_v35  ;;  %v8170_v4 = vld [vmem:[#allocation126_spill] sm:$0xff]  ;;  %v8186_v32 = vld [vmem:[#allocation84_spill] sm:$0xff] }
 0x2f8   : > { %1695 = vrot.lane.b32.xlu0 %v8146_v63, %s4129_s21 }
 0x2f9   : > { %v1732_v59 = vpop.permute.xlu1 %1731 }
 0x2fa   : > { %v1680_v58 = vpop.permute.xlu0 %1679  ;;  %v2356_v25 = vsel %vm2319_vm9, %v2301_v48, %v1732_v59  ;;  %v8179_v48 = vld [vmem:[#allocation25_spill] sm:$0xff] }
 0x2fb   : > { %1749 = vrot.lane.b32.xlu1 %v8148_v19, %s4129_s21  ;;  %v2330_v15 = vsel %vm2319_vm9, %v2275_v22, %v1680_v58  ;;  %v8169_v58 = vld [vmem:[#allocation37_spill] sm:$0xff]  ;;  %v2138_v22 = vsel %vm2099_vm5, %v2083_v7, %v8181_v6  ;;  %v4073_v6 = vld [vmem:[%s4626_s27] sm:$0xff] }
 0x2fc   : > { %1697 = vrot.lane.b32.xlu0 %v8151_v57, %s4129_s21  ;;  %v2137_v30 = vsel %vm2099_vm5, %v2082_v53, %v8169_v58 }
 0x2fd   : > { %v1734_v46 = vpop.permute.xlu1 %1733  ;;  %v2192_v34 = vsel %vm2154_vm6, %v2137_v30, %v8170_v4  ;;  %v8192_v4 = vld [vmem:[#allocation74_spill] sm:$0xff] }
 0x2fe   : > { %v1682_v8 = vpop.permute.xlu0 %1681 }
 0x2ff   : > { %1915 = vrot.lane.b32.xlu1 %v8159_v12, %s4130_s23  ;;  %v2331_v63 = vsel %vm2319_vm9, %v2276_v60, %v1682_v8  ;;  %v8173_v8 = vld [vmem:[#allocation26_spill] sm:$0xff] }
 0x300   : > { %1863 = vrot.lane.b32.xlu0 %v8161_v39, %s4130_s23  ;;  %v8180_v39 = vld [vmem:[#allocation169_spill] sm:$0xff]  ;;  %v8189_v60 = vld [vmem:[#allocation266_spill] sm:$0xff] }
 0x301   : > { %v1900_v24 = vpop.permute.xlu1 %1899 }
 0x302   : > { %v2411_v31 = vsel %vm2374_vm10, %v2356_v25, %v1900_v24  ;;  %v1848_v18 = vpop.permute.xlu0 %1847  ;;  %v8182_v24 = vld [vmem:[#allocation11_spill] sm:$0xff] }
 0x303   : > { %v2385_v16 = vsel %vm2374_vm10, %v2330_v15, %v1848_v18  ;;  %1865 = vrot.lane.b32.xlu1 %v8165_v49, %s4130_s23  ;;  %3729 = vmatprep.mubr.msk.f32.mxu1 %vm2441_vm11, %v2411_v31  ;;  %v2193_v15 = vsel %vm2154_vm6, %v2138_v22, %v8183_v38  ;;  %v8184_v31 = vld [vmem:[#allocation83_spill] sm:$0xff]  ;;  %v8185_v18 = vld [vmem:[#allocation268_spill] sm:$0xff] }
 0x304   : > { %1418 = vrot.lane.b32.xlu0 %v8144_v2, %s4127_s5  ;;  %3690 = vmatprep.mubr.msk.f32.mxu0 %vm2441_vm11, %v2385_v16  ;;  %v2247_v2 = vsel %vm2209_vm7, %v2192_v34, %v6000_v29  ;;  %v2003_v23 = vsel %vm1989_vm3, %v8185_v18, %v8184_v31  ;;  %v8203_v31 = vld [vmem:[#allocation141_spill] sm:$0xff]  ;;  %v8204_v18 = vld [vmem:[#allocation279_spill] sm:$0xff] }
 0x305   : > { %v1850_v59 = vpop.permute.xlu1 %1849  ;;  %v2302_v36 = vsel %vm2264_vm8, %v2247_v2, %v1565_v27  ;;  %v4072_v27 = vld [vmem:[%s4182_s22 + $0xd8] sm:$0xff]  ;;  %v2058_v51 = vsel %vm2044_vm4, %v2003_v23, %v8188_v42  ;;  %v2030_v23 = vsel %vm1989_vm3, %v8204_v18, %v8203_v31 }
 0x306   : > { %v2386_v54 = vsel %vm2374_vm10, %v2331_v63, %v1850_v59  ;;  %v1403_v19 = vpop.permute.xlu0 %1402  ;;  %v2357_v57 = vsel %vm2319_vm9, %v2302_v36, %v1734_v46  ;;  %v8190_v63 = vld [vmem:[#allocation104_spill] sm:$0xff]  ;;  %v8191_v59 = vld [vmem:[#allocation14_spill] sm:$0xff] }
 0x307   : > { %1420 = vrot.lane.b32.xlu1 %v8159_v12, %s4127_s5  ;;  %3691 = vmatmul.mubr.msk.f32.gmra.mrb[10].mxu0 %vm2441_vm11, %v2386_v54  ;;  %v8177_v12 = vld [vmem:[#allocation85_spill] sm:$0xff]  ;;  %v2248_v49 = vsel %vm2209_vm7, %v2193_v15, %v1403_v19  ;;  %v2113_v58 = vsel %vm2099_vm5, %v2058_v51, %v8191_v59  ;;  %v8202_v15 = vld [vmem:[#allocation28_spill] sm:$0xff]  ;;  %v8209_v51 = vld [vmem:[#allocation27_spill] sm:$0xff] }
 0x308   : > { %1917 = vrot.lane.b32.xlu0 %v8171_v1, %s4130_s23  ;;  %v2002_v11 = vsel %vm1989_vm3, %v5876_v21, %v8177_v12  ;;  %v2168_v34 = vsel %vm2154_vm6, %v2113_v58, %v8192_v4  ;;  %v8199_v12 = vld [vmem:[#allocation245_spill] sm:$0xff] }
 0x309   : > { %v6488_v56 = vpop.permute.xlu1 %1404  ;;  %v2057_v50 = vsel %vm2044_vm4, %v2002_v11, %v8180_v39  ;;  %v8200_v11 = vld [vmem:[#allocation152_spill] sm:$0xff]  ;;  %v8213_v58 = vld [vmem:[#allocation217_spill] sm:$0xff] }
 0x30a   : > { %v1902_v61 = vpop.permute.xlu0 %1901  ;;  %v2112_v47 = vsel %vm2099_vm5, %v2057_v50, %v8182_v24  ;;  %v4074_v24 = vld [vmem:[%s4626_s27 + $0x8] sm:$0xff] }
 0x30b   : > { %v2412_v13 = vsel %vm2374_vm10, %v2357_v57, %v1902_v61  ;;  %1582 = vrot.lane.b32.xlu1 %v4069_v41, %s4128_s20  ;;  %v2167_v16 = vsel %vm2154_vm6, %v2112_v47, %v8186_v32  ;;  %v8193_v61 = vld [vmem:[#allocation265_spill] sm:$0xff]  ;;  %v8201_v47 = vld [vmem:[#allocation223_spill] sm:$0xff]  ;;  %v1320_v38 = vrot.slane %v4074_v24, 2  ;;  %v8205_v32 = vld [vmem:[#allocation228_spill] sm:$0xff] }
 0x30c   : > { %1530 = vrot.lane.b32.xlu0 %v4070_v28, %s4128_s20  ;;  %3730 = vmatmul.mubr.msk.f32.gmra.mrb[8].mxu1 %vm2441_vm11, %v2412_v13  ;;  %v2222_v35 = vsel %vm2209_vm7, %v2167_v16, %v8189_v60  ;;  %v2223_v13 = vsel %vm2209_vm7, %v2168_v34, %v8193_v61  ;;  %v8194_v28 = vld [vmem:[#allocation102_spill] sm:$0xff]  ;;  %v8206_v16 = vld [vmem:[#allocation89_spill] sm:$0xff]  ;;  %v8210_v60 = vld [vmem:[#allocation52_spill] sm:$0xff] }
 0x30d   : > { %v1567_v29 = vpop.permute.xlu1 %1566  ;;  %v8215_v34 = vld [vmem:[#allocation248_spill] sm:$0xff] }
 0x30e   : > { %v1515_v45 = vpop.permute.xlu0 %1514  ;;  %v2303_v53 = vsel %vm2264_vm8, %v2248_v49, %v1567_v29  ;;  %v8195_v29 = vld [vmem:[#allocation135_spill] sm:$0xff]  ;;  %v8217_v61 = vld [vmem:[#allocation284_spill] sm:$0xff] }
 0x30f   : > { %1584 = vrot.lane.b32.xlu1 %v4071_v0, %s4128_s20  ;;  %v2277_v30 = vsel %vm2264_vm8, %v2222_v35, %v1515_v45  ;;  %v8196_v45 = vld [vmem:[#allocation267_spill] sm:$0xff]  ;;  %v8211_v35 = vrot.slane %v8210_v60, 2 }
 0x310   : > { %1532 = vrot.lane.b32.xlu0 %v4072_v27, %s4128_s20  ;;  %v2029_v0 = vsel %vm1989_vm3, %v8196_v45, %v8195_v29  ;;  %v8219_v45 = vld [vmem:[#allocation170_spill] sm:$0xff] }
 0x311   : > { %v1569_v46 = vpop.permute.xlu1 %1568 }
 0x312   : > { %v1517_v26 = vpop.permute.xlu0 %1516 }
 0x313   : > { %1751 = vrot.lane.b32.xlu1 %v8172_v9, %s4129_s21  ;;  %v2278_v27 = vsel %vm2264_vm8, %v2223_v13, %v1517_v26  ;;  %v8197_v9 = vld [vmem:[#allocation192_spill] sm:$0xff] }
 0x314   : > { %1699 = vrot.lane.b32.xlu0 %v8173_v8, %s4129_s21  ;;  %v2084_v8 = vsel %vm2044_vm4, %v2029_v0, %v8197_v9 }
 0x315   : > { %v1736_v37 = vpop.permute.xlu1 %1735  ;;  %v2139_v17 = vsel %vm2099_vm5, %v2084_v8, %v8198_v20 }
 0x316   : > { %v1684_v62 = vpop.permute.xlu0 %1683  ;;  %v2358_v54 = vsel %vm2319_vm9, %v2303_v53, %v1736_v37  ;;  %v2194_v26 = vsel %vm2154_vm6, %v2139_v17, %v8199_v12  ;;  %v1321_v53 = vsel %vm715_vm1, %v8211_v35, %v1320_v38  ;;  %v8222_v17 = vld [vmem:[#allocation16_spill] sm:$0xff] }
 0x317   : > { %1753 = vrot.lane.b32.xlu1 %v8176_v44, %s4129_s21  ;;  %v2332_v2 = vsel %vm2319_vm9, %v2277_v30, %v1684_v62 }
 0x318   : > { %1701 = vrot.lane.b32.xlu0 %v8179_v48, %s4129_s21 }
 0x319   : > { %v1738_v25 = vpop.permute.xlu1 %1737 }
 0x31a   : > { %v1686_v21 = vpop.permute.xlu0 %1685 }
 0x31b   : > { %1919 = vrot.lane.b32.xlu1 %v8187_v5, %s4130_s23  ;;  %v2333_v37 = vsel %vm2319_vm9, %v2278_v27, %v1686_v21  ;;  %v8220_v27 = vld [vmem:[#allocation270_spill] sm:$0xff] }
 0x31c   : > { %1867 = vrot.lane.b32.xlu0 %v8190_v63, %s4130_s23  ;;  %v8212_v63 = vld [vmem:[#allocation171_spill] sm:$0xff] }
 0x31d   : > { %v1904_v19 = vpop.permute.xlu1 %1903 }
 0x31e   : > { %v2413_v36 = vsel %vm2374_vm10, %v2358_v54, %v1904_v19  ;;  %v1852_v57 = vpop.permute.xlu0 %1851  ;;  %v8214_v19 = vld [vmem:[#allocation13_spill] sm:$0xff] }
 0x31f   : > { %v2387_v41 = vsel %vm2374_vm10, %v2332_v2, %v1852_v57  ;;  %1869 = vrot.lane.b32.xlu1 %v8194_v28, %s4130_s23  ;;  %3732 = vmatprep.mubr.msk.f32.mxu1 %vm2441_vm11, %v2413_v36  ;;  %v8216_v57 = vld [vmem:[#allocation87_spill] sm:$0xff] }
 0x320   : > { %1422 = vrot.lane.b32.xlu0 %v8171_v1, %s4127_s5  ;;  %3693 = vmatprep.mubr.msk.f32.mxu0 %vm2441_vm11, %v2387_v41  ;;  %v2249_v1 = vsel %vm2209_vm7, %v2194_v26, %v6488_v56  ;;  %v2005_v13 = vsel %vm1989_vm3, %v8217_v61, %v8216_v57  ;;  %v8218_v41 = vld [vmem:[#allocation82_spill] sm:$0xff] }
 0x321   : > { %v1854_v62 = vpop.permute.xlu1 %1853  ;;  %v2304_v10 = vsel %vm2264_vm8, %v2249_v1, %v1569_v46  ;;  %v2060_v0 = vsel %vm2044_vm4, %v2005_v13, %v8219_v45  ;;  %v8223_v1 = vld [vmem:[#allocation78_spill] sm:$0xff]  ;;  %v8238_v45 = vld [vmem:[#allocation287_spill] sm:$0xff] }
 0x322   : > { %v2388_v52 = vsel %vm2374_vm10, %v2333_v37, %v1854_v62  ;;  %v1407_v44 = vpop.permute.xlu0 %1406  ;;  %v2359_v48 = vsel %vm2319_vm9, %v2304_v10, %v1738_v25  ;;  %v8221_v37 = vld [vmem:[#allocation108_spill] sm:$0xff] }
 0x323   : > { %1424 = vrot.lane.b32.xlu1 %v8187_v5, %s4127_s5  ;;  %3694 = vmatmul.mubr.msk.f32.gmra.mrb[12].mxu0 %vm2441_vm11, %v2388_v52  ;;  %v8208_v5 = vld [vmem:[#allocation195_spill] sm:$0xff]  ;;  %v4075_v62 = vld [vmem:[%s4626_s27 + $0x10] sm:$0xff]  ;;  %v2115_v52 = vsel %vm2099_vm5, %v2060_v0, %v8222_v17 }
 0x324   : > { %1921 = vrot.lane.b32.xlu0 %v8200_v11, %s4130_s23  ;;  %v2085_v42 = vsel %vm2044_vm4, %v2030_v23, %v8208_v5  ;;  %v1322_v20 = vrot.slane %v4075_v62, 2  ;;  %v2170_v10 = vsel %vm2154_vm6, %v2115_v52, %v8223_v1  ;;  %v8242_v52 = vld [vmem:[#allocation219_spill] sm:$0xff] }
 0x325   : > { %v6577_v7 = vpop.permute.xlu1 %1408  ;;  %v2140_v30 = vsel %vm2099_vm5, %v2085_v42, %v8213_v58  ;;  %v8230_v42 = vld [vmem:[#allocation247_spill] sm:$0xff] }
 0x326   : > { %v1906_v39 = vpop.permute.xlu0 %1905  ;;  %v2195_v2 = vsel %vm2154_vm6, %v2140_v30, %v8215_v34  ;;  %v4076_v30 = vld [vmem:[%s4626_s27 + $0x18] sm:$0xff] }
 0x327   : > { %v2414_v50 = vsel %vm2374_vm10, %v2359_v48, %v1906_v39  ;;  %1586 = vrot.lane.b32.xlu1 %v4073_v6, %s4128_s20  ;;  %v2250_v29 = vsel %vm2209_vm7, %v2195_v2, %v1407_v44  ;;  %v8224_v6 = vld [vmem:[#allocation269_spill] sm:$0xff]  ;;  %v1324_v57 = vrot.slane %v4076_v30, 2 }
 0x328   : > { %1534 = vrot.lane.b32.xlu0 %v6062_v40, %s4128_s20  ;;  %3733 = vmatmul.mubr.msk.f32.gmra.mrb[10].mxu1 %vm2441_vm11, %v2414_v50  ;;  %v8233_v34 = vld [vmem:[#allocation221_spill] sm:$0xff] }
 0x329   : > { %v1571_v56 = vpop.permute.xlu1 %1570  ;;  %v8234_v2 = vrot.slane %v8233_v34, 1 }
 0x32a   : > { %v1519_v22 = vpop.permute.xlu0 %1518  ;;  %v2305_v8 = vsel %vm2264_vm8, %v2250_v29, %v1571_v56  ;;  %v2225_v56 = vsel %vm2209_vm7, %v2170_v10, %v8224_v6  ;;  %v8237_v29 = vld [vmem:[#allocation93_spill] sm:$0xff]  ;;  %v8244_v10 = vld [vmem:[#allocation250_spill] sm:$0xff]  ;;  %v8246_v6 = vld [vmem:[#allocation288_spill] sm:$0xff] }
 0x32b   : > { %1588 = vrot.lane.b32.xlu1 %v4074_v24, %s4128_s20  ;;  %v2006_v0 = vsel %vm1989_vm3, %v8238_v45, %v8237_v29 }
 0x32c   : > { %1536 = vrot.lane.b32.xlu0 %v6085_v14, %s4128_s20  ;;  %v8207_v14 = vld [vmem:[#allocation280_spill] sm:$0xff] }
 0x32d   : > { %v1573_v46 = vpop.permute.xlu1 %1572  ;;  %v2004_v49 = vsel %vm1989_vm3, %v8207_v14, %v8206_v16  ;;  %v6657_v16 = vsel %vm715_vm1, %v1320_v38, %v1322_v20  ;;  %v8229_v14 = vld [vmem:[#allocation216_spill] sm:$0xff] }
 0x32e   : > { %v1521_v25 = vpop.permute.xlu0 %1520  ;;  %v2059_v59 = vsel %vm2044_vm4, %v2004_v49, %v8212_v63 }
 0x32f   : > { %1755 = vrot.lane.b32.xlu1 %v8201_v47, %s4129_s21  ;;  %v2114_v4 = vsel %vm2099_vm5, %v2059_v59, %v8214_v19  ;;  %v8225_v47 = vld [vmem:[#allocation106_spill] sm:$0xff]  ;;  %v2280_v31 = vsel %vm2264_vm8, %v2225_v56, %v1521_v25 }
 0x330   : > { %1703 = vrot.lane.b32.xlu0 %v8202_v15, %s4129_s21  ;;  %v2169_v28 = vsel %vm2154_vm6, %v2114_v4, %v8218_v41  ;;  %v8227_v15 = vld [vmem:[#allocation283_spill] sm:$0xff]  ;;  %v8231_v4 = vld [vmem:[#allocation226_spill] sm:$0xff] }
 0x331   : > { %v1740_v40 = vpop.permute.xlu1 %1739  ;;  %v2224_v9 = vsel %vm2209_vm7, %v2169_v28, %v8220_v27  ;;  %v8236_v41 = vld [vmem:[#allocation130_spill] sm:$0xff]  ;;  %v8239_v27 = vld [vmem:[#allocation197_spill] sm:$0xff] }
 0x332   : > { %v1688_v21 = vpop.permute.xlu0 %1687  ;;  %v2279_v44 = vsel %vm2264_vm8, %v2224_v9, %v1519_v22  ;;  %v2360_v12 = vsel %vm2319_vm9, %v2305_v8, %v1740_v40  ;;  %v8226_v22 = vld [vmem:[#allocation139_spill] sm:$0xff]  ;;  %v8240_v8 = vld [vmem:[#allocation29_spill] sm:$0xff] }
 0x333   : > { %1757 = vrot.lane.b32.xlu1 %v8205_v32, %s4129_s21  ;;  %v2334_v48 = vsel %vm2319_vm9, %v2279_v44, %v1688_v21  ;;  %v2031_v40 = vsel %vm1989_vm3, %v8227_v15, %v8226_v22  ;;  %v8228_v21 = vld [vmem:[#allocation194_spill] sm:$0xff]  ;;  %v8248_v22 = vld [vmem:[#allocation172_spill] sm:$0xff] }
 0x334   : > { %1705 = vrot.lane.b32.xlu0 %v8209_v51, %s4129_s21  ;;  %v2086_v18 = vsel %vm2044_vm4, %v2031_v40, %v8228_v21  ;;  %v8249_v40 = vld [vmem:[#allocation272_spill] sm:$0xff] }
 0x335   : > { %v1742_v54 = vpop.permute.xlu1 %1741  ;;  %v2141_v49 = vsel %vm2099_vm5, %v2086_v18, %v8229_v14  ;;  %v8250_v18 = vld [vmem:[#allocation112_spill] sm:$0xff] }
 0x336   : > { %v1690_v36 = vpop.permute.xlu0 %1689 }
 0x337   : > { %1923 = vrot.lane.b32.xlu1 %v1321_v53, %s4130_s23  ;;  %v2335_v23 = vsel %vm2319_vm9, %v2280_v31, %v1690_v36 }
 0x338   : > { %1871 = vrot.lane.b32.xlu0 %v8221_v37, %s4130_s23  ;;  %v1325_v37 = vsel %vm715_vm1, %v1322_v20, %v1324_v57 }
 0x339   : > { %v1908_v26 = vpop.permute.xlu1 %1907 }
 0x33a   : > { %v2415_v39 = vsel %vm2374_vm10, %v2360_v12, %v1908_v26  ;;  %v1856_v50 = vpop.permute.xlu0 %1855  ;;  %v8243_v26 = vld [vmem:[#allocation205_spill] sm:$0xff] }
 0x33b   : > { %v2389_v24 = vsel %vm2374_vm10, %v2334_v48, %v1856_v50  ;;  %1873 = vrot.lane.b32.xlu1 %v8225_v47, %s4130_s23  ;;  %3735 = vmatprep.mubr.msk.f32.mxu1 %vm2441_vm11, %v2415_v39  ;;  %v8245_v50 = vld [vmem:[#allocation91_spill] sm:$0xff] }
 0x33c   : > { %1426 = vrot.lane.b32.xlu0 %v8200_v11, %s4127_s5  ;;  %3696 = vmatprep.mubr.msk.f32.mxu0 %vm2441_vm11, %v2389_v24  ;;  %v2196_v11 = vsel %vm2154_vm6, %v2141_v49, %v8230_v42  ;;  %v2007_v56 = vsel %vm1989_vm3, %v8246_v6, %v8245_v50  ;;  %v8247_v24 = vld [vmem:[#allocation233_spill] sm:$0xff]  ;;  %v8252_v42 = vld [vmem:[#allocation232_spill] sm:$0xff] }
 0x33d   : > { %v1858_v32 = vpop.permute.xlu1 %1857  ;;  %v2251_v51 = vsel %vm2209_vm7, %v2196_v11, %v6577_v7  ;;  %v2062_v15 = vsel %vm2044_vm4, %v2007_v56, %v8248_v22  ;;  %v8259_v56 = vld [vmem:[#allocation32_spill] sm:$0xff]  ;;  %v4078_v22 = vld [vmem:[%s4182_s22 + $0x160] sm:$0xff] }
 0x33e   : > { %v2390_v5 = vsel %vm2374_vm10, %v2335_v23, %v1858_v32  ;;  %v1411_v25 = vpop.permute.xlu0 %1410  ;;  %v2306_v38 = vsel %vm2264_vm8, %v2251_v51, %v1573_v46  ;;  %v8251_v23 = vld [vmem:[#allocation15_spill] sm:$0xff] }
 0x33f   : > { %1428 = vrot.lane.b32.xlu1 %v1321_v53, %s4127_s5  ;;  %3697 = vmatmul.mubr.msk.f32.gmra.mrb[14].mxu0 %vm2441_vm11, %v2390_v5  ;;  %v2361_v35 = vsel %vm2319_vm9, %v2306_v38, %v1742_v54  ;;  %v6680_v53 = vld [vmem:[%s4626_s27 + $0x20] sm:$0xff]  ;;  %v2117_v32 = vsel %vm2099_vm5, %v2062_v15, %v8251_v23  ;;  %v8260_v15 = vld [vmem:[#allocation148_spill] sm:$0xff]  ;;  %v8262_v23 = vld [vmem:[#allocation199_spill] sm:$0xff] }
 0x340   : > { %1925 = vrot.lane.b32.xlu0 %v6657_v16, %s4130_s23  ;;  %v1653_v46 = vrot.slane %v6680_v53, 1  ;;  %v2172_v11 = vsel %vm2154_vm6, %v2117_v32, %v8252_v42  ;;  %v8264_v42 = vld [vmem:[#allocation175_spill] sm:$0xff] }
 0x341   : > { %v6671_v60 = vpop.permute.xlu1 %1412 }
 0x342   : > { %v1910_v63 = vpop.permute.xlu0 %1909  ;;  %v1654_v36 = vsel %vm443_vm0, %v8234_v2, %v1653_v46  ;;  %v8256_v2 = vld [vmem:[#allocation196_spill] sm:$0xff] }
 0x343   : > { %v2416_v59 = vsel %vm2374_vm10, %v2361_v35, %v1910_v63  ;;  %1590 = vrot.lane.b32.xlu1 %v4075_v62, %s4128_s20  ;;  %v8241_v62 = vld [vmem:[#allocation173_spill] sm:$0xff]  ;;  %v8253_v63 = vld [vmem:[#allocation271_spill] sm:$0xff] }
 0x344   : > { %1538 = vrot.lane.b32.xlu0 %v6152_v3, %s4128_s20  ;;  %3736 = vmatmul.mubr.msk.f32.gmra.mrb[12].mxu1 %vm2441_vm11, %v2416_v59  ;;  %v8232_v3 = vld [vmem:[#allocation30_spill] sm:$0xff]  ;;  %v2061_v17 = vsel %vm2044_vm4, %v2006_v0, %v8241_v62  ;;  %v2227_v59 = vsel %vm2209_vm7, %v2172_v11, %v8253_v63  ;;  %v8266_v63 = vld [vmem:[#allocation207_spill] sm:$0xff] }
 0x345   : > { %v1575_v7 = vpop.permute.xlu1 %1574  ;;  %v2116_v1 = vsel %vm2099_vm5, %v2061_v17, %v8243_v26 }
 0x346   : > { %v1523_v58 = vpop.permute.xlu0 %1522  ;;  %v2171_v20 = vsel %vm2154_vm6, %v2116_v1, %v8247_v24 }
 0x347   : > { %1592 = vrot.lane.b32.xlu1 %v4076_v30, %s4128_s20  ;;  %v2226_v31 = vsel %vm2209_vm7, %v2171_v20, %v8249_v40  ;;  %v4077_v30 = vld [vmem:[%s4182_s22 + $0x158] sm:$0xff]  ;;  %v2034_v40 = vsel %vm1989_vm3, %v4078_v22, %v8260_v15 }
 0x348   : > { %1540 = vrot.lane.b32.xlu0 %v6175_v43, %s4128_s20  ;;  %v8235_v43 = vld [vmem:[#allocation145_spill] sm:$0xff]  ;;  %v2281_v14 = vsel %vm2264_vm8, %v2226_v31, %v1523_v58  ;;  %v8254_v58 = vld [vmem:[#allocation110_spill] sm:$0xff]  ;;  %v4079_v31 = vld [vmem:[%s4182_s22 + $0x90] sm:$0xff]  ;;  %v2089_v32 = vsel %vm2044_vm4, %v2034_v40, %v8262_v23 }
 0x349   : > { %v1577_v54 = vpop.permute.xlu1 %1576  ;;  %v2032_v28 = vsel %vm1989_vm3, %v8236_v41, %v8235_v43  ;;  %v8257_v41 = vld [vmem:[#allocation218_spill] sm:$0xff]  ;;  %v8279_v40 = vld [vmem:[#allocation220_spill] sm:$0xff] }
 0x34a   : > { %v1525_v19 = vpop.permute.xlu0 %1524  ;;  %v2087_v9 = vsel %vm2044_vm4, %v2032_v28, %v8239_v27 }
 0x34b   : > { %1759 = vrot.lane.b32.xlu1 %v8231_v4, %s4129_s21  ;;  %v2142_v44 = vsel %vm2099_vm5, %v2087_v9, %v8242_v52  ;;  %v8255_v4 = vld [vmem:[#allocation143_spill] sm:$0xff]  ;;  %v2282_v34 = vsel %vm2264_vm8, %v2227_v59, %v1525_v19  ;;  %v387_v52 = vld [vmem:[%s4626_s27 + $0x30] sm:$0xff] }
 0x34c   : > { %1707 = vrot.lane.b32.xlu0 %v8232_v3, %s4129_s21  ;;  %v2197_v48 = vsel %vm2154_vm6, %v2142_v44, %v8244_v10  ;;  %v2033_v3 = vsel %vm1989_vm3, %v4077_v30, %v8255_v4  ;;  %v386_v9 = vld [vmem:[%s4626_s27 + $0x28] sm:$0xff]  ;;  %v6783_v44 = vld [vmem:[%s7407_s3] ss:$0 sm:$0xff]  ;;  %v1657_v26 = vrot.slane %v387_v52, 1  ;;  %v4080_v4 = vld [vmem:[%s4182_s22 + $0x98] sm:$0xff] }
 0x34d   : > { %v1744_v61 = vpop.permute.xlu1 %1743  ;;  %v2252_v47 = vsel %vm2209_vm7, %v2197_v48, %v1411_v25  ;;  %v1821_v25 = vrot.slane %v6680_v53, 2 }
 0x34e   : > { %v1692_v13 = vpop.permute.xlu0 %1691  ;;  %v2307_v21 = vsel %vm2264_vm8, %v2252_v47, %v1575_v7 }
 0x34f   : > { %1761 = vrot.lane.b32.xlu1 %v1654_v36, %s4129_s21  ;;  %v2362_v49 = vsel %vm2319_vm9, %v2307_v21, %v1744_v61  ;;  %v2336_v51 = vsel %vm2319_vm9, %v2281_v14, %v1692_v13  ;;  %v2088_v36 = vsel %vm2044_vm4, %v2033_v3, %v8256_v2  ;;  %v1822_v43 = vsel %vm715_vm1, %v1324_v57, %v1821_v25  ;;  %v8261_v21 = vld [vmem:[#allocation97_spill] sm:$0xff]  ;;  %v8263_v14 = vld [vmem:[#allocation31_spill] sm:$0xff] }
 0x350   : > { %1709 = vrot.lane.b32.xlu0 %v8240_v8, %s4129_s21  ;;  %v2143_v28 = vsel %vm2099_vm5, %v2088_v36, %v8257_v41  ;;  %v8268_v3 = vld [vmem:[#allocation95_spill] sm:$0xff]  ;;  %v8270_v36 = vld [vmem:[#allocation174_spill] sm:$0xff] }
 0x351   : > { %v1746_v12 = vpop.permute.xlu1 %1745 }
 0x352   : > { %v1694_v39 = vpop.permute.xlu0 %1693 }
 0x353   : > { %1927 = vrot.lane.b32.xlu1 %v1325_v37, %s4130_s23  ;;  %v2337_v61 = vsel %vm2319_vm9, %v2282_v34, %v1694_v39 }
 0x354   : > { %1875 = vrot.lane.b32.xlu0 %v8250_v18, %s4130_s23  ;;  %v2008_v18 = vsel %vm1989_vm3, %v4079_v31, %v8261_v21 }
 0x355   : > { %v1912_v5 = vpop.permute.xlu1 %1911  ;;  %v2063_v11 = vsel %vm2044_vm4, %v2008_v18, %v8264_v42  ;;  %v8280_v18 = vld [vmem:[#allocation251_spill] sm:$0xff] }
 0x356   : > { %v2417_v38 = vsel %vm2374_vm10, %v2362_v49, %v1912_v5  ;;  %v1860_v35 = vpop.permute.xlu0 %1859  ;;  %v1825_v5 = vrot.slane %v387_v52, 2  ;;  %v2118_v59 = vsel %vm2099_vm5, %v2063_v11, %v8266_v63  ;;  %v8275_v52 = vld [vmem:[#allocation273_spill] sm:$0xff] }
 0x357   : > { %v2391_v7 = vsel %vm2374_vm10, %v2336_v51, %v1860_v35  ;;  %1877 = vrot.lane.b32.xlu1 %v8254_v58, %s4130_s23  ;;  %3738 = vmatprep.mubr.msk.f32.mxu1 %vm2441_vm11, %v2417_v38  ;;  %v8265_v51 = vld [vmem:[#allocation222_spill] sm:$0xff] }
 0x358   : > { %1430 = vrot.lane.b32.xlu0 %v6657_v16, %s4127_s5  ;;  %3699 = vmatprep.mubr.msk.f32.mxu0 %vm2441_vm11, %v2391_v7  ;;  %v8258_v16 = vld [vmem:[#allocation249_spill] sm:$0xff]  ;;  %v2144_v38 = vsel %vm2099_vm5, %v2089_v32, %v8265_v51  ;;  %v8267_v7 = vld [vmem:[#allocation252_spill] sm:$0xff] }
 0x359   : > { %v1862_v13 = vpop.permute.xlu1 %1861  ;;  %v2198_v45 = vsel %vm2154_vm6, %v2143_v28, %v8258_v16  ;;  %v2199_v58 = vsel %vm2154_vm6, %v2144_v38, %v8267_v7  ;;  %v8272_v28 = vld [vmem:[#allocation116_spill] sm:$0xff]  ;;  %v8273_v16 = vld [vmem:[#allocation206_spill] sm:$0xff] }
 0x35a   : > { %v2392_v19 = vsel %vm2374_vm10, %v2337_v61, %v1862_v13  ;;  %v1415_v29 = vpop.permute.xlu0 %1414  ;;  %v2253_v0 = vsel %vm2209_vm7, %v2198_v45, %v6671_v60  ;;  %v1655_v60 = vrot.slane %v386_v9, 1  ;;  %v8271_v13 = vld [vmem:[#allocation274_spill] sm:$0xff] }
 0x35b   : > { %1432 = vrot.lane.b32.xlu1 %v1325_v37, %s4127_s5  ;;  %3700 = vmatmul.mubr.msk.f32.gmra.mrb[16].mxu0 %vm2441_vm11, %v2392_v19  ;;  %v2308_v57 = vsel %vm2264_vm8, %v2253_v0, %v1577_v54  ;;  %v2254_v2 = vsel %vm2209_vm7, %v2199_v58, %v1415_v29 }
 0x35c   : > { %1929 = vrot.lane.b32.xlu0 %v1822_v43, %s4130_s23  ;;  %v2363_v8 = vsel %vm2319_vm9, %v2308_v57, %v1746_v12  ;;  %v1658_v24 = vsel %vm443_vm0, %v1655_v60, %v1657_v26  ;;  %v4081_v26 = vld [vmem:[%s4182_s22 + $0x168] sm:$0xff] }
 0x35d   : > { %v6769_v27 = vpop.permute.xlu1 %1416 }
 0x35e   : > { %v1914_v62 = vpop.permute.xlu0 %1913 }
 0x35f   : > { %v2418_v17 = vsel %vm2374_vm10, %v2363_v8, %v1914_v62  ;;  %1594 = vrot.lane.b32.xlu1 %v6680_v53, %s4128_s20  ;;  %v2009_v53 = vsel %vm1989_vm3, %v4080_v4, %v8268_v3 }
 0x360   : > { %1542 = vrot.lane.b32.xlu0 %v6242_v55, %s4128_s20  ;;  %3739 = vmatmul.mubr.msk.f32.gmra.mrb[14].mxu1 %vm2441_vm11, %v2418_v17  ;;  %v1656_v55 = vsel %vm443_vm0, %v1653_v46, %v1655_v60  ;;  %v2064_v61 = vsel %vm2044_vm4, %v2009_v53, %v8270_v36 }
 0x361   : > { %v1579_v37 = vpop.permute.xlu1 %1578  ;;  %v2119_v45 = vsel %vm2099_vm5, %v2064_v61, %v8273_v16  ;;  %v8281_v16 = vld [vmem:[#allocation151_spill] sm:$0xff] }
 0x362   : > { %v1527_v54 = vpop.permute.xlu0 %1526  ;;  %v2309_v41 = vsel %vm2264_vm8, %v2254_v2, %v1579_v37 }
 0x363   : > { %1596 = vrot.lane.b32.xlu1 %v386_v9, %s4128_s20 }
 0x364   : > { %v3677_v12 = vpop.f32.mrb[0].mxu0  ;;  %1544 = vrot.lane.b32.xlu0 %v6265_v33, %s4128_s20  ;;  %v1823_v33 = vrot.slane %v386_v9, 2  ;;  %v8274_v9 = vld [vmem:[#allocation234_spill] sm:$0xff] }
 0x365   : > { %v6792_v1 = vadd.f32 %v3677_v12, %v6783_v44  ;;  %v2674_v10 = vpop.f32.mrb[1].mxu0  ;;  %v6794_v48 = vpop.permute.xlu1 %1580  ;;  %v2174_v8 = vsel %vm2154_vm6, %v2119_v45, %v8274_v9 }
 0x366   : > { %v6797_v39 = vadd.f32 %v6783_v44, %v2674_v10  ;;  %v1529_v50 = vpop.permute.xlu0 %1528  ;;  %v1824_v49 = vsel %vm715_vm1, %v1821_v25, %v1823_v33  ;;  %v8269_v25 = vld [vmem:[#allocation235_spill] sm:$0xff]  ;;  %v1826_v19 = vsel %vm715_vm1, %v1823_v33, %v1825_v5  ;;  %v2229_v12 = vsel %vm2209_vm7, %v2174_v8, %v8275_v52  ;;  %v8276_v10 = vld [vmem:[#allocation48_spill] sm:$0xff]  ;;  %v8286_v52 = vld [vmem:[#allocation225_spill] sm:$0xff] }
 0x367   : > { %v3547_v6 = vmul.f32 -1.442695, %v6792_v1  ;;  %1763 = vrot.lane.b32.xlu1 %v1656_v55, %s4129_s21  ;;  %v2173_v34 = vsel %vm2154_vm6, %v2118_v59, %v8269_v25  ;;  %v4084_v8 = vld [vmem:[%s4182_s22 + $0xa8] sm:$0xff] }
 0x368   : > { %v3546_v46 = vmul.f32 -1.442695, %v6797_v39  ;;  %1711 = vrot.lane.b32.xlu0 %v8259_v56, %s4129_s21  ;;  %v2228_v43 = vsel %vm2209_vm7, %v2173_v34, %v8271_v13  ;;  %v8277_v56 = vld [vmem:[#allocation114_spill] sm:$0xff] }
 0x369   : > { %3803 = vpow2.f32 %v3547_v6  ;;  %v1748_v20 = vpop.permute.xlu1 %1747  ;;  %v2283_v29 = vsel %vm2264_vm8, %v2228_v43, %v1527_v54  ;;  %v2035_v6 = vsel %vm1989_vm3, %v4081_v26, %v8276_v10  ;;  %v8287_v26 = vld [vmem:[#allocation176_spill] sm:$0xff] }
 0x36a   : > { %3805 = vpow2.f32 %v3546_v46  ;;  %v1696_v47 = vpop.permute.xlu0 %1695  ;;  %v2364_v0 = vsel %vm2319_vm9, %v2309_v41, %v1748_v20  ;;  %v2284_v46 = vsel %vm2264_vm8, %v2229_v12, %v1529_v50 }
 0x36b   : > { %1765 = vrot.lane.b32.xlu1 %v1658_v24, %s4129_s21  ;;  %v2338_v62 = vsel %vm2319_vm9, %v2283_v29, %v1696_v47  ;;  %v8278_v24 = vld [vmem:[#allocation198_spill] sm:$0xff] }
 0x36c   : > { %1713 = vrot.lane.b32.xlu0 %v8263_v14, %s4129_s21  ;;  %v2090_v20 = vsel %vm2044_vm4, %v2035_v6, %v8278_v24  ;;  %v4083_v29 = vld [vmem:[%s4182_s22 + $0xa0] sm:$0xff]  ;;  %v8288_v6 = vld [vmem:[#allocation209_spill] sm:$0xff] }
 0x36d   : > { %v1750_v35 = vpop.permute.xlu1 %1749  ;;  %v2145_v31 = vsel %vm2099_vm5, %v2090_v20, %v8279_v40  ;;  %v8291_v40 = vld [vmem:[#allocation237_spill] sm:$0xff] }
 0x36e   : > { %v1698_v30 = vpop.permute.xlu0 %1697  ;;  %v2200_v23 = vsel %vm2154_vm6, %v2145_v31, %v8280_v18 }
 0x36f   : > { %1931 = vrot.lane.b32.xlu1 %v1824_v49, %s4130_s23  ;;  %v2339_v22 = vsel %vm2319_vm9, %v2284_v46, %v1698_v30  ;;  %v2255_v32 = vsel %vm2209_vm7, %v2200_v23, %v6769_v27  ;;  %v8289_v46 = vld [vmem:[#allocation254_spill] sm:$0xff] }
 0x370   : > { %1879 = vrot.lane.b32.xlu0 %v8272_v28, %s4130_s23  ;;  %v2310_v14 = vsel %vm2264_vm8, %v2255_v32, %v6794_v48  ;;  %v8292_v32 = vld [vmem:[#allocation276_spill] sm:$0xff] }
 0x371   : > { %v1916_v57 = vpop.permute.xlu1 %1915  ;;  %v2365_v5 = vsel %vm2319_vm9, %v2310_v14, %v1750_v35 }
 0x372   : > { %v2419_v17 = vsel %vm2374_vm10, %v2364_v0, %v1916_v57  ;;  %v1864_v60 = vpop.permute.xlu0 %1863  ;;  %v8283_v57 = vld [vmem:[#allocation200_spill] sm:$0xff] }
 0x373   : > { %v3804_v37 = vpop.eup %3803  ;;  %v2393_v55 = vsel %vm2374_vm10, %v2338_v62, %v1864_v60  ;;  %1933 = vrot.lane.b32.xlu1 %v1826_v19, %s4130_s23  ;;  %3741 = vmatprep.mubr.msk.f32.mxu1 %vm2441_vm11, %v2419_v17  ;;  %v4082_v19 = vld [vmem:[%s4182_s22 + $0x170] sm:$0xff]  ;;  %v8284_v62 = vld [vmem:[#allocation99_spill] sm:$0xff]  ;;  %v8285_v60 = vld [vmem:[#allocation177_spill] sm:$0xff] }
 0x374   : > { %v3806_v54 = vpop.eup %3805  ;;  %v3106_v33 = vadd.f32 1.0, %v3804_v37  ;;  %1881 = vrot.lane.b32.xlu0 %v8277_v56, %s4130_s23  ;;  %3702 = vmatprep.mubr.msk.f32.mxu0 %vm2441_vm11, %v2393_v55  ;;  %v2036_v45 = vsel %vm1989_vm3, %v4082_v19, %v8281_v16  ;;  %v2011_v17 = vsel %vm1989_vm3, %v4084_v8, %v8284_v62 }
 0x375   : > { %v3105_v47 = vadd.f32 1.0, %v3806_v54  ;;  %v1866_v15 = vpop.permute.xlu1 %1865  ;;  %v2091_v9 = vsel %vm2044_vm4, %v2036_v45, %v8283_v57  ;;  %v2066_v10 = vsel %vm2044_vm4, %v2011_v17, %v8287_v26  ;;  %v8297_v45 = vld [vmem:[#allocation224_spill] sm:$0xff] }
 0x376   : > { %3807 = vrcp.f32 %v3106_v33  ;;  %v2394_v21 = vsel %vm2374_vm10, %v2339_v22, %v1866_v15  ;;  %v1419_v50 = vpop.permute.xlu0 %1418  ;;  %v2146_v12 = vsel %vm2099_vm5, %v2091_v9, %v8286_v52  ;;  %v8290_v22 = vld [vmem:[#allocation208_spill] sm:$0xff]  ;;  %v8298_v9 = vld [vmem:[#allocation253_spill] sm:$0xff] }
 0x377   : > { %3809 = vrcp.f32 %v3105_v47  ;;  %3703 = vmatmul.mubr.msk.f32.gmra.mrb[18].mxu0 %vm2441_vm11, %v2394_v21  ;;  %v2201_v56 = vsel %vm2154_vm6, %v2146_v12, %v8289_v46  ;;  %v2121_v15 = vsel %vm2099_vm5, %v2066_v10, %v8290_v22 }
 0x378   : > { %v2256_v21 = vsel %vm2209_vm7, %v2201_v56, %v1419_v50 }
 0x379   : > { %v6875_v49 = vpop.permute.xlu1 %1420 }
 0x37a   : > { %v1918_v42 = vpop.permute.xlu0 %1917  ;;  %v3719_v11 = vpop.f32.mrb[0].mxu1 }
 0x37b   : > { %v2420_v51 = vsel %vm2374_vm10, %v2365_v5, %v1918_v42  ;;  %v3680_v38 = vpop.f32.mrb[2].mxu0  ;;  %v6880_v63 = vadd.f32 %v3719_v11, %v6783_v44  ;;  %v2814_v59 = vpop.f32.mrb[1].mxu1 }
 0x37c   : > { %v6884_v7 = vadd.f32 %v3680_v38, %v6783_v44  ;;  %v2684_v27 = vpop.f32.mrb[3].mxu0  ;;  %v6887_v48 = vadd.f32 %v6783_v44, %v2814_v59  ;;  %3742 = vmatmul.mubr.msk.f32.gmra.mrb[16].mxu1 %vm2441_vm11, %v2420_v51 }
 0x37d   : > { %v3575_v35 = vmul.f32 -1.442695, %v6880_v63  ;;  %v6892_v58 = vadd.f32 %v6783_v44, %v2684_v27  ;;  %v1583_v30 = vpop.permute.xlu1 %1582  ;;  %v8293_v27 = vld [vmem:[#allocation236_spill] sm:$0xff] }
 0x37e   : > { %v3549_v4 = vmul.f32 -1.442695, %v6884_v7  ;;  %v3574_v3 = vmul.f32 -1.442695, %v6887_v48  ;;  %v1531_v53 = vpop.permute.xlu0 %1530  ;;  %v2311_v42 = vsel %vm2264_vm8, %v2256_v21, %v1583_v30  ;;  %v2176_v50 = vsel %vm2154_vm6, %v2121_v15, %v8293_v27  ;;  %v4087_v27 = vld [vmem:[%s4182_s22 + $0xb0] sm:$0xff] }
 0x37f   : > { %3811 = vpow2.f32 %v3575_v35  ;;  %v3548_v25 = vmul.f32 -1.442695, %v6892_v58 }
 0x380   : > { %v3808_v34 = vpop.eup %3807  ;;  %3813 = vpow2.f32 %v3549_v4 }
 0x381   : > { %v3810_v2 = vpop.eup %3809  ;;  %v3268_v36 = vmul.f32 %v3808_v34, %v6792_v1  ;;  %3815 = vpow2.f32 %v3548_v25  ;;  %v6903_v61 = vpop.permute.xlu1 %1584  ;;  %v8282_v1 = vld [vmem:[#allocation101_spill] sm:$0xff]  ;;  %v8294_v25 = vld [vmem:[#allocation275_spill] sm:$0xff] }
 0x382   : > { %v3267_v13 = vmul.f32 %v3810_v2, %v6797_v39  ;;  %3817 = vpow2.f32 %v3574_v3  ;;  %v1533_v43 = vpop.permute.xlu0 %1532  ;;  %v2010_v0 = vsel %vm1989_vm3, %v4083_v29, %v8282_v1  ;;  %v2231_v34 = vsel %vm2209_vm7, %v2176_v50, %v8294_v25  ;;  %v8295_v2 = vld [vmem:[#allocation51_spill] sm:$0xff]  ;;  %v8300_v50 = vld [vmem:[#allocation105_spill] sm:$0xff] }
 0x383   : > { %3322 = vst.msk [vmem:[%s6900_s28 + $0x8] sm:$0xff] %vm2044_vm4, %v3268_v36  ;;  %v2065_v37 = vsel %vm2044_vm4, %v2010_v0, %v8285_v60 }
 0x384   : > { %3321 = vst.msk [vmem:[%s6900_s28] sm:$0xff] %vm2044_vm4, %v3267_v13  ;;  %v2120_v33 = vsel %vm2099_vm5, %v2065_v37, %v8288_v6  ;;  %v2286_v13 = vsel %vm2264_vm8, %v2231_v34, %v1533_v43  ;;  %v8302_v34 = vld [vmem:[#allocation179_spill] sm:$0xff] }
 0x385   : > { %v1752_v41 = vpop.permute.xlu1 %1751  ;;  %v2175_v31 = vsel %vm2154_vm6, %v2120_v33, %v8291_v40 }
 0x386   : > { %v1700_v28 = vpop.permute.xlu0 %1699  ;;  %v2230_v14 = vsel %vm2209_vm7, %v2175_v31, %v8292_v32  ;;  %v2366_v38 = vsel %vm2319_vm9, %v2311_v42, %v1752_v41  ;;  %v8296_v41 = vld [vmem:[#allocation47_spill] sm:$0xff] }
 0x387   : > { %v2285_v51 = vsel %vm2264_vm8, %v2230_v14, %v1531_v53  ;;  %v4085_v53 = vld [vmem:[%s4182_s22 + $0x178] sm:$0xff] }
 0x388   : > { %v2340_v35 = vsel %vm2319_vm9, %v2285_v51, %v1700_v28  ;;  %v2037_v36 = vsel %vm1989_vm3, %v4085_v53, %v8295_v2  ;;  %v8299_v51 = vld [vmem:[#allocation155_spill] sm:$0xff]  ;;  %v8303_v53 = vld [vmem:[#allocation229_spill] sm:$0xff] }
 0x389   : > { %v3812_v39 = vpop.eup %3811  ;;  %v1754_v55 = vpop.permute.xlu1 %1753  ;;  %v2092_v28 = vsel %vm2044_vm4, %v2037_v36, %v8296_v41  ;;  %v8304_v41 = vld [vmem:[#allocation211_spill] sm:$0xff] }
 0x38a   : > { %v3814_v54 = vpop.eup %3813  ;;  %v3134_v24 = vadd.f32 1.0, %v3812_v39  ;;  %v1702_v20 = vpop.permute.xlu0 %1701  ;;  %v2147_v29 = vsel %vm2099_vm5, %v2092_v28, %v8297_v45 }
 0x38b   : > { %v3816_v47 = vpop.eup %3815  ;;  %v3108_v18 = vadd.f32 1.0, %v3814_v54  ;;  %v2341_v19 = vsel %vm2319_vm9, %v2286_v13, %v1702_v20  ;;  %v2202_v39 = vsel %vm2154_vm6, %v2147_v29, %v8298_v9  ;;  %v4088_v29 = vld [vmem:[%s4182_s22 + $0xb8] sm:$0xff]  ;;  %v8307_v9 = vld [vmem:[#allocation239_spill] sm:$0xff] }
 0x38c   : > { %v3818_v23 = vpop.eup %3817  ;;  %3819 = vrcp.f32 %v3134_v24  ;;  %v3107_v5 = vadd.f32 1.0, %v3816_v47  ;;  %v2257_v17 = vsel %vm2209_vm7, %v2202_v39, %v6875_v49 }
 0x38d   : > { %3821 = vrcp.f32 %v3108_v18  ;;  %v3133_v11 = vadd.f32 1.0, %v3818_v23  ;;  %v1920_v59 = vpop.permute.xlu1 %1919  ;;  %v2312_v12 = vsel %vm2264_vm8, %v2257_v17, %v6903_v61 }
 0x38e   : > { %3823 = vrcp.f32 %v3107_v5  ;;  %v2421_v4 = vsel %vm2374_vm10, %v2366_v38, %v1920_v59  ;;  %v1868_v3 = vpop.permute.xlu0 %1867  ;;  %v2367_v49 = vsel %vm2319_vm9, %v2312_v12, %v1754_v55 }
 0x38f   : > { %3825 = vrcp.f32 %v3133_v11  ;;  %v2395_v30 = vsel %vm2374_vm10, %v2340_v35, %v1868_v3  ;;  %3744 = vmatprep.mubr.msk.f32.mxu1 %vm2441_vm11, %v2421_v4  ;;  %v4086_v11 = vld [vmem:[%s4182_s22 + $0x180] sm:$0xff]  ;;  %v2012_v35 = vsel %vm1989_vm3, %v4087_v27, %v8300_v50 }
 0x390   : > { %3705 = vmatprep.mubr.msk.f32.mxu0 %vm2441_vm11, %v2395_v30  ;;  %v8301_v4 = vld [vmem:[#allocation202_spill] sm:$0xff]  ;;  %v2067_v30 = vsel %vm2044_vm4, %v2012_v35, %v8302_v34  ;;  %v8315_v35 = vld [vmem:[#allocation227_spill] sm:$0xff] }
 0x391   : > { %v1870_v16 = vpop.permute.xlu1 %1869  ;;  %v2122_v28 = vsel %vm2099_vm5, %v2067_v30, %v8304_v41 }
 0x392   : > { %v2396_v1 = vsel %vm2374_vm10, %v2341_v19, %v1870_v16  ;;  %v6960_v0 = vpop.permute.xlu0 %1422  ;;  %v3722_v57 = vpop.f32.mrb[2].mxu1  ;;  %v8305_v19 = vld [vmem:[#allocation256_spill] sm:$0xff]  ;;  %v2177_v39 = vsel %vm2154_vm6, %v2122_v28, %v8307_v9 }
 0x393   : > { %v3683_v43 = vpop.f32.mrb[4].mxu0  ;;  %v6965_v8 = vadd.f32 %v3722_v57, %v6783_v44  ;;  %3706 = vmatmul.mubr.msk.f32.gmra.mrb[20].mxu0 %vm2441_vm11, %v2396_v1  ;;  %v2824_v62 = vpop.f32.mrb[3].mxu1  ;;  %v8306_v1 = vld [vmem:[#allocation103_spill] sm:$0xff] }
 0x394   : > { %v6971_v60 = vadd.f32 %v3683_v43, %v6783_v44  ;;  %v2694_v37 = vpop.f32.mrb[5].mxu0  ;;  %v6974_v52 = vadd.f32 %v6783_v44, %v2824_v62  ;;  %v2013_v57 = vsel %vm1989_vm3, %v4088_v29, %v8306_v1  ;;  %v8308_v62 = vld [vmem:[#allocation178_spill] sm:$0xff] }
 0x395   : > { %v3577_v54 = vmul.f32 -1.442695, %v6965_v8  ;;  %v6980_v26 = vadd.f32 %v6783_v44, %v2694_v37  ;;  %v6982_v10 = vpop.permute.xlu1 %1424  ;;  %v2068_v17 = vsel %vm2044_vm4, %v2013_v57, %v8308_v62  ;;  %v8309_v37 = vld [vmem:[#allocation278_spill] sm:$0xff] }
 0x396   : > { %v3820_v6 = vpop.eup %3819  ;;  %v3551_v33 = vmul.f32 -1.442695, %v6971_v60  ;;  %v3576_v46 = vmul.f32 -1.442695, %v6974_v52  ;;  %v1922_v56 = vpop.permute.xlu0 %1921  ;;  %v2232_v12 = vsel %vm2209_vm7, %v2177_v39, %v8309_v37 }
 0x397   : > { %v3822_v24 = vpop.eup %3821  ;;  %v3296_v61 = vmul.f32 %v3820_v6, %v6880_v63  ;;  %3827 = vpow2.f32 %v3577_v54  ;;  %v3550_v20 = vmul.f32 -1.442695, %v6980_v26  ;;  %v2422_v47 = vsel %vm2374_vm10, %v2367_v49, %v1922_v56  ;;  %v8310_v6 = vld [vmem:[#allocation210_spill] sm:$0xff] }
 0x398   : > { %v3824_v22 = vpop.eup %3823  ;;  %v3270_v15 = vmul.f32 %v3822_v24, %v6884_v7  ;;  %3829 = vpow2.f32 %v3551_v33  ;;  %3745 = vmatmul.mubr.msk.f32.gmra.mrb[18].mxu1 %vm2441_vm11, %v2422_v47  ;;  %v2123_v49 = vsel %vm2099_vm5, %v2068_v17, %v8310_v6  ;;  %v8311_v24 = vld [vmem:[#allocation238_spill] sm:$0xff] }
 0x399   : > { %v3826_v55 = vpop.eup %3825  ;;  %3350 = vst.msk [vmem:[%s6900_s28 + $0xe8] sm:$0xff] %vm2044_vm4, %v3296_v61  ;;  %v3269_v40 = vmul.f32 %v3824_v22, %v6892_v58  ;;  %3831 = vpow2.f32 %v3550_v20  ;;  %v1587_v63 = vpop.permute.xlu1 %1586 }
 0x39a   : > { %3324 = vst.msk [vmem:[%s6900_s28 + $0x18] sm:$0xff] %vm2044_vm4, %v3270_v15  ;;  %v3295_v31 = vmul.f32 %v3826_v55, %v6887_v48  ;;  %3833 = vpow2.f32 %v3576_v46  ;;  %v1535_v21 = vpop.permute.xlu0 %1534  ;;  %v2038_v48 = vsel %vm1989_vm3, %v4086_v11, %v8299_v51  ;;  %v8312_v15 = vld [vmem:[#allocation277_spill] sm:$0xff] }
 0x39b   : > { %3323 = vst.msk [vmem:[%s6900_s28 + $0x10] sm:$0xff] %vm2044_vm4, %v3269_v40  ;;  %v2093_v3 = vsel %vm2044_vm4, %v2038_v48, %v8301_v4  ;;  %v2287_v33 = vsel %vm2264_vm8, %v2232_v12, %v1535_v21  ;;  %v8314_v51 = vld [vmem:[#allocation201_spill] sm:$0xff] }
 0x39c   : > { %3349 = vst.msk [vmem:[%s6900_s28 + $0xe0] sm:$0xff] %vm2044_vm4, %v3295_v31  ;;  %v2148_v2 = vsel %vm2099_vm5, %v2093_v3, %v8303_v53 }
 0x39d   : > { %v7002_v7 = vpop.permute.xlu1 %1588  ;;  %v2203_v16 = vsel %vm2154_vm6, %v2148_v2, %v8305_v19  ;;  %v8316_v2 = vld [vmem:[#allocation255_spill] sm:$0xff] }
 0x39e   : > { %v1537_v18 = vpop.permute.xlu0 %1536  ;;  %v2258_v43 = vsel %vm2209_vm7, %v2203_v16, %v6960_v0  ;;  %v2178_v0 = vsel %vm2154_vm6, %v2123_v49, %v8311_v24  ;;  %v8317_v24 = vld [vmem:[#allocation107_spill] sm:$0xff] }
 0x39f   : > { %v2313_v54 = vsel %vm2264_vm8, %v2258_v43, %v1587_v63  ;;  %v2233_v55 = vsel %vm2209_vm7, %v2178_v0, %v8312_v15  ;;  %v8319_v15 = vld [vmem:[#allocation109_spill] sm:$0xff] }
 0x3a1   : > { %v3828_v23 = vpop.eup %3827  ;;  %v1756_v32 = vpop.permute.xlu1 %1755 }
 0x3a2   : > { %v3830_v58 = vpop.eup %3829  ;;  %v3136_v14 = vadd.f32 1.0, %v3828_v23  ;;  %v1704_v5 = vpop.permute.xlu0 %1703  ;;  %v2368_v46 = vsel %vm2319_vm9, %v2313_v54, %v1756_v32  ;;  %v4089_v23 = vld [vmem:[%s4182_s22 + $0x188] sm:$0xff]  ;;  %v8313_v32 = vld [vmem:[#allocation153_spill] sm:$0xff] }
 0x3a3   : > { %v3832_v42 = vpop.eup %3831  ;;  %v3110_v38 = vadd.f32 1.0, %v3830_v58  ;;  %v2342_v61 = vsel %vm2319_vm9, %v2287_v33, %v1704_v5  ;;  %v2039_v58 = vsel %vm1989_vm3, %v4089_v23, %v8313_v32  ;;  %v8322_v32 = vld [vmem:[#allocation181_spill] sm:$0xff] }
 0x3a4   : > { %v3834_v59 = vpop.eup %3833  ;;  %3835 = vrcp.f32 %v3136_v14  ;;  %v3109_v25 = vadd.f32 1.0, %v3832_v42  ;;  %v2288_v14 = vsel %vm2264_vm8, %v2233_v55, %v1537_v18  ;;  %v2094_v48 = vsel %vm2044_vm4, %v2039_v58, %v8314_v51  ;;  %v8324_v51 = vld [vmem:[#allocation231_spill] sm:$0xff] }
 0x3a5   : > { %3837 = vrcp.f32 %v3110_v38  ;;  %v3135_v36 = vadd.f32 1.0, %v3834_v59  ;;  %v7016_v13 = vpop.permute.xlu1 %1757  ;;  %v2149_v4 = vsel %vm2099_vm5, %v2094_v48, %v8315_v35 }
 0x3a6   : > { %3839 = vrcp.f32 %v3109_v25  ;;  %v1706_v45 = vpop.permute.xlu0 %1705 }
 0x3a7   : > { %3841 = vrcp.f32 %v3135_v36  ;;  %v2343_v38 = vsel %vm2319_vm9, %v2288_v14, %v1706_v45  ;;  %v2204_v36 = vsel %vm2154_vm6, %v2149_v4, %v8316_v2  ;;  %v8323_v14 = vld [vmem:[#allocation212_spill] sm:$0xff]  ;;  %v8327_v4 = vld [vmem:[#allocation258_spill] sm:$0xff] }
 0x3a8   : > { %v2259_v45 = vsel %vm2209_vm7, %v2204_v36, %v6982_v10  ;;  %v8329_v36 = vld [vmem:[#allocation281_spill] sm:$0xff] }
 0x3a9   : > { %v1924_v56 = vpop.permute.xlu1 %1923 }
 0x3aa   : > { %v2423_v20 = vsel %vm2374_vm10, %v2368_v46, %v1924_v56  ;;  %v1872_v47 = vpop.permute.xlu0 %1871  ;;  %v3725_v22 = vpop.f32.mrb[4].mxu1  ;;  %v4090_v56 = vld [vmem:[%s4182_s22 + $0xc8] sm:$0xff] }
 0x3ab   : > { %v2397_v40 = vsel %vm2374_vm10, %v2342_v61, %v1872_v47  ;;  %v3686_v63 = vpop.f32.mrb[6].mxu0  ;;  %v7046_v31 = vadd.f32 %v3725_v22, %v6783_v44  ;;  %v2834_v21 = vpop.f32.mrb[5].mxu1  ;;  %3747 = vmatprep.mubr.msk.f32.mxu1 %vm2441_vm11, %v2423_v20  ;;  %v2015_v0 = vsel %vm1989_vm3, %v4090_v56, %v8317_v24  ;;  %v4091_v61 = vld [vmem:[%s4182_s22 + $0x190] sm:$0xff]  ;;  %v8318_v20 = vld [vmem:[#allocation157_spill] sm:$0xff]  ;;  %v4092_v22 = vld [vmem:[%s4182_s22 + $0xc0] sm:$0xff] }
 0x3ac   : > { %v7054_v5 = vadd.f32 %v3686_v63, %v6783_v44  ;;  %v2704_v42 = vpop.f32.mrb[7].mxu0  ;;  %3708 = vmatprep.mubr.msk.f32.mxu0 %vm2441_vm11, %v2397_v40  ;;  %v7058_v11 = vadd.f32 %v6783_v44, %v2834_v21  ;;  %v2040_v47 = vsel %vm1989_vm3, %v4091_v61, %v8318_v20  ;;  %v2014_v55 = vsel %vm1989_vm3, %v4092_v22, %v8319_v15  ;;  %v8320_v40 = vld [vmem:[#allocation180_spill] sm:$0xff]  ;;  %v8332_v15 = vld [vmem:[#allocation203_spill] sm:$0xff] }
 0x3ad   : > { %v3579_v59 = vmul.f32 -1.442695, %v7046_v31  ;;  %v7065_v27 = vadd.f32 %v6783_v44, %v2704_v42  ;;  %v1874_v18 = vpop.permute.xlu1 %1873  ;;  %v2070_v63 = vsel %vm2044_vm4, %v2015_v0, %v8320_v40  ;;  %v8321_v21 = vld [vmem:[#allocation204_spill] sm:$0xff]  ;;  %v2069_v58 = vsel %vm2044_vm4, %v2014_v55, %v8322_v32  ;;  %v4093_v0 = vld [vmem:[%s4182_s22 + $0x198] sm:$0xff] }
 0x3ae   : > { %v3836_v50 = vpop.eup %3835  ;;  %v3553_v3 = vmul.f32 -1.442695, %v7054_v5  ;;  %v3578_v25 = vmul.f32 -1.442695, %v7058_v11  ;;  %v2398_v34 = vsel %vm2374_vm10, %v2343_v38, %v1874_v18  ;;  %v7072_v30 = vpop.permute.xlu0 %1426  ;;  %v2095_v23 = vsel %vm2044_vm4, %v2040_v47, %v8321_v21  ;;  %v8331_v61 = vld [vmem:[#allocation156_spill] sm:$0xff] }
 0x3af   : > { %v3838_v53 = vpop.eup %3837  ;;  %v3298_v41 = vmul.f32 %v3836_v50, %v6965_v8  ;;  %3843 = vpow2.f32 %v3579_v59  ;;  %v3552_v28 = vmul.f32 -1.442695, %v7065_v27  ;;  %3709 = vmatmul.mubr.msk.f32.gmra.mrb[22].mxu0 %vm2441_vm11, %v2398_v34  ;;  %v2314_v8 = vsel %vm2264_vm8, %v2259_v45, %v7002_v7  ;;  %v8325_v59 = vld [vmem:[#allocation213_spill] sm:$0xff]  ;;  %v8326_v50 = vld [vmem:[#allocation240_spill] sm:$0xff] }
 0x3b0   : > { %v3840_v19 = vpop.eup %3839  ;;  %v3272_v16 = vmul.f32 %v3838_v53, %v6971_v60  ;;  %3845 = vpow2.f32 %v3553_v3  ;;  %v2369_v9 = vsel %vm2319_vm9, %v2314_v8, %v7016_v13  ;;  %v2125_v42 = vsel %vm2099_vm5, %v2070_v63, %v8323_v14  ;;  %v8328_v53 = vld [vmem:[#allocation241_spill] sm:$0xff] }
 0x3b1   : > { %v3842_v29 = vpop.eup %3841  ;;  %3352 = vst.msk [vmem:[%s6900_s28 + $0xf8] sm:$0xff] %vm2044_vm4, %v3298_v41  ;;  %v3271_v1 = vmul.f32 %v3840_v19, %v6980_v26  ;;  %3847 = vpow2.f32 %v3552_v28  ;;  %v7087_v57 = vpop.permute.xlu1 %1428  ;;  %v2150_v48 = vsel %vm2099_vm5, %v2095_v23, %v8324_v51  ;;  %v2124_v18 = vsel %vm2099_vm5, %v2069_v58, %v8325_v59  ;;  %v8334_v14 = vld [vmem:[#allocation257_spill] sm:$0xff] }
 0x3b2   : > { %3326 = vst.msk [vmem:[%s6900_s28 + $0x28] sm:$0xff] %vm2044_vm4, %v3272_v16  ;;  %v3297_v60 = vmul.f32 %v3842_v29, %v6974_v52  ;;  %3849 = vpow2.f32 %v3578_v25  ;;  %v1926_v10 = vpop.permute.xlu0 %1925  ;;  %v2180_v35 = vsel %vm2154_vm6, %v2125_v42, %v8326_v50  ;;  %v2205_v3 = vsel %vm2154_vm6, %v2150_v48, %v8327_v4  ;;  %v8330_v29 = vld [vmem:[#allocation282_spill] sm:$0xff] }
 0x3b3   : > { %3325 = vst.msk [vmem:[%s6900_s28 + $0x20] sm:$0xff] %vm2044_vm4, %v3271_v1  ;;  %v2424_v39 = vsel %vm2374_vm10, %v2369_v9, %v1926_v10  ;;  %v2179_v2 = vsel %vm2154_vm6, %v2124_v18, %v8328_v53  ;;  %v2235_v41 = vsel %vm2209_vm7, %v2180_v35, %v8329_v36  ;;  %v2260_v28 = vsel %vm2209_vm7, %v2205_v3, %v7072_v30 }
 0x3b4   : > { %3351 = vst.msk [vmem:[%s6900_s28 + $0xf0] sm:$0xff] %vm2044_vm4, %v3297_v60  ;;  %3748 = vmatmul.mubr.msk.f32.gmra.mrb[20].mxu1 %vm2441_vm11, %v2424_v39  ;;  %v2234_v1 = vsel %vm2209_vm7, %v2179_v2, %v8330_v29  ;;  %v2041_v20 = vsel %vm1989_vm3, %v4093_v0, %v8331_v61  ;;  %v4095_v29 = vld [vmem:[%s4182_s22 + $0xd0] sm:$0xff]  ;;  %v8342_v0 = vld [vmem:[#allocation2_spill] sm:$0xff] }
 0x3b5   : > { %v1591_v26 = vpop.permute.xlu1 %1590  ;;  %v2096_v55 = vsel %vm2044_vm4, %v2041_v20, %v8332_v15  ;;  %v8343_v20 = vld [vmem:[#allocation214_spill] sm:$0xff] }
 0x3b6   : > { %v1539_v7 = vpop.permute.xlu0 %1538  ;;  %v2315_v8 = vsel %vm2264_vm8, %v2260_v28, %v1591_v26  ;;  %v4094_v28 = vld [vmem:[%s4182_s22 + $0xd8] sm:$0xff] }
 0x3b7   : > { %v2289_v39 = vsel %vm2264_vm8, %v2234_v1, %v1539_v7  ;;  %v8336_v1 = vld [vmem:[#allocation113_spill] sm:$0xff] }
 0x3b9   : > { %v3844_v43 = vpop.eup %3843  ;;  %v7100_v62 = vpop.permute.xlu1 %1592 }
 0x3ba   : > { %v3846_v52 = vpop.eup %3845  ;;  %v3138_v17 = vadd.f32 1.0, %v3844_v43  ;;  %v1541_v13 = vpop.permute.xlu0 %1540 }
 0x3bb   : > { %v3848_v37 = vpop.eup %3847  ;;  %v3112_v12 = vadd.f32 1.0, %v3846_v52  ;;  %v2290_v22 = vsel %vm2264_vm8, %v2235_v41, %v1541_v13 }
 0x3bc   : > { %v3850_v54 = vpop.eup %3849  ;;  %3851 = vrcp.f32 %v3138_v17  ;;  %v3111_v6 = vadd.f32 1.0, %v3848_v37 }
 0x3bd   : > { %3853 = vrcp.f32 %v3112_v12  ;;  %v3137_v49 = vadd.f32 1.0, %v3850_v54  ;;  %v1760_v33 = vpop.permute.xlu1 %1759 }
 0x3be   : > { %3855 = vrcp.f32 %v3111_v6  ;;  %v1708_v46 = vpop.permute.xlu0 %1707  ;;  %v2370_v30 = vsel %vm2319_vm9, %v2315_v8, %v1760_v33  ;;  %v2016_v8 = vsel %vm1989_vm3, %v4095_v29, %v8336_v1 }
 0x3bf   : > { %3857 = vrcp.f32 %v3137_v49  ;;  %v2344_v26 = vsel %vm2319_vm9, %v2289_v39, %v1708_v46  ;;  %v8337_v39 = vld [vmem:[#allocation158_spill] sm:$0xff] }
 0x3c1   : > { %v1762_v38 = vpop.permute.xlu1 %1761 }
 0x3c2   : > { %v1710_v25 = vpop.permute.xlu0 %1709  ;;  %v3728_v34 = vpop.f32.mrb[6].mxu1 }
 0x3c3   : > { %v3689_v19 = vpop.f32.mrb[8].mxu0  ;;  %v7134_v16 = vadd.f32 %v3728_v34, %v6783_v44  ;;  %v2844_v45 = vpop.f32.mrb[7].mxu1  ;;  %v2345_v63 = vsel %vm2319_vm9, %v2290_v22, %v1710_v25 }
 0x3c4   : > { %v7140_v60 = vadd.f32 %v3689_v19, %v6783_v44  ;;  %v2714_v9 = vpop.f32.mrb[9].mxu0  ;;  %v7143_v10 = vadd.f32 %v6783_v44, %v2844_v45  ;;  %v8335_v19 = vld [vmem:[#allocation111_spill] sm:$0xff] }
 0x3c5   : > { %v3581_v43 = vmul.f32 -1.442695, %v7134_v16  ;;  %v7149_v52 = vadd.f32 %v6783_v44, %v2714_v9  ;;  %v1928_v17 = vpop.permute.xlu1 %1927  ;;  %v2017_v45 = vsel %vm1989_vm3, %v4094_v28, %v8335_v19  ;;  %v4096_v9 = vld [vmem:[%s4182_s22 + $0x1a8] sm:$0xff] }
 0x3c6   : > { %v3852_v37 = vpop.eup %3851  ;;  %v3555_v12 = vmul.f32 -1.442695, %v7140_v60  ;;  %v3580_v54 = vmul.f32 -1.442695, %v7143_v10  ;;  %v2425_v6 = vsel %vm2374_vm10, %v2370_v30, %v1928_v17  ;;  %v1876_v49 = vpop.permute.xlu0 %1875  ;;  %v2043_v30 = vsel %vm1989_vm3, %v4096_v9, %v8337_v39 }
 0x3c7   : > { %v3854_v7 = vpop.eup %3853  ;;  %v3300_v33 = vmul.f32 %v3852_v37, %v7046_v31  ;;  %3859 = vpow2.f32 %v3581_v43  ;;  %v3554_v56 = vmul.f32 -1.442695, %v7149_v52  ;;  %v2399_v24 = vsel %vm2374_vm10, %v2344_v26, %v1876_v49  ;;  %3750 = vmatprep.mubr.msk.f32.mxu1 %vm2441_vm11, %v2425_v6  ;;  %v4097_v37 = vld [vmem:[%s4182_s22 + $0x1a0] sm:$0xff]  ;;  %v8338_v26 = vld [vmem:[#allocation159_spill] sm:$0xff] }
 0x3c8   : > { %v3856_v46 = vpop.eup %3855  ;;  %v3274_v47 = vmul.f32 %v3854_v7, %v7054_v5  ;;  %3861 = vpow2.f32 %v3555_v12  ;;  %3711 = vmatprep.mubr.msk.f32.mxu0 %vm2441_vm11, %v2399_v24  ;;  %v8333_v5 = vld [vmem:[#allocation230_spill] sm:$0xff]  ;;  %v2042_v12 = vsel %vm1989_vm3, %v4097_v37, %v8338_v26  ;;  %v8340_v49 = vld [vmem:[#allocation183_spill] sm:$0xff]  ;;  %v8341_v24 = vld [vmem:[#allocation4_spill] sm:$0xff] }
 0x3c9   : > { %v3858_v31 = vpop.eup %3857  ;;  %3354 = vst.msk [vmem:[%s6900_s28 + $0x108] sm:$0xff] %vm2044_vm4, %v3300_v33  ;;  %v3273_v40 = vmul.f32 %v3856_v46, %v7065_v27  ;;  %3863 = vpow2.f32 %v3554_v56  ;;  %v1878_v21 = vpop.permute.xlu1 %1877  ;;  %v2151_v13 = vsel %vm2099_vm5, %v2096_v55, %v8333_v5  ;;  %v2071_v7 = vsel %vm2044_vm4, %v2016_v8, %v8340_v49  ;;  %v8345_v55 = vld [vmem:[#allocation60_spill] sm:$0xff] }
 0x3ca   : > { %3328 = vst.msk [vmem:[%s6900_s28 + $0x38] sm:$0xff] %vm2044_vm4, %v3274_v47  ;;  %v3299_v23 = vmul.f32 %v3858_v31, %v7058_v11  ;;  %3865 = vpow2.f32 %v3580_v54  ;;  %v2400_v32 = vsel %vm2374_vm10, %v2345_v63, %v1878_v21  ;;  %v1431_v58 = vpop.permute.xlu0 %1430  ;;  %v2206_v42 = vsel %vm2154_vm6, %v2151_v13, %v8334_v14  ;;  %v8339_v54 = vld [vmem:[#allocation182_spill] sm:$0xff]  ;;  %v8344_v31 = vld [vmem:[#allocation215_spill] sm:$0xff]  ;;  %v8346_v63 = vld [vmem:[#allocation57_spill] sm:$0xff] }
 0x3cb   : > { %3327 = vst.msk [vmem:[%s6900_s28 + $0x30] sm:$0xff] %vm2044_vm4, %v3273_v40  ;;  %3712 = vmatmul.mubr.msk.f32.gmra.mrb[24].mxu0 %vm2441_vm11, %v2400_v32  ;;  %v2261_v27 = vsel %vm2209_vm7, %v2206_v42, %v7087_v57  ;;  %v2072_v6 = vsel %vm2044_vm4, %v2017_v45, %v8339_v54  ;;  %v2098_v46 = vsel %vm2044_vm4, %v2043_v30, %v8341_v24  ;;  %v8347_v32 = vld [vmem:[#allocation243_spill] sm:$0xff] }
 0x3cc   : > { %3353 = vst.msk [vmem:[%s6900_s28 + $0x100] sm:$0xff] %vm2044_vm4, %v3299_v23  ;;  %v2316_v51 = vsel %vm2264_vm8, %v2261_v27, %v7100_v62  ;;  %v2097_v61 = vsel %vm2044_vm4, %v2042_v12, %v8342_v0  ;;  %v2127_v47 = vsel %vm2099_vm5, %v2072_v6, %v8343_v20  ;;  %v2126_v15 = vsel %vm2099_vm5, %v2071_v7, %v8344_v31  ;;  %v8348_v42 = vld [vmem:[#allocation259_spill] sm:$0xff] }
 0x3cd   : > { %v7188_v11 = vpop.permute.xlu1 %1432  ;;  %v2371_v48 = vsel %vm2319_vm9, %v2316_v51, %v1762_v38  ;;  %v2153_v40 = vsel %vm2099_vm5, %v2098_v46, %v8345_v55  ;;  %v2152_v21 = vsel %vm2099_vm5, %v2097_v61, %v8346_v63  ;;  %v2181_v14 = vsel %vm2154_vm6, %v2126_v15, %v8347_v32  ;;  %v8349_v51 = vld [vmem:[#allocation260_spill] sm:$0xff] }
 0x3ce   : > { %v1930_v59 = vpop.permute.xlu0 %1929  ;;  %v2208_v27 = vsel %vm2154_vm6, %v2153_v40, %v8348_v42 }
 0x3cf   : > { %v2426_v18 = vsel %vm2374_vm10, %v2371_v48, %v1930_v59  ;;  %v2207_v48 = vsel %vm2154_vm6, %v2152_v21, %v8349_v51 }
 0x3d0   : > { %3751 = vmatmul.mubr.msk.f32.gmra.mrb[22].mxu1 %vm2441_vm11, %v2426_v18 }
 0x3d1   : > { %v3860_v50 = vpop.eup %3859  ;;  %v1595_v35 = vpop.permute.xlu1 %1594 }
 0x3d2   : > { %v3862_v4 = vpop.eup %3861  ;;  %v3140_v3 = vadd.f32 1.0, %v3860_v50  ;;  %v1543_v25 = vpop.permute.xlu0 %1542 }
 0x3d3   : > { %v3864_v57 = vpop.eup %3863  ;;  %v3114_v34 = vadd.f32 1.0, %v3862_v4  ;;  %v8350_v4 = vld [vmem:[#allocation286_spill] sm:$0xff] }
 0x3d4   : > { %v3866_v62 = vpop.eup %3865  ;;  %3867 = vrcp.f32 %v3140_v3  ;;  %v3113_v53 = vadd.f32 1.0, %v3864_v57  ;;  %v2236_v3 = vsel %vm2209_vm7, %v2181_v14, %v8350_v4 }
 0x3d5   : > { %3869 = vrcp.f32 %v3114_v34  ;;  %v3139_v38 = vadd.f32 1.0, %v3866_v62  ;;  %v7193_v2 = vpop.permute.xlu1 %1596  ;;  %v2262_v34 = vsel %vm2209_vm7, %v2207_v48, %v1431_v58  ;;  %v2291_v58 = vsel %vm2264_vm8, %v2236_v3, %v1543_v25 }
 0x3d6   : > { %3871 = vrcp.f32 %v3113_v53  ;;  %v7195_v36 = vpop.permute.xlu0 %1544  ;;  %v2317_v28 = vsel %vm2264_vm8, %v2262_v34, %v1595_v35 }
 0x3d7   : > { %3873 = vrcp.f32 %v3139_v38 }
 0x3d9   : > { %v1764_v41 = vpop.permute.xlu1 %1763 }
 0x3da   : > { %v1712_v43 = vpop.permute.xlu0 %1711  ;;  %v3692_v17 = vpop.f32.mrb[10].mxu0  ;;  %v2372_v1 = vsel %vm2319_vm9, %v2317_v28, %v1764_v41  ;;  %v2263_v41 = vsel %vm2209_vm7, %v2208_v27, %v7188_v11 }
 0x3db   : > { %v7214_v33 = vadd.f32 %v3692_v17, %v6783_v44  ;;  %v2724_v56 = vpop.f32.mrb[11].mxu0  ;;  %v2346_v9 = vsel %vm2319_vm9, %v2291_v58, %v1712_v43  ;;  %v2318_v12 = vsel %vm2264_vm8, %v2263_v41, %v7193_v2  ;;  %v7301_v58 = vld [vmem:[%s7407_s3] ss:$0 sm:$0xff] }
 0x3dc   : > { %v7223_v22 = vadd.f32 %v6783_v44, %v2724_v56 }
 0x3dd   : > { %v3557_v5 = vmul.f32 -1.442695, %v7214_v33  ;;  %v1766_v13 = vpop.permute.xlu1 %1765 }
 0x3de   : > { %v3868_v23 = vpop.eup %3867  ;;  %v3556_v59 = vmul.f32 -1.442695, %v7223_v22  ;;  %v1714_v18 = vpop.permute.xlu0 %1713  ;;  %v2373_v11 = vsel %vm2319_vm9, %v2318_v12, %v1766_v13 }
 0x3df   : > { %v3870_v50 = vpop.eup %3869  ;;  %v3302_v57 = vmul.f32 %v3868_v23, %v7134_v16  ;;  %3875 = vpow2.f32 %v3557_v5  ;;  %v3731_v62 = vpop.f32.mrb[8].mxu1 }
 0x3e0   : > { %v3872_v53 = vpop.eup %3871  ;;  %v3276_v38 = vmul.f32 %v3870_v50, %v7140_v60  ;;  %3877 = vpow2.f32 %v3556_v59  ;;  %v7246_v19 = vadd.f32 %v3731_v62, %v6783_v44  ;;  %v2854_v45 = vpop.f32.mrb[9].mxu1 }
 0x3e1   : > { %v3874_v29 = vpop.eup %3873  ;;  %3356 = vst.msk [vmem:[%s6900_s28 + $0x118] sm:$0xff] %vm2044_vm4, %v3302_v57  ;;  %v3275_v16 = vmul.f32 %v3872_v53, %v7149_v52  ;;  %v2855_v60 = vadd.f32 %v6783_v44, %v2854_v45  ;;  %v1932_v8 = vpop.permute.xlu1 %1931  ;;  %v8351_v52 = vld [vmem:[#allocation242_spill] sm:$0xff] }
 0x3e2   : > { %3330 = vst.msk [vmem:[%s6900_s28 + $0x48] sm:$0xff] %vm2044_vm4, %v3276_v38  ;;  %v3301_v35 = vmul.f32 %v3874_v29, %v7143_v10  ;;  %v3583_v39 = vmul.f32 -1.442695, %v7246_v19  ;;  %v2427_v30 = vsel %vm2374_vm10, %v2372_v1, %v1932_v8  ;;  %v1880_v17 = vpop.permute.xlu0 %1879  ;;  %v2182_v25 = vsel %vm2154_vm6, %v2127_v47, %v8351_v52  ;;  %v8352_v10 = vld [vmem:[#allocation285_spill] sm:$0xff] }
 0x3e3   : > { %3329 = vst.msk [vmem:[%s6900_s28 + $0x40] sm:$0xff] %vm2044_vm4, %v3275_v16  ;;  %v3582_v37 = vmul.f32 -1.442695, %v2855_v60  ;;  %v2401_v26 = vsel %vm2374_vm10, %v2346_v9, %v1880_v17  ;;  %3753 = vmatprep.mubr.msk.f32.mxu1 %vm2441_vm11, %v2427_v30  ;;  %v2237_v43 = vsel %vm2209_vm7, %v2182_v25, %v8352_v10 }
 0x3e4   : > { %3355 = vst.msk [vmem:[%s6900_s28 + $0x110] sm:$0xff] %vm2044_vm4, %v3301_v35  ;;  %3879 = vpow2.f32 %v3583_v39  ;;  %3714 = vmatprep.mubr.msk.f32.mxu0 %vm2441_vm11, %v2401_v26  ;;  %v2292_v54 = vsel %vm2264_vm8, %v2237_v43, %v7195_v36 }
 0x3e5   : > { %3881 = vpow2.f32 %v3582_v37  ;;  %v1934_v6 = vpop.permute.xlu1 %1933  ;;  %v2347_v49 = vsel %vm2319_vm9, %v2292_v54, %v1714_v18 }
 0x3e6   : > { %v2428_v7 = vsel %vm2374_vm10, %v2373_v11, %v1934_v6  ;;  %v1882_v56 = vpop.permute.xlu0 %1881 }
 0x3e7   : > { %v2402_v24 = vsel %vm2374_vm10, %v2347_v49, %v1882_v56  ;;  %3754 = vmatmul.mubr.msk.f32.gmra.mrb[24].mxu1 %vm2441_vm11, %v2428_v7 }
 0x3e8   : > { %3715 = vmatmul.mubr.msk.f32.gmra.mrb[26].mxu0 %vm2441_vm11, %v2402_v24 }
 0x3e9   : > { %v3876_v2 = vpop.eup %3875 }
 0x3ea   : > { %v3878_v46 = vpop.eup %3877  ;;  %v3116_v0 = vadd.f32 1.0, %v3876_v2 }
 0x3eb   : > { %v3115_v61 = vadd.f32 1.0, %v3878_v46 }
 0x3ec   : > { %3883 = vrcp.f32 %v3116_v0 }
 0x3ed   : > { %3885 = vrcp.f32 %v3115_v61 }
 0x3ee   : > { %v3880_v36 = vpop.eup %3879 }
 0x3ef   : > { %v3882_v20 = vpop.eup %3881  ;;  %v3142_v47 = vadd.f32 1.0, %v3880_v36 }
 0x3f0   : > { %v3141_v31 = vadd.f32 1.0, %v3882_v20 }
 0x3f1   : > { %3887 = vrcp.f32 %v3142_v47 }
 0x3f2   : > { %3889 = vrcp.f32 %v3141_v31 }
 0x3f6   : > { %v3884_v15 = vpop.eup %3883  ;;  %v3695_v55 = vpop.f32.mrb[12].mxu0 }
 0x3f7   : > { %v3886_v40 = vpop.eup %3885  ;;  %v3278_v63 = vmul.f32 %v3884_v15, %v7214_v33  ;;  %v2740_v21 = vadd.f32 %v3695_v55, %v6783_v44  ;;  %v2734_v5 = vpop.f32.mrb[13].mxu0 }
 0x3f8   : > { %v3277_v13 = vmul.f32 %v3886_v40, %v7223_v22  ;;  %v2735_v23 = vadd.f32 %v6783_v44, %v2734_v5 }
 0x3f9   : > { %3332 = vst.msk [vmem:[%s6900_s28 + $0x58] sm:$0xff] %vm2044_vm4, %v3278_v63  ;;  %v3559_v32 = vmul.f32 -1.442695, %v2740_v21 }
 0x3fa   : > { %3331 = vst.msk [vmem:[%s6900_s28 + $0x50] sm:$0xff] %vm2044_vm4, %v3277_v13  ;;  %v3558_v14 = vmul.f32 -1.442695, %v2735_v23 }
 0x3fb   : > { %v3888_v42 = vpop.eup %3887  ;;  %3891 = vpow2.f32 %v3559_v32  ;;  %v3734_v27 = vpop.f32.mrb[10].mxu1 }
 0x3fc   : > { %v3890_v51 = vpop.eup %3889  ;;  %v3304_v33 = vmul.f32 %v3888_v42, %v7246_v19  ;;  %3893 = vpow2.f32 %v3558_v14  ;;  %v2870_v48 = vadd.f32 %v3734_v27, %v6783_v44  ;;  %v2864_v22 = vpop.f32.mrb[11].mxu1 }
 0x3fd   : > { %v3303_v59 = vmul.f32 %v3890_v51, %v2855_v60  ;;  %v2865_v18 = vadd.f32 %v6783_v44, %v2864_v22 }
 0x3fe   : > { %3358 = vst.msk [vmem:[%s6900_s28 + $0x128] sm:$0xff] %vm2044_vm4, %v3304_v33  ;;  %v3585_v50 = vmul.f32 -1.442695, %v2870_v48 }
 0x3ff   : > { %3357 = vst.msk [vmem:[%s6900_s28 + $0x120] sm:$0xff] %vm2044_vm4, %v3303_v59  ;;  %v3584_v4 = vmul.f32 -1.442695, %v2865_v18 }
 0x400   : > { %3895 = vpow2.f32 %v3585_v50 }
 0x401   : > { %3897 = vpow2.f32 %v3584_v4 }
 0x405   : > { %v3892_v3 = vpop.eup %3891 }
 0x406   : > { %v3894_v57 = vpop.eup %3893  ;;  %v3118_v34 = vadd.f32 1.0, %v3892_v3 }
 0x407   : > { %v3117_v62 = vadd.f32 1.0, %v3894_v57 }
 0x408   : > { %3899 = vrcp.f32 %v3118_v34 }
 0x409   : > { %3901 = vrcp.f32 %v3117_v62 }
 0x40a   : > { %v3896_v53 = vpop.eup %3895 }
 0x40b   : > { %v3898_v38 = vpop.eup %3897  ;;  %v3144_v28 = vadd.f32 1.0, %v3896_v53 }
 0x40c   : > { %v3143_v44 = vadd.f32 1.0, %v3898_v38 }
 0x40d   : > { %3903 = vrcp.f32 %v3144_v28 }
 0x40e   : > { %3905 = vrcp.f32 %v3143_v44 }
 0x412   : > { %v3900_v19 = vpop.eup %3899  ;;  %v3698_v45 = vpop.f32.mrb[14].mxu0 }
 0x413   : > { %v3902_v29 = vpop.eup %3901  ;;  %v3280_v16 = vmul.f32 %v3900_v19, %v2740_v21  ;;  %v2750_v1 = vadd.f32 %v7301_v58, %v3698_v45  ;;  %v2744_v60 = vpop.f32.mrb[15].mxu0 }
 0x414   : > { %v3279_v8 = vmul.f32 %v3902_v29, %v2735_v23  ;;  %v2745_v35 = vadd.f32 %v7301_v58, %v2744_v60 }
 0x415   : > { %3334 = vst.msk [vmem:[%s6900_s28 + $0x68] sm:$0xff] %vm2044_vm4, %v3280_v16  ;;  %v3561_v9 = vmul.f32 -1.442695, %v2750_v1 }
 0x416   : > { %3333 = vst.msk [vmem:[%s6900_s28 + $0x60] sm:$0xff] %vm2044_vm4, %v3279_v8  ;;  %v3560_v39 = vmul.f32 -1.442695, %v2745_v35 }
 0x417   : > { %v3904_v30 = vpop.eup %3903  ;;  %3907 = vpow2.f32 %v3561_v9  ;;  %v3737_v17 = vpop.f32.mrb[12].mxu1 }
 0x418   : > { %v3906_v52 = vpop.eup %3905  ;;  %v3306_v25 = vmul.f32 %v3904_v30, %v2870_v48  ;;  %3909 = vpow2.f32 %v3560_v39  ;;  %v2880_v41 = vadd.f32 %v7301_v58, %v3737_v17  ;;  %v2874_v37 = vpop.f32.mrb[13].mxu1 }
 0x419   : > { %v3305_v26 = vmul.f32 %v3906_v52, %v2865_v18  ;;  %v2875_v10 = vadd.f32 %v7301_v58, %v2874_v37 }
 0x41a   : > { %3360 = vst.msk [vmem:[%s6900_s28 + $0x138] sm:$0xff] %vm2044_vm4, %v3306_v25  ;;  %v3587_v43 = vmul.f32 -1.442695, %v2880_v41 }
 0x41b   : > { %3359 = vst.msk [vmem:[%s6900_s28 + $0x130] sm:$0xff] %vm2044_vm4, %v3305_v26  ;;  %v3586_v12 = vmul.f32 -1.442695, %v2875_v10 }
 0x41c   : > { %3911 = vpow2.f32 %v3587_v43 }
 0x41d   : > { %3913 = vpow2.f32 %v3586_v12 }
 0x421   : > { %v3908_v54 = vpop.eup %3907 }
 0x422   : > { %v3910_v11 = vpop.eup %3909  ;;  %v3120_v6 = vadd.f32 1.0, %v3908_v54 }
 0x423   : > { %v3119_v49 = vadd.f32 1.0, %v3910_v11 }
 0x424   : > { %3915 = vrcp.f32 %v3120_v6 }
 0x425   : > { %3917 = vrcp.f32 %v3119_v49 }
 0x426   : > { %v3912_v7 = vpop.eup %3911 }
 0x427   : > { %v3914_v56 = vpop.eup %3913  ;;  %v3146_v24 = vadd.f32 1.0, %v3912_v7 }
 0x428   : > { %v3145_v2 = vadd.f32 1.0, %v3914_v56 }
 0x429   : > { %3919 = vrcp.f32 %v3146_v24 }
 0x42a   : > { %3921 = vrcp.f32 %v3145_v2 }
 0x42e   : > { %v3916_v46 = vpop.eup %3915  ;;  %v3701_v0 = vpop.f32.mrb[16].mxu0 }
 0x42f   : > { %v3918_v61 = vpop.eup %3917  ;;  %v3282_v36 = vmul.f32 %v3916_v46, %v2750_v1  ;;  %v2760_v20 = vadd.f32 %v7301_v58, %v3701_v0  ;;  %v2754_v47 = vpop.f32.mrb[17].mxu0 }
 0x430   : > { %v3281_v31 = vmul.f32 %v3918_v61, %v2745_v35  ;;  %v2755_v15 = vadd.f32 %v7301_v58, %v2754_v47 }
 0x431   : > { %3336 = vst.msk [vmem:[%s6900_s28 + $0x78] sm:$0xff] %vm2044_vm4, %v3282_v36  ;;  %v3563_v55 = vmul.f32 -1.442695, %v2760_v20 }
 0x432   : > { %3335 = vst.msk [vmem:[%s6900_s28 + $0x70] sm:$0xff] %vm2044_vm4, %v3281_v31  ;;  %v3562_v40 = vmul.f32 -1.442695, %v2755_v15 }
 0x433   : > { %v3920_v63 = vpop.eup %3919  ;;  %3923 = vpow2.f32 %v3563_v55  ;;  %v3740_v21 = vpop.f32.mrb[14].mxu1 }
 0x434   : > { %v3922_v5 = vpop.eup %3921  ;;  %v3308_v13 = vmul.f32 %v3920_v63, %v2880_v41  ;;  %3925 = vpow2.f32 %v3562_v40  ;;  %v2890_v23 = vadd.f32 %v7301_v58, %v3740_v21  ;;  %v2884_v32 = vpop.f32.mrb[15].mxu1 }
 0x435   : > { %v3307_v14 = vmul.f32 %v3922_v5, %v2875_v10  ;;  %v2885_v42 = vadd.f32 %v7301_v58, %v2884_v32 }
 0x436   : > { %3362 = vst.msk [vmem:[%s6900_s28 + $0x148] sm:$0xff] %vm2044_vm4, %v3308_v13  ;;  %v3589_v27 = vmul.f32 -1.442695, %v2890_v23 }
 0x437   : > { %3361 = vst.msk [vmem:[%s6900_s28 + $0x140] sm:$0xff] %vm2044_vm4, %v3307_v14  ;;  %v3588_v51 = vmul.f32 -1.442695, %v2885_v42 }
 0x438   : > { %3927 = vpow2.f32 %v3589_v27 }
 0x439   : > { %3929 = vpow2.f32 %v3588_v51 }
 0x43d   : > { %v3924_v33 = vpop.eup %3923 }
 0x43e   : > { %v3926_v48 = vpop.eup %3925  ;;  %v3122_v22 = vadd.f32 1.0, %v3924_v33 }
 0x43f   : > { %v3121_v59 = vadd.f32 1.0, %v3926_v48 }
 0x440   : > { %3931 = vrcp.f32 %v3122_v22 }
 0x441   : > { %3933 = vrcp.f32 %v3121_v59 }
 0x442   : > { %v3928_v18 = vpop.eup %3927 }
 0x443   : > { %v3930_v50 = vpop.eup %3929  ;;  %v3148_v4 = vadd.f32 1.0, %v3928_v18 }
 0x444   : > { %v3147_v3 = vadd.f32 1.0, %v3930_v50 }
 0x445   : > { %3935 = vrcp.f32 %v3148_v4 }
 0x446   : > { %3937 = vrcp.f32 %v3147_v3 }
 0x44a   : > { %v3932_v57 = vpop.eup %3931  ;;  %v3704_v34 = vpop.f32.mrb[18].mxu0 }
 0x44b   : > { %v3934_v62 = vpop.eup %3933  ;;  %v3284_v53 = vmul.f32 %v3932_v57, %v2760_v20  ;;  %v2770_v38 = vadd.f32 %v7301_v58, %v3704_v34  ;;  %v2764_v28 = vpop.f32.mrb[19].mxu0 }
 0x44c   : > { %v3283_v44 = vmul.f32 %v3934_v62, %v2755_v15  ;;  %v2765_v19 = vadd.f32 %v7301_v58, %v2764_v28 }
 0x44d   : > { %3338 = vst.msk [vmem:[%s6900_s28 + $0x88] sm:$0xff] %vm2044_vm4, %v3284_v53  ;;  %v3565_v45 = vmul.f32 -1.442695, %v2770_v38 }
 0x44e   : > { %3337 = vst.msk [vmem:[%s6900_s28 + $0x80] sm:$0xff] %vm2044_vm4, %v3283_v44  ;;  %v3564_v29 = vmul.f32 -1.442695, %v2765_v19 }
 0x44f   : > { %v3936_v16 = vpop.eup %3935  ;;  %3939 = vpow2.f32 %v3565_v45  ;;  %v3743_v1 = vpop.f32.mrb[16].mxu1 }
 0x450   : > { %v3938_v60 = vpop.eup %3937  ;;  %v3310_v8 = vmul.f32 %v3936_v16, %v2890_v23  ;;  %3941 = vpow2.f32 %v3564_v29  ;;  %v2900_v35 = vadd.f32 %v7301_v58, %v3743_v1  ;;  %v2894_v9 = vpop.f32.mrb[17].mxu1 }
 0x451   : > { %v3309_v39 = vmul.f32 %v3938_v60, %v2885_v42  ;;  %v2895_v30 = vadd.f32 %v7301_v58, %v2894_v9 }
 0x452   : > { %3364 = vst.msk [vmem:[%s6900_s28 + $0x158] sm:$0xff] %vm2044_vm4, %v3310_v8  ;;  %v3591_v17 = vmul.f32 -1.442695, %v2900_v35 }
 0x453   : > { %3363 = vst.msk [vmem:[%s6900_s28 + $0x150] sm:$0xff] %vm2044_vm4, %v3309_v39  ;;  %v3590_v52 = vmul.f32 -1.442695, %v2895_v30 }
 0x454   : > { %3943 = vpow2.f32 %v3591_v17 }
 0x455   : > { %3945 = vpow2.f32 %v3590_v52 }
 0x459   : > { %v3940_v25 = vpop.eup %3939 }
 0x45a   : > { %v3942_v41 = vpop.eup %3941  ;;  %v3124_v37 = vadd.f32 1.0, %v3940_v25 }
 0x45b   : > { %v3123_v26 = vadd.f32 1.0, %v3942_v41 }
 0x45c   : > { %3947 = vrcp.f32 %v3124_v37 }
 0x45d   : > { %3949 = vrcp.f32 %v3123_v26 }
 0x45e   : > { %v3944_v10 = vpop.eup %3943 }
 0x45f   : > { %v3946_v43 = vpop.eup %3945  ;;  %v3150_v12 = vadd.f32 1.0, %v3944_v10 }
 0x460   : > { %v3149_v54 = vadd.f32 1.0, %v3946_v43 }
 0x461   : > { %3951 = vrcp.f32 %v3150_v12 }
 0x462   : > { %3953 = vrcp.f32 %v3149_v54 }
 0x466   : > { %v3948_v11 = vpop.eup %3947  ;;  %v3707_v6 = vpop.f32.mrb[20].mxu0 }
 0x467   : > { %v3950_v49 = vpop.eup %3949  ;;  %v3286_v7 = vmul.f32 %v3948_v11, %v2770_v38  ;;  %v2780_v56 = vadd.f32 %v7301_v58, %v3707_v6  ;;  %v2774_v24 = vpop.f32.mrb[21].mxu0 }
 0x468   : > { %v3285_v2 = vmul.f32 %v3950_v49, %v2765_v19  ;;  %v2775_v46 = vadd.f32 %v7301_v58, %v2774_v24 }
 0x469   : > { %3340 = vst.msk [vmem:[%s6900_s28 + $0x98] sm:$0xff] %vm2044_vm4, %v3286_v7  ;;  %v3567_v0 = vmul.f32 -1.442695, %v2780_v56 }
 0x46a   : > { %3339 = vst.msk [vmem:[%s6900_s28 + $0x90] sm:$0xff] %vm2044_vm4, %v3285_v2  ;;  %v3566_v61 = vmul.f32 -1.442695, %v2775_v46 }
 0x46b   : > { %v3952_v36 = vpop.eup %3951  ;;  %3955 = vpow2.f32 %v3567_v0  ;;  %v3746_v20 = vpop.f32.mrb[18].mxu1 }
 0x46c   : > { %v3954_v47 = vpop.eup %3953  ;;  %v3312_v31 = vmul.f32 %v3952_v36, %v2900_v35  ;;  %3957 = vpow2.f32 %v3566_v61  ;;  %v2910_v15 = vadd.f32 %v7301_v58, %v3746_v20  ;;  %v2904_v55 = vpop.f32.mrb[19].mxu1 }
 0x46d   : > { %v3311_v40 = vmul.f32 %v3954_v47, %v2895_v30  ;;  %v2905_v63 = vadd.f32 %v7301_v58, %v2904_v55 }
 0x46e   : > { %3366 = vst.msk [vmem:[%s6900_s28 + $0x168] sm:$0xff] %vm2044_vm4, %v3312_v31  ;;  %v3593_v21 = vmul.f32 -1.442695, %v2910_v15 }
 0x46f   : > { %3365 = vst.msk [vmem:[%s6900_s28 + $0x160] sm:$0xff] %vm2044_vm4, %v3311_v40  ;;  %v3592_v5 = vmul.f32 -1.442695, %v2905_v63 }
 0x470   : > { %3959 = vpow2.f32 %v3593_v21 }
 0x471   : > { %3961 = vpow2.f32 %v3592_v5 }
 0x475   : > { %v3956_v13 = vpop.eup %3955 }
 0x476   : > { %v3958_v23 = vpop.eup %3957  ;;  %v3126_v32 = vadd.f32 1.0, %v3956_v13 }
 0x477   : > { %v3125_v14 = vadd.f32 1.0, %v3958_v23 }
 0x478   : > { %3963 = vrcp.f32 %v3126_v32 }
 0x479   : > { %3965 = vrcp.f32 %v3125_v14 }
 0x47a   : > { %v3960_v42 = vpop.eup %3959 }
 0x47b   : > { %v3962_v27 = vpop.eup %3961  ;;  %v3152_v51 = vadd.f32 1.0, %v3960_v42 }
 0x47c   : > { %v3151_v33 = vadd.f32 1.0, %v3962_v27 }
 0x47d   : > { %3967 = vrcp.f32 %v3152_v51 }
 0x47e   : > { %3969 = vrcp.f32 %v3151_v33 }
 0x482   : > { %v3964_v48 = vpop.eup %3963  ;;  %v3710_v22 = vpop.f32.mrb[22].mxu0 }
 0x483   : > { %v3966_v59 = vpop.eup %3965  ;;  %v3288_v18 = vmul.f32 %v3964_v48, %v2780_v56  ;;  %v2790_v50 = vadd.f32 %v7301_v58, %v3710_v22  ;;  %v2784_v4 = vpop.f32.mrb[23].mxu0 }
 0x484   : > { %v3287_v3 = vmul.f32 %v3966_v59, %v2775_v46  ;;  %v2785_v57 = vadd.f32 %v7301_v58, %v2784_v4 }
 0x485   : > { %3342 = vst.msk [vmem:[%s6900_s28 + $0xa8] sm:$0xff] %vm2044_vm4, %v3288_v18  ;;  %v3569_v34 = vmul.f32 -1.442695, %v2790_v50 }
 0x486   : > { %3341 = vst.msk [vmem:[%s6900_s28 + $0xa0] sm:$0xff] %vm2044_vm4, %v3287_v3  ;;  %v3568_v62 = vmul.f32 -1.442695, %v2785_v57 }
 0x487   : > { %v3968_v53 = vpop.eup %3967  ;;  %3971 = vpow2.f32 %v3569_v34  ;;  %v3749_v38 = vpop.f32.mrb[20].mxu1 }
 0x488   : > { %v3970_v28 = vpop.eup %3969  ;;  %v3314_v44 = vmul.f32 %v3968_v53, %v2910_v15  ;;  %3973 = vpow2.f32 %v3568_v62  ;;  %v2920_v19 = vadd.f32 %v7301_v58, %v3749_v38  ;;  %v2914_v45 = vpop.f32.mrb[21].mxu1 }
 0x489   : > { %v3313_v29 = vmul.f32 %v3970_v28, %v2905_v63  ;;  %v2915_v16 = vadd.f32 %v7301_v58, %v2914_v45 }
 0x48a   : > { %3368 = vst.msk [vmem:[%s6900_s28 + $0x178] sm:$0xff] %vm2044_vm4, %v3314_v44  ;;  %v3595_v1 = vmul.f32 -1.442695, %v2920_v19 }
 0x48b   : > { %3367 = vst.msk [vmem:[%s6900_s28 + $0x170] sm:$0xff] %vm2044_vm4, %v3313_v29  ;;  %v3594_v60 = vmul.f32 -1.442695, %v2915_v16 }
 0x48c   : > { %3975 = vpow2.f32 %v3595_v1 }
 0x48d   : > { %3977 = vpow2.f32 %v3594_v60 }
 0x491   : > { %v3972_v8 = vpop.eup %3971 }
 0x492   : > { %v3974_v35 = vpop.eup %3973  ;;  %v3128_v9 = vadd.f32 1.0, %v3972_v8 }
 0x493   : > { %v3127_v39 = vadd.f32 1.0, %v3974_v35 }
 0x494   : > { %3979 = vrcp.f32 %v3128_v9 }
 0x495   : > { %3981 = vrcp.f32 %v3127_v39 }
 0x496   : > { %v3976_v30 = vpop.eup %3975 }
 0x497   : > { %v3978_v17 = vpop.eup %3977  ;;  %v3154_v52 = vadd.f32 1.0, %v3976_v30 }
 0x498   : > { %v3153_v25 = vadd.f32 1.0, %v3978_v17 }
 0x499   : > { %3983 = vrcp.f32 %v3154_v52 }
 0x49a   : > { %3985 = vrcp.f32 %v3153_v25 }
 0x49e   : > { %v3980_v41 = vpop.eup %3979  ;;  %v3713_v37 = vpop.f32.mrb[24].mxu0 }
 0x49f   : > { %v3982_v26 = vpop.eup %3981  ;;  %v3290_v10 = vmul.f32 %v3980_v41, %v2790_v50  ;;  %v2800_v43 = vadd.f32 %v7301_v58, %v3713_v37  ;;  %v2794_v12 = vpop.f32.mrb[25].mxu0 }
 0x4a0   : > { %v3289_v54 = vmul.f32 %v3982_v26, %v2785_v57  ;;  %v2795_v11 = vadd.f32 %v7301_v58, %v2794_v12 }
 0x4a1   : > { %3344 = vst.msk [vmem:[%s6900_s28 + $0xb8] sm:$0xff] %vm2044_vm4, %v3290_v10  ;;  %v3571_v6 = vmul.f32 -1.442695, %v2800_v43 }
 0x4a2   : > { %3343 = vst.msk [vmem:[%s6900_s28 + $0xb0] sm:$0xff] %vm2044_vm4, %v3289_v54  ;;  %v3570_v49 = vmul.f32 -1.442695, %v2795_v11 }
 0x4a3   : > { %v3984_v7 = vpop.eup %3983  ;;  %3987 = vpow2.f32 %v3571_v6  ;;  %v3752_v56 = vpop.f32.mrb[22].mxu1 }
 0x4a4   : > { %v3986_v24 = vpop.eup %3985  ;;  %v3316_v2 = vmul.f32 %v3984_v7, %v2920_v19  ;;  %3989 = vpow2.f32 %v3570_v49  ;;  %v2930_v46 = vadd.f32 %v7301_v58, %v3752_v56  ;;  %v2924_v0 = vpop.f32.mrb[23].mxu1 }
 0x4a5   : > { %v3315_v61 = vmul.f32 %v3986_v24, %v2915_v16  ;;  %v2925_v36 = vadd.f32 %v7301_v58, %v2924_v0 }
 0x4a6   : > { %3370 = vst.msk [vmem:[%s6900_s28 + $0x188] sm:$0xff] %vm2044_vm4, %v3316_v2  ;;  %v3597_v20 = vmul.f32 -1.442695, %v2930_v46 }
 0x4a7   : > { %3369 = vst.msk [vmem:[%s6900_s28 + $0x180] sm:$0xff] %vm2044_vm4, %v3315_v61  ;;  %v3596_v47 = vmul.f32 -1.442695, %v2925_v36 }
 0x4a8   : > { %3991 = vpow2.f32 %v3597_v20 }
 0x4a9   : > { %3993 = vpow2.f32 %v3596_v47 }
 0x4ad   : > { %v3988_v31 = vpop.eup %3987 }
 0x4ae   : > { %v3990_v15 = vpop.eup %3989  ;;  %v3130_v55 = vadd.f32 1.0, %v3988_v31 }
 0x4af   : > { %v3129_v40 = vadd.f32 1.0, %v3990_v15 }
 0x4b0   : > { %3995 = vrcp.f32 %v3130_v55 }
 0x4b1   : > { %3997 = vrcp.f32 %v3129_v40 }
 0x4b2   : > { %v3992_v63 = vpop.eup %3991 }
 0x4b3   : > { %v3994_v21 = vpop.eup %3993  ;;  %v3156_v5 = vadd.f32 1.0, %v3992_v63 }
 0x4b4   : > { %v3155_v13 = vadd.f32 1.0, %v3994_v21 }
 0x4b5   : > { %3999 = vrcp.f32 %v3156_v5 }
 0x4b6   : > { %4001 = vrcp.f32 %v3155_v13 }
 0x4ba   : > { %v3996_v23 = vpop.eup %3995  ;;  %v3755_v32 = vpop.f32.mrb[24].mxu1 }
 0x4bb   : > { %v3998_v14 = vpop.eup %3997  ;;  %v3292_v42 = vmul.f32 %v3996_v23, %v2800_v43  ;;  %v3716_v27 = vpop.f32.mrb[26].mxu0  ;;  %v2940_v51 = vadd.f32 %v7301_v58, %v3755_v32 }
 0x4bc   : > { %v2934_v33 = vpop.f32.mrb[25].mxu1  ;;  %v3291_v48 = vmul.f32 %v3998_v14, %v2795_v11  ;;  %v2810_v22 = vadd.f32 %v7301_v58, %v3716_v27  ;;  %v2804_v59 = vpop.f32.mrb[27].mxu0 }
 0x4bd   : > { %v2935_v18 = vadd.f32 %v7301_v58, %v2934_v33  ;;  %3346 = vst.msk [vmem:[%s6900_s28 + $0xc8] sm:$0xff] %vm2044_vm4, %v3292_v42  ;;  %v3599_v50 = vmul.f32 -1.442695, %v2940_v51  ;;  %v2805_v4 = vadd.f32 %v7301_v58, %v2804_v59 }
 0x4be   : > { %3345 = vst.msk [vmem:[%s6900_s28 + $0xc0] sm:$0xff] %vm2044_vm4, %v3291_v48  ;;  %v3573_v3 = vmul.f32 -1.442695, %v2810_v22 }
 0x4bf   : > { %v3598_v57 = vmul.f32 -1.442695, %v2935_v18  ;;  %v4000_v34 = vpop.eup %3999  ;;  %4003 = vpow2.f32 %v3599_v50  ;;  %v3572_v62 = vmul.f32 -1.442695, %v2805_v4 }
 0x4c0   : > { %v4002_v53 = vpop.eup %4001  ;;  %v3318_v38 = vmul.f32 %v4000_v34, %v2930_v46  ;;  %4005 = vpow2.f32 %v3573_v3 }
 0x4c1   : > { %v3317_v28 = vmul.f32 %v4002_v53, %v2925_v36  ;;  %4007 = vpow2.f32 %v3572_v62 }
 0x4c2   : > { %3372 = vst.msk [vmem:[%s6900_s28 + $0x198] sm:$0xff] %vm2044_vm4, %v3318_v38  ;;  %4009 = vpow2.f32 %v3598_v57 }
 0x4c3   : > { %3371 = vst.msk [vmem:[%s6900_s28 + $0x190] sm:$0xff] %vm2044_vm4, %v3317_v28 }
 0x4c9   : > { %v4004_v44 = vpop.eup %4003 }
 0x4ca   : > { %v4006_v19 = vpop.eup %4005  ;;  %v3158_v58 = vadd.f32 1.0, %v4004_v44 }
 0x4cb   : > { %v4008_v45 = vpop.eup %4007  ;;  %v3132_v29 = vadd.f32 1.0, %v4006_v19 }
 0x4cc   : > { %v4010_v16 = vpop.eup %4009  ;;  %4011 = vrcp.f32 %v3158_v58  ;;  %v3131_v1 = vadd.f32 1.0, %v4008_v45 }
 0x4cd   : > { %4013 = vrcp.f32 %v3132_v29  ;;  %v3157_v60 = vadd.f32 1.0, %v4010_v16 }
 0x4ce   : > { %4015 = vrcp.f32 %v3131_v1 }
 0x4cf   : > { %4017 = vrcp.f32 %v3157_v60 }
 0x4d6   : > { %v4012_v8 = vpop.eup %4011 }
 0x4d7   : > { %v4014_v35 = vpop.eup %4013  ;;  %v3320_v9 = vmul.f32 %v4012_v8, %v2940_v51 }
 0x4d8   : > { %v4016_v39 = vpop.eup %4015  ;;  %v3294_v30 = vmul.f32 %v4014_v35, %v2810_v22 }
 0x4d9   : > { %v4018_v17 = vpop.eup %4017  ;;  %3374 = vst.msk [vmem:[%s6900_s28 + $0x1a8] sm:$0xff] %vm2044_vm4, %v3320_v9  ;;  %v3293_v52 = vmul.f32 %v4016_v39, %v2805_v4 }
 0x4da   : > { %3348 = vst.msk [vmem:[%s6900_s28 + $0xd8] sm:$0xff] %vm2044_vm4, %v3294_v30  ;;  %v3319_v25 = vmul.f32 %v4018_v17, %v2935_v18 }
 0x4db   : > { %3347 = vst.msk [vmem:[%s6900_s28 + $0xd0] sm:$0xff] %vm2044_vm4, %v3293_v52 }
 0x4dc   : > { %3373 = vst.msk [vmem:[%s6900_s28 + $0x1a0] sm:$0xff] %vm2044_vm4, %v3319_v25 }
 0x4dd PF: > { %s14_s17 = sadd.s32 1, %s4121_s17   ;;  %s8353_s15 = smov %s4117_s16 }
 0x4de   : > { %p11_p5 = scmp.ge.s32.totalorder %s14_s17, 4   ;;  %s8354_s16 = smov %s8356_s18 }
 0x4e0   :  { %13 = sbr.rel (!%p11_p5) target bundleno = 2 (0x2), region = 69 }

</bundles_post_ra>
